<compile_context>
chip_gen: v6e
topology: v6e:2x2x1
jax: 0.10.0
libtpu: 0.0.40
codegen_flags: <defaults>
</compile_context>

<pallas_src>
import functools
import math

import jax
import jax.numpy as jnp
import numpy as np
from jax.experimental import pallas as pl
from jax.experimental.pallas import tpu as pltpu

LN_EPS = 1e-12  # espnet LayerNorm uses eps=1e-12


# ----------------------------- shared math (used in-kernel and in reference) --
def _ln_core(x):
    """(x - mean) * rsqrt(var + eps) -- the gamma/beta-free LayerNorm core."""
    mean = jnp.mean(x, axis=-1, keepdims=True)
    var = jnp.mean((x - mean) ** 2, axis=-1, keepdims=True)
    return (x - mean) * jax.lax.rsqrt(var + LN_EPS)


def _layer_norm(x, gamma, beta):
    return _ln_core(x) * gamma + beta


def _erf(x):
    # Abramowitz & Stegun 7.1.26 polynomial (|err| < 1.5e-7); only needs exp
    # (EUP) so it lowers cleanly in Mosaic.
    a1, a2, a3, a4, a5 = (0.254829592, -0.284496736, 1.421413741,
                          -1.453152027, 1.061405429)
    p = 0.3275911
    s = jnp.where(x >= 0.0, 1.0, -1.0)
    z = jnp.abs(x)
    t = 1.0 / (1.0 + p * z)
    poly = ((((a5 * t + a4) * t + a3) * t + a2) * t + a1) * t
    return s * (1.0 - poly * jnp.exp(-z * z))


def _gelu(x):
    # TODO(synk): PyTorch nn.GELU() default is exact erf-GELU; this erf
    # polynomial is accurate to ~1.5e-7 (effectively exact at float32).
    return 0.5 * x * (1.0 + _erf(x * (1.0 / math.sqrt(2.0))))


def _dwconv_time(x, w, b):
    """Depthwise conv along time for a (T, C) tile.

    x: (T, C), w: (K, C), b: (1, C); stride 1, 'same' zero padding
    (== PyTorch Conv1d(C, C, K, padding=(K-1)//2, groups=C)).
    O(K*T*C) VPU multiply-accumulate on a zero-halo'd tile -- no (T,T)
    shift-matrix matmuls, no iota masks.
    """
    T, C = x.shape
    K = w.shape[0]
    pad = (K - 1) // 2
    halo = jnp.zeros((pad, C), dtype=x.dtype)
    xp = jnp.concatenate([halo, x, halo], axis=0)        # (T + 2*pad, C)
    acc = jnp.zeros_like(x)
    for k in range(K):
        acc = acc + xp[k:k + T, :] * w[k:k + 1, :]
    return acc + b


# ------------------------------------------------------------------ kernel ---
# All weights are passed in this fixed order after (x, mask); the out ref is
# the last positional argument.
_PARAM_ORDER = (
    # macaron FF
    "ln_ffm_g", "ln_ffm_b", "ffm_w1", "ffm_b1", "ffm_w2", "ffm_b2",
    # attention (head-major weight layout)
    "ln_mha_g", "ln_mha_b", "wq_h", "bq_h", "wk_h", "bk_h", "wv_h", "bv_h",
    "wo_h", "bo",
    # cgMLP (channel_proj1 split into r/g halves)
    "ln_mlp_g", "ln_mlp_b", "cg_w1_r", "cg_b1_r", "cg_w1_g", "cg_b1_g",
    "csgu_ln_g", "csgu_ln_b", "csgu_conv_w", "csgu_conv_b", "cg_w2", "cg_b2",
    # merge module (fusion conv + merge_proj split per branch)
    "fuse_w1", "fuse_b1", "fuse_w2", "fuse_b2", "merge_w1", "merge_w2", "merge_b",
    # final FF + final norm
    "ln_ff_g", "ln_ff_b", "ff_w1", "ff_b1", "ff_w2", "ff_b2",
    "ln_final_g", "ln_final_b",
)


def _ebranchformer_layer_kernel(x_ref, m_ref, *rest, n_heads):
    """Whole EBranchformerEncoderLayer forward for one batch element (T, D)."""
    o_ref = rest[-1]
    w = dict(zip(_PARAM_ORDER, rest[:-1]))

    x = x_ref[0]                                   # (T, D)
    keep = m_ref[0] > 0.5                          # (1, T) key mask (hoisted)
    T, D = x.shape
    dk = D // n_heads
    neg = jnp.finfo(jnp.float32).min

    # ---------------- macaron feed-forward (ff_scale = 0.5) -----------------
    xn = _layer_norm(x, w["ln_ffm_g"][...], w["ln_ffm_b"][...])
    h = jnp.maximum(
        jnp.dot(xn, w["ffm_w1"][...], preferred_element_type=jnp.float32)
        + w["ffm_b1"][...], 0.0)
    x = x + 0.5 * (jnp.dot(h, w["ffm_w2"][...],
                           preferred_element_type=jnp.float32) + w["ffm_b2"][...])

    # norm_mha and norm_mlp normalize the SAME x -> compute the mean/var core
    # once, apply the two (gamma, beta) pairs as per-branch FMAs.
    x_core = _ln_core(x)                           # (T, D)

    # ---------------- attention branch (norm_mha + MHA) ---------------------
    xn = x_core * w["ln_mha_g"][...] + w["ln_mha_b"][...]
    scale = 1.0 / math.sqrt(dk)
    x1 = jnp.zeros_like(x)
    for hd in range(n_heads):   # static unroll; no lane slices, no concat
        qh = jnp.dot(xn, w["wq_h"][hd],
                     preferred_element_type=jnp.float32) + w["bq_h"][hd]
        kh = jnp.dot(xn, w["wk_h"][hd],
                     preferred_element_type=jnp.float32) + w["bk_h"][hd]
        vh = jnp.dot(xn, w["wv_h"][hd],
                     preferred_element_type=jnp.float32) + w["bv_h"][hd]
        s = jax.lax.dot_general(qh, kh, (((1,), (1,)), ((), ())),
                                preferred_element_type=jnp.float32) * scale
        s = jnp.where(keep, s, neg)
        m = jnp.max(s, axis=-1, keepdims=True)
        e = jnp.exp(s - m)
        # NOTE: approx=True (EUP vrcp) is the production setting; exact here
        # to keep bit-level parity with the f32 reference at tight tolerance.
        a = e * pl.reciprocal(jnp.sum(e, axis=-1, keepdims=True), approx=False)
        a = jnp.where(keep, a, 0.0)
        ctx = jnp.dot(a, vh, preferred_element_type=jnp.float32)      # (T, dk)
        x1 = x1 + jnp.dot(ctx, w["wo_h"][hd],
                          preferred_element_type=jnp.float32)
    x1 = x1 + w["bo"][...]

    # ---------------- cgMLP branch (norm_mlp + ConvolutionalGatingMLP) ------
    xn = x_core * w["ln_mlp_g"][...] + w["ln_mlp_b"][...]
    x_r = _gelu(jnp.dot(xn, w["cg_w1_r"][...],
                        preferred_element_type=jnp.float32) + w["cg_b1_r"][...])
    x_g = _gelu(jnp.dot(xn, w["cg_w1_g"][...],
                        preferred_element_type=jnp.float32) + w["cg_b1_g"][...])
    x_g = _layer_norm(x_g, w["csgu_ln_g"][...], w["csgu_ln_b"][...])
    x_g = _dwconv_time(x_g, w["csgu_conv_w"][...], w["csgu_conv_b"][...])
    x2 = jnp.dot(x_r * x_g, w["cg_w2"][...],
                 preferred_element_type=jnp.float32) + w["cg_b2"][...]

    # ---------------- merge (depthwise fusion conv + merge_proj) ------------
    # concat([x1,x2]) @ W == x1 @ W_top + x2 @ W_bot, and the depthwise fusion
    # conv factors per channel group -> concat-free formulation.
    c1 = _dwconv_time(x1, w["fuse_w1"][...], w["fuse_b1"][...])
    c2 = _dwconv_time(x2, w["fuse_w2"][...], w["fuse_b2"][...])
    merged = (jnp.dot(x1 + c1, w["merge_w1"][...],
                      preferred_element_type=jnp.float32)
              + jnp.dot(x2 + c2, w["merge_w2"][...],
                        preferred_element_type=jnp.float32)
              + w["merge_b"][...])
    x = x + merged

    # ---------------- feed-forward (ff_scale = 0.5) -------------------------
    xn = _layer_norm(x, w["ln_ff_g"][...], w["ln_ff_b"][...])
    h = jnp.maximum(
        jnp.dot(xn, w["ff_w1"][...], preferred_element_type=jnp.float32)
        + w["ff_b1"][...], 0.0)
    x = x + 0.5 * (jnp.dot(h, w["ff_w2"][...],
                           preferred_element_type=jnp.float32) + w["ff_b2"][...])

    # TODO(synk): cross_attn path skipped (cross_attn=None / memory=None here).

    # ---------------- final layer norm (kernel epilogue) --------------------
    o_ref[0] = _layer_norm(x, w["ln_final_g"][...], w["ln_final_b"][...])


# --------------------------------------------------------------- dispatch ----
def _prepare_params(p, n_heads):
    """Host-side weight re-layout: head-major attention weights, split cgMLP
    channel_proj1 halves, split merge fusion-conv / merge_proj per branch."""
    D = p["wq"].shape[0]
    dk = D // n_heads
    C = p["cg_w2"].shape[0]

    def heads_w(wm):   # (D, D) -> (H, D, dk)
        return wm.reshape(D, n_heads, dk).transpose(1, 0, 2)

    def heads_b(bm):   # (1, D) -> (H, 1, dk)
        return bm.reshape(1, n_heads, dk).transpose(1, 0, 2)

    q = {
        "ln_ffm_g": p["ln_ffm_g"], "ln_ffm_b": p["ln_ffm_b"],
        "ffm_w1": p["ffm_w1"], "ffm_b1": p["ffm_b1"],
        "ffm_w2": p["ffm_w2"], "ffm_b2": p["ffm_b2"],
        "ln_mha_g": p["ln_mha_g"], "ln_mha_b": p["ln_mha_b"],
        "wq_h": heads_w(p["wq"]), "bq_h": heads_b(p["bq"]),
        "wk_h": heads_w(p["wk"]), "bk_h": heads_b(p["bk"]),
        "wv_h": heads_w(p["wv"]), "bv_h": heads_b(p["bv"]),
        "wo_h": p["wo"].reshape(n_heads, dk, D), "bo": p["bo"],
        "ln_mlp_g": p["ln_mlp_g"], "ln_mlp_b": p["ln_mlp_b"],
        "cg_w1_r": p["cg_w1"][:, :C], "cg_b1_r": p["cg_b1"][:, :C],
        "cg_w1_g": p["cg_w1"][:, C:], "cg_b1_g": p["cg_b1"][:, C:],
        "csgu_ln_g": p["csgu_ln_g"], "csgu_ln_b": p["csgu_ln_b"],
        "csgu_conv_w": p["csgu_conv_w"], "csgu_conv_b": p["csgu_conv_b"],
        "cg_w2": p["cg_w2"], "cg_b2": p["cg_b2"],
        "fuse_w1": p["fuse_conv_w"][:, :D], "fuse_b1": p["fuse_conv_b"][:, :D],
        "fuse_w2": p["fuse_conv_w"][:, D:], "fuse_b2": p["fuse_conv_b"][:, D:],
        "merge_w1": p["merge_w"][:D, :], "merge_w2": p["merge_w"][D:, :],
        "merge_b": p["merge_b"],
        "ln_ff_g": p["ln_ff_g"], "ln_ff_b": p["ln_ff_b"],
        "ff_w1": p["ff_w1"], "ff_b1": p["ff_b1"],
        "ff_w2": p["ff_w2"], "ff_b2": p["ff_b2"],
        "ln_final_g": p["ln_final_g"], "ln_final_b": p["ln_final_b"],
    }
    return q


def e_branchformer_layer(x, mask, p, n_heads):
    """Forward of EBranchformerEncoderLayer (inference, no pos_emb, no cross-attn).

    x:    (B, T, D) float32
    mask: (B, 1, T) float32 {0, 1}
    returns (x_out, mask)
    """
    B, T, D = x.shape
    prepared = _prepare_params(p, n_heads)
    weights = [prepared[k] for k in _PARAM_ORDER]

    batched_specs = [
        pl.BlockSpec((1, T, D), lambda b: (b, 0, 0)),     # x
        pl.BlockSpec((1, 1, T), lambda b: (b, 0, 0)),     # mask
    ]
    # Weights: full-array blocks with a constant index map (fetched once, not
    # re-DMA'd per grid step).
    shared_specs = [
        pl.BlockSpec(wt.shape, lambda b, _n=wt.ndim: (0,) * _n) for wt in weights
    ]

    kernel = functools.partial(_ebranchformer_layer_kernel, n_heads=n_heads)
    # TODO(synk): once the fused boundaries are final, alias x into the output
    # (input_output_aliases={0: 0}) under jit-with-donation to drop one HBM
    # buffer; omitted here so x stays live for the reference check.
    out = pl.pallas_call(
        kernel,
        grid=(B,),
        in_specs=batched_specs + shared_specs,
        out_specs=pl.BlockSpec((1, T, D), lambda b: (b, 0, 0)),
        out_shape=jax.ShapeDtypeStruct((B, T, D), x.dtype),
        compiler_params=pltpu.CompilerParams(
            dimension_semantics=("parallel",)),
    )(x, mask, *weights)
    return out, mask


# ------------------------------------------------------------- reference -----
def _dwconv_ref(x, w, b):
    K = w.shape[0]
    pad = (K - 1) // 2
    T = x.shape[1]
    xp = jnp.pad(x, ((0, 0), (pad, pad), (0, 0)))
    out = sum(xp[:, k:k + T, :] * w[k][None, None, :] for k in range(K))
    return out + b[None]


def reference(x, mask, p, n_heads):
    def ffn(x, g, b, w1, b1, w2, b2):
        xn = _layer_norm(x, g, b)
        h = jnp.maximum(xn @ w1 + b1, 0.0)
        return x + 0.5 * (h @ w2 + b2)

    x = ffn(x, p["ln_ffm_g"], p["ln_ffm_b"], p["ffm_w1"], p["ffm_b1"],
            p["ffm_w2"], p["ffm_b2"])

    B, T, D = x.shape
    dk = D // n_heads
    xn = _layer_norm(x, p["ln_mha_g"], p["ln_mha_b"])
    q = (xn @ p["wq"] + p["bq"]).reshape(B, T, n_heads, dk).transpose(0, 2, 1, 3)
    k = (xn @ p["wk"] + p["bk"]).reshape(B, T, n_heads, dk).transpose(0, 2, 1, 3)
    v = (xn @ p["wv"] + p["bv"]).reshape(B, T, n_heads, dk).transpose(0, 2, 1, 3)
    keep = (mask[:, :, None, :] > 0.5)                    # (B,1,1,T)
    s = jnp.einsum("bhtd,bhsd->bhts", q, k) / math.sqrt(dk)
    s = jnp.where(keep, s, jnp.finfo(jnp.float32).min)
    a = jax.nn.softmax(s, axis=-1)
    a = jnp.where(keep, a, 0.0)
    ctx = jnp.einsum("bhts,bhsd->bhtd", a, v).transpose(0, 2, 1, 3).reshape(B, T, D)
    x1 = ctx @ p["wo"] + p["bo"]

    xn = _layer_norm(x, p["ln_mlp_g"], p["ln_mlp_b"])
    h = _gelu(xn @ p["cg_w1"] + p["cg_b1"])
    C = h.shape[-1] // 2
    xr, xg = h[..., :C], h[..., C:]
    xg = _layer_norm(xg, p["csgu_ln_g"], p["csgu_ln_b"])
    xg = _dwconv_ref(xg, p["csgu_conv_w"], p["csgu_conv_b"])
    x2 = (xr * xg) @ p["cg_w2"] + p["cg_b2"]

    cat = jnp.concatenate([x1, x2], axis=-1)
    conv = _dwconv_ref(cat, p["fuse_conv_w"], p["fuse_conv_b"])
    x = x + (cat + conv) @ p["merge_w"] + p["merge_b"]

    x = ffn(x, p["ln_ff_g"], p["ln_ff_b"], p["ff_w1"], p["ff_b1"],
            p["ff_w2"], p["ff_b2"])
    x = _layer_norm(x, p["ln_final_g"], p["ln_final_b"])
    return x


# --------------------------------------------------------------- params ------
def init_params(key, D=32, ff_units=64, cg_units=64, csgu_kernel=3, merge_kernel=3):
    keys = iter(jax.random.split(key, 32))

    def rnd(shape, scale=0.1):
        return (scale * jax.random.normal(next(keys), shape)).astype(jnp.float32)

    ones = lambda n: jnp.ones((1, n), jnp.float32)
    zeros = lambda n: jnp.zeros((1, n), jnp.float32)
    C = cg_units // 2
    p = dict(
        # macaron FF
        ln_ffm_g=ones(D), ln_ffm_b=zeros(D),
        ffm_w1=rnd((D, ff_units)), ffm_b1=rnd((1, ff_units)),
        ffm_w2=rnd((ff_units, D)), ffm_b2=rnd((1, D)),
        # attention
        ln_mha_g=ones(D), ln_mha_b=zeros(D),
        wq=rnd((D, D)), bq=rnd((1, D)),
        wk=rnd((D, D)), bk=rnd((1, D)),
        wv=rnd((D, D)), bv=rnd((1, D)),
        wo=rnd((D, D)), bo=rnd((1, D)),
        # cgMLP
        ln_mlp_g=ones(D), ln_mlp_b=zeros(D),
        cg_w1=rnd((D, cg_units)), cg_b1=rnd((1, cg_units)),
        csgu_ln_g=ones(C), csgu_ln_b=zeros(C),
        csgu_conv_w=rnd((csgu_kernel, C)), csgu_conv_b=rnd((1, C)),
        cg_w2=rnd((C, D)), cg_b2=rnd((1, D)),
        # merge module
        fuse_conv_w=rnd((merge_kernel, 2 * D)), fuse_conv_b=rnd((1, 2 * D)),
        merge_w=rnd((2 * D, D)), merge_b=rnd((1, D)),
        # final FF + final norm
        ln_ff_g=ones(D), ln_ff_b=zeros(D),
        ff_w1=rnd((D, ff_units)), ff_b1=rnd((1, ff_units)),
        ff_w2=rnd((ff_units, D)), ff_b2=rnd((1, D)),
        ln_final_g=ones(D), ln_final_b=zeros(D),
    )
    return p


# ------------------------------------------------------------------ main -----
if __name__ == "__main__":
    B, T, D, H = 2, 8, 32, 4
    key = jax.random.PRNGKey(0)
    kx, kp = jax.random.split(key)

    x = jax.random.normal(kx, (B, T, D), dtype=jnp.float32)
    lengths = jnp.array([T, T - 2])
    mask = (jnp.arange(T)[None, :] < lengths[:, None]).astype(jnp.float32)[:, None, :]

    params = init_params(kp, D=D)

    out, out_mask = e_branchformer_layer(x, mask, params, n_heads=H)
    out = jax.block_until_ready(out)

    ref = reference(x, mask, params, n_heads=H)
    np.testing.assert_allclose(np.asarray(out), np.asarray(ref), rtol=2e-4, atol=2e-4)

    print("KERNEL_OK")
</pallas_src>

<mosaic_0001>
module attributes {stable_mosaic.version = 11 : i64} {
  func.func @_ebranchformer_layer_kernel(%arg0: i32, %arg1: memref<1x8x32xf32, #tpu.memory_space<vmem>>, %arg2: memref<1x1x8xf32, #tpu.memory_space<vmem>>, %arg3: memref<1x32xf32, #tpu.memory_space<vmem>>, %arg4: memref<1x32xf32, #tpu.memory_space<vmem>>, %arg5: memref<32x64xf32, #tpu.memory_space<vmem>>, %arg6: memref<1x64xf32, #tpu.memory_space<vmem>>, %arg7: memref<64x32xf32, #tpu.memory_space<vmem>>, %arg8: memref<1x32xf32, #tpu.memory_space<vmem>>, %arg9: memref<1x32xf32, #tpu.memory_space<vmem>>, %arg10: memref<1x32xf32, #tpu.memory_space<vmem>>, %arg11: memref<4x32x8xf32, #tpu.memory_space<vmem>>, %arg12: memref<4x1x8xf32, #tpu.memory_space<vmem>>, %arg13: memref<4x32x8xf32, #tpu.memory_space<vmem>>, %arg14: memref<4x1x8xf32, #tpu.memory_space<vmem>>, %arg15: memref<4x32x8xf32, #tpu.memory_space<vmem>>, %arg16: memref<4x1x8xf32, #tpu.memory_space<vmem>>, %arg17: memref<4x8x32xf32, #tpu.memory_space<vmem>>, %arg18: memref<1x32xf32, #tpu.memory_space<vmem>>, %arg19: memref<1x32xf32, #tpu.memory_space<vmem>>, %arg20: memref<1x32xf32, #tpu.memory_space<vmem>>, %arg21: memref<32x32xf32, #tpu.memory_space<vmem>>, %arg22: memref<1x32xf32, #tpu.memory_space<vmem>>, %arg23: memref<32x32xf32, #tpu.memory_space<vmem>>, %arg24: memref<1x32xf32, #tpu.memory_space<vmem>>, %arg25: memref<1x32xf32, #tpu.memory_space<vmem>>, %arg26: memref<1x32xf32, #tpu.memory_space<vmem>>, %arg27: memref<3x32xf32, #tpu.memory_space<vmem>>, %arg28: memref<1x32xf32, #tpu.memory_space<vmem>>, %arg29: memref<32x32xf32, #tpu.memory_space<vmem>>, %arg30: memref<1x32xf32, #tpu.memory_space<vmem>>, %arg31: memref<3x32xf32, #tpu.memory_space<vmem>>, %arg32: memref<1x32xf32, #tpu.memory_space<vmem>>, %arg33: memref<3x32xf32, #tpu.memory_space<vmem>>, %arg34: memref<1x32xf32, #tpu.memory_space<vmem>>, %arg35: memref<32x32xf32, #tpu.memory_space<vmem>>, %arg36: memref<32x32xf32, #tpu.memory_space<vmem>>, %arg37: memref<1x32xf32, #tpu.memory_space<vmem>>, %arg38: memref<1x32xf32, #tpu.memory_space<vmem>>, %arg39: memref<1x32xf32, #tpu.memory_space<vmem>>, %arg40: memref<32x64xf32, #tpu.memory_space<vmem>>, %arg41: memref<1x64xf32, #tpu.memory_space<vmem>>, %arg42: memref<64x32xf32, #tpu.memory_space<vmem>>, %arg43: memref<1x32xf32, #tpu.memory_space<vmem>>, %arg44: memref<1x32xf32, #tpu.memory_space<vmem>>, %arg45: memref<1x32xf32, #tpu.memory_space<vmem>>, %arg46: memref<1x8x32xf32, #tpu.memory_space<vmem>>) attributes {dimension_semantics = [#tpu.dimension_semantics<parallel>], iteration_bounds = array<i64: 2>, scalar_prefetch = 0 : i64, scratch_operands = 0 : i64, tpu.core_type = #tpu.core_type<tc>, window_params = [{transform_indices = @transform_0, window_bounds = array<i64: 1, 8, 32>}, {transform_indices = @transform_1, window_bounds = array<i64: 1, 1, 8>}, {pipeline_mode = #tpu.pipeline_mode<synchronous>, transform_indices = @transform_2, window_bounds = array<i64: 1, 32>}, {pipeline_mode = #tpu.pipeline_mode<synchronous>, transform_indices = @transform_3, window_bounds = array<i64: 1, 32>}, {pipeline_mode = #tpu.pipeline_mode<synchronous>, transform_indices = @transform_4, window_bounds = array<i64: 32, 64>}, {pipeline_mode = #tpu.pipeline_mode<synchronous>, transform_indices = @transform_5, window_bounds = array<i64: 1, 64>}, {pipeline_mode = #tpu.pipeline_mode<synchronous>, transform_indices = @transform_6, window_bounds = array<i64: 64, 32>}, {pipeline_mode = #tpu.pipeline_mode<synchronous>, transform_indices = @transform_7, window_bounds = array<i64: 1, 32>}, {pipeline_mode = #tpu.pipeline_mode<synchronous>, transform_indices = @transform_8, window_bounds = array<i64: 1, 32>}, {pipeline_mode = #tpu.pipeline_mode<synchronous>, transform_indices = @transform_9, window_bounds = array<i64: 1, 32>}, {pipeline_mode = #tpu.pipeline_mode<synchronous>, transform_indices = @transform_10, window_bounds = array<i64: 4, 32, 8>}, {pipeline_mode = #tpu.pipeline_mode<synchronous>, transform_indices = @transform_11, window_bounds = array<i64: 4, 1, 8>}, {pipeline_mode = #tpu.pipeline_mode<synchronous>, transform_indices = @transform_12, window_bounds = array<i64: 4, 32, 8>}, {pipeline_mode = #tpu.pipeline_mode<synchronous>, transform_indices = @transform_13, window_bounds = array<i64: 4, 1, 8>}, {pipeline_mode = #tpu.pipeline_mode<synchronous>, transform_indices = @transform_14, window_bounds = array<i64: 4, 32, 8>}, {pipeline_mode = #tpu.pipeline_mode<synchronous>, transform_indices = @transform_15, window_bounds = array<i64: 4, 1, 8>}, {pipeline_mode = #tpu.pipeline_mode<synchronous>, transform_indices = @transform_16, window_bounds = array<i64: 4, 8, 32>}, {pipeline_mode = #tpu.pipeline_mode<synchronous>, transform_indices = @transform_17, window_bounds = array<i64: 1, 32>}, {pipeline_mode = #tpu.pipeline_mode<synchronous>, transform_indices = @transform_18, window_bounds = array<i64: 1, 32>}, {pipeline_mode = #tpu.pipeline_mode<synchronous>, transform_indices = @transform_19, window_bounds = array<i64: 1, 32>}, {pipeline_mode = #tpu.pipeline_mode<synchronous>, transform_indices = @transform_20, window_bounds = array<i64: 32, 32>}, {pipeline_mode = #tpu.pipeline_mode<synchronous>, transform_indices = @transform_21, window_bounds = array<i64: 1, 32>}, {pipeline_mode = #tpu.pipeline_mode<synchronous>, transform_indices = @transform_22, window_bounds = array<i64: 32, 32>}, {pipeline_mode = #tpu.pipeline_mode<synchronous>, transform_indices = @transform_23, window_bounds = array<i64: 1, 32>}, {pipeline_mode = #tpu.pipeline_mode<synchronous>, transform_indices = @transform_24, window_bounds = array<i64: 1, 32>}, {pipeline_mode = #tpu.pipeline_mode<synchronous>, transform_indices = @transform_25, window_bounds = array<i64: 1, 32>}, {pipeline_mode = #tpu.pipeline_mode<synchronous>, transform_indices = @transform_26, window_bounds = array<i64: 3, 32>}, {pipeline_mode = #tpu.pipeline_mode<synchronous>, transform_indices = @transform_27, window_bounds = array<i64: 1, 32>}, {pipeline_mode = #tpu.pipeline_mode<synchronous>, transform_indices = @transform_28, window_bounds = array<i64: 32, 32>}, {pipeline_mode = #tpu.pipeline_mode<synchronous>, transform_indices = @transform_29, window_bounds = array<i64: 1, 32>}, {pipeline_mode = #tpu.pipeline_mode<synchronous>, transform_indices = @transform_30, window_bounds = array<i64: 3, 32>}, {pipeline_mode = #tpu.pipeline_mode<synchronous>, transform_indices = @transform_31, window_bounds = array<i64: 1, 32>}, {pipeline_mode = #tpu.pipeline_mode<synchronous>, transform_indices = @transform_32, window_bounds = array<i64: 3, 32>}, {pipeline_mode = #tpu.pipeline_mode<synchronous>, transform_indices = @transform_33, window_bounds = array<i64: 1, 32>}, {pipeline_mode = #tpu.pipeline_mode<synchronous>, transform_indices = @transform_34, window_bounds = array<i64: 32, 32>}, {pipeline_mode = #tpu.pipeline_mode<synchronous>, transform_indices = @transform_35, window_bounds = array<i64: 32, 32>}, {pipeline_mode = #tpu.pipeline_mode<synchronous>, transform_indices = @transform_36, window_bounds = array<i64: 1, 32>}, {pipeline_mode = #tpu.pipeline_mode<synchronous>, transform_indices = @transform_37, window_bounds = array<i64: 1, 32>}, {pipeline_mode = #tpu.pipeline_mode<synchronous>, transform_indices = @transform_38, window_bounds = array<i64: 1, 32>}, {pipeline_mode = #tpu.pipeline_mode<synchronous>, transform_indices = @transform_39, window_bounds = array<i64: 32, 64>}, {pipeline_mode = #tpu.pipeline_mode<synchronous>, transform_indices = @transform_40, window_bounds = array<i64: 1, 64>}, {pipeline_mode = #tpu.pipeline_mode<synchronous>, transform_indices = @transform_41, window_bounds = array<i64: 64, 32>}, {pipeline_mode = #tpu.pipeline_mode<synchronous>, transform_indices = @transform_42, window_bounds = array<i64: 1, 32>}, {pipeline_mode = #tpu.pipeline_mode<synchronous>, transform_indices = @transform_43, window_bounds = array<i64: 1, 32>}, {pipeline_mode = #tpu.pipeline_mode<synchronous>, transform_indices = @transform_44, window_bounds = array<i64: 1, 32>}, {transform_indices = @transform_45, window_bounds = array<i64: 1, 8, 32>}]} {
    %c0 = arith.constant 0 : index
    %c0_0 = arith.constant 0 : index
    %c0_1 = arith.constant 0 : index
    %0 = vector.load %arg1[%c0, %c0_0, %c0_1] : memref<1x8x32xf32, #tpu.memory_space<vmem>>, vector<1x8x32xf32>
    %1 = vector.shape_cast %0 : vector<1x8x32xf32> to vector<8x32xf32>
    %c0_2 = arith.constant 0 : index
    %c0_3 = arith.constant 0 : index
    %c0_4 = arith.constant 0 : index
    %2 = vector.load %arg2[%c0_2, %c0_3, %c0_4] : memref<1x1x8xf32, #tpu.memory_space<vmem>>, vector<1x1x8xf32>
    %3 = vector.shape_cast %2 : vector<1x1x8xf32> to vector<1x8xf32>
    %cst = arith.constant 5.000000e-01 : f32
    %4 = vector.broadcast %cst : f32 to vector<1x8xf32>
    %5 = arith.cmpf ogt, %3, %4 : vector<1x8xf32>
    %c0_5 = arith.constant 0 : index
    %c0_6 = arith.constant 0 : index
    %6 = vector.load %arg3[%c0_5, %c0_6] : memref<1x32xf32, #tpu.memory_space<vmem>>, vector<1x32xf32>
    %c0_7 = arith.constant 0 : index
    %c0_8 = arith.constant 0 : index
    %7 = vector.load %arg4[%c0_7, %c0_8] : memref<1x32xf32, #tpu.memory_space<vmem>>, vector<1x32xf32>
    %cst_9 = arith.constant dense<0.000000e+00> : vector<8xf32>
    %8 = vector.multi_reduction <add>, %1, %cst_9 [1] : vector<8x32xf32> to vector<8xf32>
    %9 = vector.shape_cast %8 : vector<8xf32> to vector<8x1xf32>
    %cst_10 = arith.constant 3.200000e+01 : f32
    %10 = vector.broadcast %cst_10 : f32 to vector<8x1xf32>
    %11 = arith.divf %9, %10 : vector<8x1xf32>
    %12 = vector.broadcast %11 : vector<8x1xf32> to vector<8x32xf32>
    %13 = arith.subf %1, %12 : vector<8x32xf32>
    %14 = arith.mulf %13, %13 : vector<8x32xf32>
    %cst_11 = arith.constant dense<0.000000e+00> : vector<8xf32>
    %15 = vector.multi_reduction <add>, %14, %cst_11 [1] : vector<8x32xf32> to vector<8xf32>
    %16 = vector.shape_cast %15 : vector<8xf32> to vector<8x1xf32>
    %cst_12 = arith.constant 3.200000e+01 : f32
    %17 = vector.broadcast %cst_12 : f32 to vector<8x1xf32>
    %18 = arith.divf %16, %17 : vector<8x1xf32>
    %19 = vector.broadcast %11 : vector<8x1xf32> to vector<8x32xf32>
    %20 = arith.subf %1, %19 : vector<8x32xf32>
    %cst_13 = arith.constant 9.99999996E-13 : f32
    %21 = vector.broadcast %cst_13 : f32 to vector<8x1xf32>
    %22 = arith.addf %18, %21 : vector<8x1xf32>
    %23 = math.rsqrt %22 : vector<8x1xf32>
    %24 = vector.broadcast %23 : vector<8x1xf32> to vector<8x32xf32>
    %25 = arith.mulf %20, %24 : vector<8x32xf32>
    %26 = vector.broadcast %6 : vector<1x32xf32> to vector<8x32xf32>
    %27 = arith.mulf %25, %26 : vector<8x32xf32>
    %28 = vector.broadcast %7 : vector<1x32xf32> to vector<8x32xf32>
    %29 = arith.addf %27, %28 : vector<8x32xf32>
    %c0_14 = arith.constant 0 : index
    %c0_15 = arith.constant 0 : index
    %30 = vector.load %arg5[%c0_14, %c0_15] : memref<32x64xf32, #tpu.memory_space<vmem>>, vector<32x64xf32>
    %cst_16 = arith.constant dense<0.000000e+00> : vector<8x64xf32>
    %31 = tpu.matmul %29, %30, %cst_16 {dimension_numbers = #tpu.dot_dimension_numbers<[1], [0], [0], [1], [0, 0, 1, 1], [], []>} : vector<8x32xf32>, vector<32x64xf32>, vector<8x64xf32> -> vector<8x64xf32>
    %c0_17 = arith.constant 0 : index
    %c0_18 = arith.constant 0 : index
    %32 = vector.load %arg6[%c0_17, %c0_18] : memref<1x64xf32, #tpu.memory_space<vmem>>, vector<1x64xf32>
    %33 = vector.broadcast %32 : vector<1x64xf32> to vector<8x64xf32>
    %34 = arith.addf %31, %33 : vector<8x64xf32>
    %cst_19 = arith.constant 0.000000e+00 : f32
    %35 = vector.broadcast %cst_19 : f32 to vector<8x64xf32>
    %36 = arith.maximumf %34, %35 : vector<8x64xf32>
    %c0_20 = arith.constant 0 : index
    %c0_21 = arith.constant 0 : index
    %37 = vector.load %arg7[%c0_20, %c0_21] : memref<64x32xf32, #tpu.memory_space<vmem>>, vector<64x32xf32>
    %cst_22 = arith.constant dense<0.000000e+00> : vector<8x32xf32>
    %38 = tpu.matmul %36, %37, %cst_22 {dimension_numbers = #tpu.dot_dimension_numbers<[1], [0], [0], [1], [0, 0, 1, 1], [], []>} : vector<8x64xf32>, vector<64x32xf32>, vector<8x32xf32> -> vector<8x32xf32>
    %c0_23 = arith.constant 0 : index
    %c0_24 = arith.constant 0 : index
    %39 = vector.load %arg8[%c0_23, %c0_24] : memref<1x32xf32, #tpu.memory_space<vmem>>, vector<1x32xf32>
    %40 = vector.broadcast %39 : vector<1x32xf32> to vector<8x32xf32>
    %41 = arith.addf %38, %40 : vector<8x32xf32>
    %cst_25 = arith.constant 5.000000e-01 : f32
    %42 = vector.broadcast %cst_25 : f32 to vector<8x32xf32>
    %43 = arith.mulf %42, %41 : vector<8x32xf32>
    %44 = arith.addf %1, %43 : vector<8x32xf32>
    %cst_26 = arith.constant dense<0.000000e+00> : vector<8xf32>
    %45 = vector.multi_reduction <add>, %44, %cst_26 [1] : vector<8x32xf32> to vector<8xf32>
    %46 = vector.shape_cast %45 : vector<8xf32> to vector<8x1xf32>
    %cst_27 = arith.constant 3.200000e+01 : f32
    %47 = vector.broadcast %cst_27 : f32 to vector<8x1xf32>
    %48 = arith.divf %46, %47 : vector<8x1xf32>
    %49 = vector.broadcast %48 : vector<8x1xf32> to vector<8x32xf32>
    %50 = arith.subf %44, %49 : vector<8x32xf32>
    %51 = arith.mulf %50, %50 : vector<8x32xf32>
    %cst_28 = arith.constant dense<0.000000e+00> : vector<8xf32>
    %52 = vector.multi_reduction <add>, %51, %cst_28 [1] : vector<8x32xf32> to vector<8xf32>
    %53 = vector.shape_cast %52 : vector<8xf32> to vector<8x1xf32>
    %cst_29 = arith.constant 3.200000e+01 : f32
    %54 = vector.broadcast %cst_29 : f32 to vector<8x1xf32>
    %55 = arith.divf %53, %54 : vector<8x1xf32>
    %56 = vector.broadcast %48 : vector<8x1xf32> to vector<8x32xf32>
    %57 = arith.subf %44, %56 : vector<8x32xf32>
    %cst_30 = arith.constant 9.99999996E-13 : f32
    %58 = vector.broadcast %cst_30 : f32 to vector<8x1xf32>
    %59 = arith.addf %55, %58 : vector<8x1xf32>
    %60 = math.rsqrt %59 : vector<8x1xf32>
    %61 = vector.broadcast %60 : vector<8x1xf32> to vector<8x32xf32>
    %62 = arith.mulf %57, %61 : vector<8x32xf32>
    %c0_31 = arith.constant 0 : index
    %c0_32 = arith.constant 0 : index
    %63 = vector.load %arg9[%c0_31, %c0_32] : memref<1x32xf32, #tpu.memory_space<vmem>>, vector<1x32xf32>
    %64 = vector.broadcast %63 : vector<1x32xf32> to vector<8x32xf32>
    %65 = arith.mulf %62, %64 : vector<8x32xf32>
    %c0_33 = arith.constant 0 : index
    %c0_34 = arith.constant 0 : index
    %66 = vector.load %arg10[%c0_33, %c0_34] : memref<1x32xf32, #tpu.memory_space<vmem>>, vector<1x32xf32>
    %67 = vector.broadcast %66 : vector<1x32xf32> to vector<8x32xf32>
    %68 = arith.addf %65, %67 : vector<8x32xf32>
    %cst_35 = arith.constant 0.000000e+00 : f32
    %69 = vector.broadcast %cst_35 : f32 to vector<8x32xf32>
    %c0_36 = arith.constant 0 : index
    %c0_37 = arith.constant 0 : index
    %c0_38 = arith.constant 0 : index
    %70 = vector.load %arg11[%c0_36, %c0_37, %c0_38] : memref<4x32x8xf32, #tpu.memory_space<vmem>>, vector<1x32x8xf32>
    %71 = vector.shape_cast %70 : vector<1x32x8xf32> to vector<32x8xf32>
    %cst_39 = arith.constant dense<0.000000e+00> : vector<8x8xf32>
    %72 = tpu.matmul %68, %71, %cst_39 {dimension_numbers = #tpu.dot_dimension_numbers<[1], [0], [0], [1], [0, 0, 1, 1], [], []>} : vector<8x32xf32>, vector<32x8xf32>, vector<8x8xf32> -> vector<8x8xf32>
    %c0_40 = arith.constant 0 : index
    %c0_41 = arith.constant 0 : index
    %c0_42 = arith.constant 0 : index
    %73 = vector.load %arg12[%c0_40, %c0_41, %c0_42] : memref<4x1x8xf32, #tpu.memory_space<vmem>>, vector<1x1x8xf32>
    %74 = vector.shape_cast %73 : vector<1x1x8xf32> to vector<1x8xf32>
    %75 = vector.broadcast %74 : vector<1x8xf32> to vector<8x8xf32>
    %76 = arith.addf %72, %75 : vector<8x8xf32>
    %c0_43 = arith.constant 0 : index
    %c0_44 = arith.constant 0 : index
    %c0_45 = arith.constant 0 : index
    %77 = vector.load %arg13[%c0_43, %c0_44, %c0_45] : memref<4x32x8xf32, #tpu.memory_space<vmem>>, vector<1x32x8xf32>
    %78 = vector.shape_cast %77 : vector<1x32x8xf32> to vector<32x8xf32>
    %cst_46 = arith.constant dense<0.000000e+00> : vector<8x8xf32>
    %79 = tpu.matmul %68, %78, %cst_46 {dimension_numbers = #tpu.dot_dimension_numbers<[1], [0], [0], [1], [0, 0, 1, 1], [], []>} : vector<8x32xf32>, vector<32x8xf32>, vector<8x8xf32> -> vector<8x8xf32>
    %c0_47 = arith.constant 0 : index
    %c0_48 = arith.constant 0 : index
    %c0_49 = arith.constant 0 : index
    %80 = vector.load %arg14[%c0_47, %c0_48, %c0_49] : memref<4x1x8xf32, #tpu.memory_space<vmem>>, vector<1x1x8xf32>
    %81 = vector.shape_cast %80 : vector<1x1x8xf32> to vector<1x8xf32>
    %82 = vector.broadcast %81 : vector<1x8xf32> to vector<8x8xf32>
    %83 = arith.addf %79, %82 : vector<8x8xf32>
    %c0_50 = arith.constant 0 : index
    %c0_51 = arith.constant 0 : index
    %c0_52 = arith.constant 0 : index
    %84 = vector.load %arg15[%c0_50, %c0_51, %c0_52] : memref<4x32x8xf32, #tpu.memory_space<vmem>>, vector<1x32x8xf32>
    %85 = vector.shape_cast %84 : vector<1x32x8xf32> to vector<32x8xf32>
    %cst_53 = arith.constant dense<0.000000e+00> : vector<8x8xf32>
    %86 = tpu.matmul %68, %85, %cst_53 {dimension_numbers = #tpu.dot_dimension_numbers<[1], [0], [0], [1], [0, 0, 1, 1], [], []>} : vector<8x32xf32>, vector<32x8xf32>, vector<8x8xf32> -> vector<8x8xf32>
    %c0_54 = arith.constant 0 : index
    %c0_55 = arith.constant 0 : index
    %c0_56 = arith.constant 0 : index
    %87 = vector.load %arg16[%c0_54, %c0_55, %c0_56] : memref<4x1x8xf32, #tpu.memory_space<vmem>>, vector<1x1x8xf32>
    %88 = vector.shape_cast %87 : vector<1x1x8xf32> to vector<1x8xf32>
    %89 = vector.broadcast %88 : vector<1x8xf32> to vector<8x8xf32>
    %90 = arith.addf %86, %89 : vector<8x8xf32>
    %cst_57 = arith.constant dense<0.000000e+00> : vector<8x8xf32>
    %91 = tpu.matmul %76, %83, %cst_57 {dimension_numbers = #tpu.dot_dimension_numbers<[1], [1], [0], [0], [0, 0, 1, 0], [], []>} : vector<8x8xf32>, vector<8x8xf32>, vector<8x8xf32> -> vector<8x8xf32>
    %cst_58 = arith.constant 0.353553385 : f32
    %92 = vector.broadcast %cst_58 : f32 to vector<8x8xf32>
    %93 = arith.mulf %91, %92 : vector<8x8xf32>
    %cst_59 = arith.constant -3.40282347E+38 : f32
    %94 = vector.shape_cast %5 : vector<1x8xi1> to vector<1x8xi1>
    %95 = vector.broadcast %94 : vector<1x8xi1> to vector<8x8xi1>
    %96 = vector.broadcast %cst_59 : f32 to vector<8x8xf32>
    %97 = arith.select %95, %93, %96 : vector<8x8xi1>, vector<8x8xf32>
    %cst_60 = arith.constant dense<0xFF800000> : vector<8xf32>
    %98 = vector.multi_reduction <maximumf>, %97, %cst_60 [1] : vector<8x8xf32> to vector<8xf32>
    %99 = vector.shape_cast %98 : vector<8xf32> to vector<8x1xf32>
    %100 = vector.broadcast %99 : vector<8x1xf32> to vector<8x8xf32>
    %101 = arith.subf %97, %100 : vector<8x8xf32>
    %102 = math.exp %101 : vector<8x8xf32>
    %cst_61 = arith.constant dense<0.000000e+00> : vector<8xf32>
    %103 = vector.multi_reduction <add>, %102, %cst_61 [1] : vector<8x8xf32> to vector<8xf32>
    %104 = vector.shape_cast %103 : vector<8xf32> to vector<8x1xf32>
    %105 = tpu.reciprocal %104 : vector<8x1xf32> -> vector<8x1xf32>
    %106 = vector.broadcast %105 : vector<8x1xf32> to vector<8x8xf32>
    %107 = arith.mulf %102, %106 : vector<8x8xf32>
    %cst_62 = arith.constant 0.000000e+00 : f32
    %108 = vector.shape_cast %5 : vector<1x8xi1> to vector<1x8xi1>
    %109 = vector.broadcast %108 : vector<1x8xi1> to vector<8x8xi1>
    %110 = vector.broadcast %cst_62 : f32 to vector<8x8xf32>
    %111 = arith.select %109, %107, %110 : vector<8x8xi1>, vector<8x8xf32>
    %cst_63 = arith.constant dense<0.000000e+00> : vector<8x8xf32>
    %112 = tpu.matmul %111, %90, %cst_63 {dimension_numbers = #tpu.dot_dimension_numbers<[1], [0], [0], [1], [0, 0, 1, 1], [], []>} : vector<8x8xf32>, vector<8x8xf32>, vector<8x8xf32> -> vector<8x8xf32>
    %c0_64 = arith.constant 0 : index
    %c0_65 = arith.constant 0 : index
    %c0_66 = arith.constant 0 : index
    %113 = vector.load %arg17[%c0_64, %c0_65, %c0_66] : memref<4x8x32xf32, #tpu.memory_space<vmem>>, vector<1x8x32xf32>
    %114 = vector.shape_cast %113 : vector<1x8x32xf32> to vector<8x32xf32>
    %cst_67 = arith.constant dense<0.000000e+00> : vector<8x32xf32>
    %115 = tpu.matmul %112, %114, %cst_67 {dimension_numbers = #tpu.dot_dimension_numbers<[1], [0], [0], [1], [0, 0, 1, 1], [], []>} : vector<8x8xf32>, vector<8x32xf32>, vector<8x32xf32> -> vector<8x32xf32>
    %116 = arith.addf %69, %115 : vector<8x32xf32>
    %c1 = arith.constant 1 : index
    %c0_68 = arith.constant 0 : index
    %c0_69 = arith.constant 0 : index
    %117 = vector.load %arg11[%c1, %c0_68, %c0_69] : memref<4x32x8xf32, #tpu.memory_space<vmem>>, vector<1x32x8xf32>
    %118 = vector.shape_cast %117 : vector<1x32x8xf32> to vector<32x8xf32>
    %cst_70 = arith.constant dense<0.000000e+00> : vector<8x8xf32>
    %119 = tpu.matmul %68, %118, %cst_70 {dimension_numbers = #tpu.dot_dimension_numbers<[1], [0], [0], [1], [0, 0, 1, 1], [], []>} : vector<8x32xf32>, vector<32x8xf32>, vector<8x8xf32> -> vector<8x8xf32>
    %c1_71 = arith.constant 1 : index
    %c0_72 = arith.constant 0 : index
    %c0_73 = arith.constant 0 : index
    %120 = vector.load %arg12[%c1_71, %c0_72, %c0_73] : memref<4x1x8xf32, #tpu.memory_space<vmem>>, vector<1x1x8xf32>
    %121 = vector.shape_cast %120 : vector<1x1x8xf32> to vector<1x8xf32>
    %122 = vector.broadcast %121 : vector<1x8xf32> to vector<8x8xf32>
    %123 = arith.addf %119, %122 : vector<8x8xf32>
    %c1_74 = arith.constant 1 : index
    %c0_75 = arith.constant 0 : index
    %c0_76 = arith.constant 0 : index
    %124 = vector.load %arg13[%c1_74, %c0_75, %c0_76] : memref<4x32x8xf32, #tpu.memory_space<vmem>>, vector<1x32x8xf32>
    %125 = vector.shape_cast %124 : vector<1x32x8xf32> to vector<32x8xf32>
    %cst_77 = arith.constant dense<0.000000e+00> : vector<8x8xf32>
    %126 = tpu.matmul %68, %125, %cst_77 {dimension_numbers = #tpu.dot_dimension_numbers<[1], [0], [0], [1], [0, 0, 1, 1], [], []>} : vector<8x32xf32>, vector<32x8xf32>, vector<8x8xf32> -> vector<8x8xf32>
    %c1_78 = arith.constant 1 : index
    %c0_79 = arith.constant 0 : index
    %c0_80 = arith.constant 0 : index
    %127 = vector.load %arg14[%c1_78, %c0_79, %c0_80] : memref<4x1x8xf32, #tpu.memory_space<vmem>>, vector<1x1x8xf32>
    %128 = vector.shape_cast %127 : vector<1x1x8xf32> to vector<1x8xf32>
    %129 = vector.broadcast %128 : vector<1x8xf32> to vector<8x8xf32>
    %130 = arith.addf %126, %129 : vector<8x8xf32>
    %c1_81 = arith.constant 1 : index
    %c0_82 = arith.constant 0 : index
    %c0_83 = arith.constant 0 : index
    %131 = vector.load %arg15[%c1_81, %c0_82, %c0_83] : memref<4x32x8xf32, #tpu.memory_space<vmem>>, vector<1x32x8xf32>
    %132 = vector.shape_cast %131 : vector<1x32x8xf32> to vector<32x8xf32>
    %cst_84 = arith.constant dense<0.000000e+00> : vector<8x8xf32>
    %133 = tpu.matmul %68, %132, %cst_84 {dimension_numbers = #tpu.dot_dimension_numbers<[1], [0], [0], [1], [0, 0, 1, 1], [], []>} : vector<8x32xf32>, vector<32x8xf32>, vector<8x8xf32> -> vector<8x8xf32>
    %c1_85 = arith.constant 1 : index
    %c0_86 = arith.constant 0 : index
    %c0_87 = arith.constant 0 : index
    %134 = vector.load %arg16[%c1_85, %c0_86, %c0_87] : memref<4x1x8xf32, #tpu.memory_space<vmem>>, vector<1x1x8xf32>
    %135 = vector.shape_cast %134 : vector<1x1x8xf32> to vector<1x8xf32>
    %136 = vector.broadcast %135 : vector<1x8xf32> to vector<8x8xf32>
    %137 = arith.addf %133, %136 : vector<8x8xf32>
    %cst_88 = arith.constant dense<0.000000e+00> : vector<8x8xf32>
    %138 = tpu.matmul %123, %130, %cst_88 {dimension_numbers = #tpu.dot_dimension_numbers<[1], [1], [0], [0], [0, 0, 1, 0], [], []>} : vector<8x8xf32>, vector<8x8xf32>, vector<8x8xf32> -> vector<8x8xf32>
    %cst_89 = arith.constant 0.353553385 : f32
    %139 = vector.broadcast %cst_89 : f32 to vector<8x8xf32>
    %140 = arith.mulf %138, %139 : vector<8x8xf32>
    %cst_90 = arith.constant -3.40282347E+38 : f32
    %141 = vector.shape_cast %5 : vector<1x8xi1> to vector<1x8xi1>
    %142 = vector.broadcast %141 : vector<1x8xi1> to vector<8x8xi1>
    %143 = vector.broadcast %cst_90 : f32 to vector<8x8xf32>
    %144 = arith.select %142, %140, %143 : vector<8x8xi1>, vector<8x8xf32>
    %cst_91 = arith.constant dense<0xFF800000> : vector<8xf32>
    %145 = vector.multi_reduction <maximumf>, %144, %cst_91 [1] : vector<8x8xf32> to vector<8xf32>
    %146 = vector.shape_cast %145 : vector<8xf32> to vector<8x1xf32>
    %147 = vector.broadcast %146 : vector<8x1xf32> to vector<8x8xf32>
    %148 = arith.subf %144, %147 : vector<8x8xf32>
    %149 = math.exp %148 : vector<8x8xf32>
    %cst_92 = arith.constant dense<0.000000e+00> : vector<8xf32>
    %150 = vector.multi_reduction <add>, %149, %cst_92 [1] : vector<8x8xf32> to vector<8xf32>
    %151 = vector.shape_cast %150 : vector<8xf32> to vector<8x1xf32>
    %152 = tpu.reciprocal %151 : vector<8x1xf32> -> vector<8x1xf32>
    %153 = vector.broadcast %152 : vector<8x1xf32> to vector<8x8xf32>
    %154 = arith.mulf %149, %153 : vector<8x8xf32>
    %cst_93 = arith.constant 0.000000e+00 : f32
    %155 = vector.shape_cast %5 : vector<1x8xi1> to vector<1x8xi1>
    %156 = vector.broadcast %155 : vector<1x8xi1> to vector<8x8xi1>
    %157 = vector.broadcast %cst_93 : f32 to vector<8x8xf32>
    %158 = arith.select %156, %154, %157 : vector<8x8xi1>, vector<8x8xf32>
    %cst_94 = arith.constant dense<0.000000e+00> : vector<8x8xf32>
    %159 = tpu.matmul %158, %137, %cst_94 {dimension_numbers = #tpu.dot_dimension_numbers<[1], [0], [0], [1], [0, 0, 1, 1], [], []>} : vector<8x8xf32>, vector<8x8xf32>, vector<8x8xf32> -> vector<8x8xf32>
    %c1_95 = arith.constant 1 : index
    %c0_96 = arith.constant 0 : index
    %c0_97 = arith.constant 0 : index
    %160 = vector.load %arg17[%c1_95, %c0_96, %c0_97] : memref<4x8x32xf32, #tpu.memory_space<vmem>>, vector<1x8x32xf32>
    %161 = vector.shape_cast %160 : vector<1x8x32xf32> to vector<8x32xf32>
    %cst_98 = arith.constant dense<0.000000e+00> : vector<8x32xf32>
    %162 = tpu.matmul %159, %161, %cst_98 {dimension_numbers = #tpu.dot_dimension_numbers<[1], [0], [0], [1], [0, 0, 1, 1], [], []>} : vector<8x8xf32>, vector<8x32xf32>, vector<8x32xf32> -> vector<8x32xf32>
    %163 = arith.addf %116, %162 : vector<8x32xf32>
    %c2 = arith.constant 2 : index
    %c0_99 = arith.constant 0 : index
    %c0_100 = arith.constant 0 : index
    %164 = vector.load %arg11[%c2, %c0_99, %c0_100] : memref<4x32x8xf32, #tpu.memory_space<vmem>>, vector<1x32x8xf32>
    %165 = vector.shape_cast %164 : vector<1x32x8xf32> to vector<32x8xf32>
    %cst_101 = arith.constant dense<0.000000e+00> : vector<8x8xf32>
    %166 = tpu.matmul %68, %165, %cst_101 {dimension_numbers = #tpu.dot_dimension_numbers<[1], [0], [0], [1], [0, 0, 1, 1], [], []>} : vector<8x32xf32>, vector<32x8xf32>, vector<8x8xf32> -> vector<8x8xf32>
    %c2_102 = arith.constant 2 : index
    %c0_103 = arith.constant 0 : index
    %c0_104 = arith.constant 0 : index
    %167 = vector.load %arg12[%c2_102, %c0_103, %c0_104] : memref<4x1x8xf32, #tpu.memory_space<vmem>>, vector<1x1x8xf32>
    %168 = vector.shape_cast %167 : vector<1x1x8xf32> to vector<1x8xf32>
    %169 = vector.broadcast %168 : vector<1x8xf32> to vector<8x8xf32>
    %170 = arith.addf %166, %169 : vector<8x8xf32>
    %c2_105 = arith.constant 2 : index
    %c0_106 = arith.constant 0 : index
    %c0_107 = arith.constant 0 : index
    %171 = vector.load %arg13[%c2_105, %c0_106, %c0_107] : memref<4x32x8xf32, #tpu.memory_space<vmem>>, vector<1x32x8xf32>
    %172 = vector.shape_cast %171 : vector<1x32x8xf32> to vector<32x8xf32>
    %cst_108 = arith.constant dense<0.000000e+00> : vector<8x8xf32>
    %173 = tpu.matmul %68, %172, %cst_108 {dimension_numbers = #tpu.dot_dimension_numbers<[1], [0], [0], [1], [0, 0, 1, 1], [], []>} : vector<8x32xf32>, vector<32x8xf32>, vector<8x8xf32> -> vector<8x8xf32>
    %c2_109 = arith.constant 2 : index
    %c0_110 = arith.constant 0 : index
    %c0_111 = arith.constant 0 : index
    %174 = vector.load %arg14[%c2_109, %c0_110, %c0_111] : memref<4x1x8xf32, #tpu.memory_space<vmem>>, vector<1x1x8xf32>
    %175 = vector.shape_cast %174 : vector<1x1x8xf32> to vector<1x8xf32>
    %176 = vector.broadcast %175 : vector<1x8xf32> to vector<8x8xf32>
    %177 = arith.addf %173, %176 : vector<8x8xf32>
    %c2_112 = arith.constant 2 : index
    %c0_113 = arith.constant 0 : index
    %c0_114 = arith.constant 0 : index
    %178 = vector.load %arg15[%c2_112, %c0_113, %c0_114] : memref<4x32x8xf32, #tpu.memory_space<vmem>>, vector<1x32x8xf32>
    %179 = vector.shape_cast %178 : vector<1x32x8xf32> to vector<32x8xf32>
    %cst_115 = arith.constant dense<0.000000e+00> : vector<8x8xf32>
    %180 = tpu.matmul %68, %179, %cst_115 {dimension_numbers = #tpu.dot_dimension_numbers<[1], [0], [0], [1], [0, 0, 1, 1], [], []>} : vector<8x32xf32>, vector<32x8xf32>, vector<8x8xf32> -> vector<8x8xf32>
    %c2_116 = arith.constant 2 : index
    %c0_117 = arith.constant 0 : index
    %c0_118 = arith.constant 0 : index
    %181 = vector.load %arg16[%c2_116, %c0_117, %c0_118] : memref<4x1x8xf32, #tpu.memory_space<vmem>>, vector<1x1x8xf32>
    %182 = vector.shape_cast %181 : vector<1x1x8xf32> to vector<1x8xf32>
    %183 = vector.broadcast %182 : vector<1x8xf32> to vector<8x8xf32>
    %184 = arith.addf %180, %183 : vector<8x8xf32>
    %cst_119 = arith.constant dense<0.000000e+00> : vector<8x8xf32>
    %185 = tpu.matmul %170, %177, %cst_119 {dimension_numbers = #tpu.dot_dimension_numbers<[1], [1], [0], [0], [0, 0, 1, 0], [], []>} : vector<8x8xf32>, vector<8x8xf32>, vector<8x8xf32> -> vector<8x8xf32>
    %cst_120 = arith.constant 0.353553385 : f32
    %186 = vector.broadcast %cst_120 : f32 to vector<8x8xf32>
    %187 = arith.mulf %185, %186 : vector<8x8xf32>
    %cst_121 = arith.constant -3.40282347E+38 : f32
    %188 = vector.shape_cast %5 : vector<1x8xi1> to vector<1x8xi1>
    %189 = vector.broadcast %188 : vector<1x8xi1> to vector<8x8xi1>
    %190 = vector.broadcast %cst_121 : f32 to vector<8x8xf32>
    %191 = arith.select %189, %187, %190 : vector<8x8xi1>, vector<8x8xf32>
    %cst_122 = arith.constant dense<0xFF800000> : vector<8xf32>
    %192 = vector.multi_reduction <maximumf>, %191, %cst_122 [1] : vector<8x8xf32> to vector<8xf32>
    %193 = vector.shape_cast %192 : vector<8xf32> to vector<8x1xf32>
    %194 = vector.broadcast %193 : vector<8x1xf32> to vector<8x8xf32>
    %195 = arith.subf %191, %194 : vector<8x8xf32>
    %196 = math.exp %195 : vector<8x8xf32>
    %cst_123 = arith.constant dense<0.000000e+00> : vector<8xf32>
    %197 = vector.multi_reduction <add>, %196, %cst_123 [1] : vector<8x8xf32> to vector<8xf32>
    %198 = vector.shape_cast %197 : vector<8xf32> to vector<8x1xf32>
    %199 = tpu.reciprocal %198 : vector<8x1xf32> -> vector<8x1xf32>
    %200 = vector.broadcast %199 : vector<8x1xf32> to vector<8x8xf32>
    %201 = arith.mulf %196, %200 : vector<8x8xf32>
    %cst_124 = arith.constant 0.000000e+00 : f32
    %202 = vector.shape_cast %5 : vector<1x8xi1> to vector<1x8xi1>
    %203 = vector.broadcast %202 : vector<1x8xi1> to vector<8x8xi1>
    %204 = vector.broadcast %cst_124 : f32 to vector<8x8xf32>
    %205 = arith.select %203, %201, %204 : vector<8x8xi1>, vector<8x8xf32>
    %cst_125 = arith.constant dense<0.000000e+00> : vector<8x8xf32>
    %206 = tpu.matmul %205, %184, %cst_125 {dimension_numbers = #tpu.dot_dimension_numbers<[1], [0], [0], [1], [0, 0, 1, 1], [], []>} : vector<8x8xf32>, vector<8x8xf32>, vector<8x8xf32> -> vector<8x8xf32>
    %c2_126 = arith.constant 2 : index
    %c0_127 = arith.constant 0 : index
    %c0_128 = arith.constant 0 : index
    %207 = vector.load %arg17[%c2_126, %c0_127, %c0_128] : memref<4x8x32xf32, #tpu.memory_space<vmem>>, vector<1x8x32xf32>
    %208 = vector.shape_cast %207 : vector<1x8x32xf32> to vector<8x32xf32>
    %cst_129 = arith.constant dense<0.000000e+00> : vector<8x32xf32>
    %209 = tpu.matmul %206, %208, %cst_129 {dimension_numbers = #tpu.dot_dimension_numbers<[1], [0], [0], [1], [0, 0, 1, 1], [], []>} : vector<8x8xf32>, vector<8x32xf32>, vector<8x32xf32> -> vector<8x32xf32>
    %210 = arith.addf %163, %209 : vector<8x32xf32>
    %c3 = arith.constant 3 : index
    %c0_130 = arith.constant 0 : index
    %c0_131 = arith.constant 0 : index
    %211 = vector.load %arg11[%c3, %c0_130, %c0_131] : memref<4x32x8xf32, #tpu.memory_space<vmem>>, vector<1x32x8xf32>
    %212 = vector.shape_cast %211 : vector<1x32x8xf32> to vector<32x8xf32>
    %cst_132 = arith.constant dense<0.000000e+00> : vector<8x8xf32>
    %213 = tpu.matmul %68, %212, %cst_132 {dimension_numbers = #tpu.dot_dimension_numbers<[1], [0], [0], [1], [0, 0, 1, 1], [], []>} : vector<8x32xf32>, vector<32x8xf32>, vector<8x8xf32> -> vector<8x8xf32>
    %c3_133 = arith.constant 3 : index
    %c0_134 = arith.constant 0 : index
    %c0_135 = arith.constant 0 : index
    %214 = vector.load %arg12[%c3_133, %c0_134, %c0_135] : memref<4x1x8xf32, #tpu.memory_space<vmem>>, vector<1x1x8xf32>
    %215 = vector.shape_cast %214 : vector<1x1x8xf32> to vector<1x8xf32>
    %216 = vector.broadcast %215 : vector<1x8xf32> to vector<8x8xf32>
    %217 = arith.addf %213, %216 : vector<8x8xf32>
    %c3_136 = arith.constant 3 : index
    %c0_137 = arith.constant 0 : index
    %c0_138 = arith.constant 0 : index
    %218 = vector.load %arg13[%c3_136, %c0_137, %c0_138] : memref<4x32x8xf32, #tpu.memory_space<vmem>>, vector<1x32x8xf32>
    %219 = vector.shape_cast %218 : vector<1x32x8xf32> to vector<32x8xf32>
    %cst_139 = arith.constant dense<0.000000e+00> : vector<8x8xf32>
    %220 = tpu.matmul %68, %219, %cst_139 {dimension_numbers = #tpu.dot_dimension_numbers<[1], [0], [0], [1], [0, 0, 1, 1], [], []>} : vector<8x32xf32>, vector<32x8xf32>, vector<8x8xf32> -> vector<8x8xf32>
    %c3_140 = arith.constant 3 : index
    %c0_141 = arith.constant 0 : index
    %c0_142 = arith.constant 0 : index
    %221 = vector.load %arg14[%c3_140, %c0_141, %c0_142] : memref<4x1x8xf32, #tpu.memory_space<vmem>>, vector<1x1x8xf32>
    %222 = vector.shape_cast %221 : vector<1x1x8xf32> to vector<1x8xf32>
    %223 = vector.broadcast %222 : vector<1x8xf32> to vector<8x8xf32>
    %224 = arith.addf %220, %223 : vector<8x8xf32>
    %c3_143 = arith.constant 3 : index
    %c0_144 = arith.constant 0 : index
    %c0_145 = arith.constant 0 : index
    %225 = vector.load %arg15[%c3_143, %c0_144, %c0_145] : memref<4x32x8xf32, #tpu.memory_space<vmem>>, vector<1x32x8xf32>
    %226 = vector.shape_cast %225 : vector<1x32x8xf32> to vector<32x8xf32>
    %cst_146 = arith.constant dense<0.000000e+00> : vector<8x8xf32>
    %227 = tpu.matmul %68, %226, %cst_146 {dimension_numbers = #tpu.dot_dimension_numbers<[1], [0], [0], [1], [0, 0, 1, 1], [], []>} : vector<8x32xf32>, vector<32x8xf32>, vector<8x8xf32> -> vector<8x8xf32>
    %c3_147 = arith.constant 3 : index
    %c0_148 = arith.constant 0 : index
    %c0_149 = arith.constant 0 : index
    %228 = vector.load %arg16[%c3_147, %c0_148, %c0_149] : memref<4x1x8xf32, #tpu.memory_space<vmem>>, vector<1x1x8xf32>
    %229 = vector.shape_cast %228 : vector<1x1x8xf32> to vector<1x8xf32>
    %230 = vector.broadcast %229 : vector<1x8xf32> to vector<8x8xf32>
    %231 = arith.addf %227, %230 : vector<8x8xf32>
    %cst_150 = arith.constant dense<0.000000e+00> : vector<8x8xf32>
    %232 = tpu.matmul %217, %224, %cst_150 {dimension_numbers = #tpu.dot_dimension_numbers<[1], [1], [0], [0], [0, 0, 1, 0], [], []>} : vector<8x8xf32>, vector<8x8xf32>, vector<8x8xf32> -> vector<8x8xf32>
    %cst_151 = arith.constant 0.353553385 : f32
    %233 = vector.broadcast %cst_151 : f32 to vector<8x8xf32>
    %234 = arith.mulf %232, %233 : vector<8x8xf32>
    %cst_152 = arith.constant -3.40282347E+38 : f32
    %235 = vector.shape_cast %5 : vector<1x8xi1> to vector<1x8xi1>
    %236 = vector.broadcast %235 : vector<1x8xi1> to vector<8x8xi1>
    %237 = vector.broadcast %cst_152 : f32 to vector<8x8xf32>
    %238 = arith.select %236, %234, %237 : vector<8x8xi1>, vector<8x8xf32>
    %cst_153 = arith.constant dense<0xFF800000> : vector<8xf32>
    %239 = vector.multi_reduction <maximumf>, %238, %cst_153 [1] : vector<8x8xf32> to vector<8xf32>
    %240 = vector.shape_cast %239 : vector<8xf32> to vector<8x1xf32>
    %241 = vector.broadcast %240 : vector<8x1xf32> to vector<8x8xf32>
    %242 = arith.subf %238, %241 : vector<8x8xf32>
    %243 = math.exp %242 : vector<8x8xf32>
    %cst_154 = arith.constant dense<0.000000e+00> : vector<8xf32>
    %244 = vector.multi_reduction <add>, %243, %cst_154 [1] : vector<8x8xf32> to vector<8xf32>
    %245 = vector.shape_cast %244 : vector<8xf32> to vector<8x1xf32>
    %246 = tpu.reciprocal %245 : vector<8x1xf32> -> vector<8x1xf32>
    %247 = vector.broadcast %246 : vector<8x1xf32> to vector<8x8xf32>
    %248 = arith.mulf %243, %247 : vector<8x8xf32>
    %cst_155 = arith.constant 0.000000e+00 : f32
    %249 = vector.shape_cast %5 : vector<1x8xi1> to vector<1x8xi1>
    %250 = vector.broadcast %249 : vector<1x8xi1> to vector<8x8xi1>
    %251 = vector.broadcast %cst_155 : f32 to vector<8x8xf32>
    %252 = arith.select %250, %248, %251 : vector<8x8xi1>, vector<8x8xf32>
    %cst_156 = arith.constant dense<0.000000e+00> : vector<8x8xf32>
    %253 = tpu.matmul %252, %231, %cst_156 {dimension_numbers = #tpu.dot_dimension_numbers<[1], [0], [0], [1], [0, 0, 1, 1], [], []>} : vector<8x8xf32>, vector<8x8xf32>, vector<8x8xf32> -> vector<8x8xf32>
    %c3_157 = arith.constant 3 : index
    %c0_158 = arith.constant 0 : index
    %c0_159 = arith.constant 0 : index
    %254 = vector.load %arg17[%c3_157, %c0_158, %c0_159] : memref<4x8x32xf32, #tpu.memory_space<vmem>>, vector<1x8x32xf32>
    %255 = vector.shape_cast %254 : vector<1x8x32xf32> to vector<8x32xf32>
    %cst_160 = arith.constant dense<0.000000e+00> : vector<8x32xf32>
    %256 = tpu.matmul %253, %255, %cst_160 {dimension_numbers = #tpu.dot_dimension_numbers<[1], [0], [0], [1], [0, 0, 1, 1], [], []>} : vector<8x8xf32>, vector<8x32xf32>, vector<8x32xf32> -> vector<8x32xf32>
    %257 = arith.addf %210, %256 : vector<8x32xf32>
    %c0_161 = arith.constant 0 : index
    %c0_162 = arith.constant 0 : index
    %258 = vector.load %arg18[%c0_161, %c0_162] : memref<1x32xf32, #tpu.memory_space<vmem>>, vector<1x32xf32>
    %259 = vector.broadcast %258 : vector<1x32xf32> to vector<8x32xf32>
    %260 = arith.addf %257, %259 : vector<8x32xf32>
    %c0_163 = arith.constant 0 : index
    %c0_164 = arith.constant 0 : index
    %261 = vector.load %arg19[%c0_163, %c0_164] : memref<1x32xf32, #tpu.memory_space<vmem>>, vector<1x32xf32>
    %262 = vector.broadcast %261 : vector<1x32xf32> to vector<8x32xf32>
    %263 = arith.mulf %62, %262 : vector<8x32xf32>
    %c0_165 = arith.constant 0 : index
    %c0_166 = arith.constant 0 : index
    %264 = vector.load %arg20[%c0_165, %c0_166] : memref<1x32xf32, #tpu.memory_space<vmem>>, vector<1x32xf32>
    %265 = vector.broadcast %264 : vector<1x32xf32> to vector<8x32xf32>
    %266 = arith.addf %263, %265 : vector<8x32xf32>
    %c0_167 = arith.constant 0 : index
    %c0_168 = arith.constant 0 : index
    %267 = vector.load %arg21[%c0_167, %c0_168] : memref<32x32xf32, #tpu.memory_space<vmem>>, vector<32x32xf32>
    %cst_169 = arith.constant dense<0.000000e+00> : vector<8x32xf32>
    %268 = tpu.matmul %266, %267, %cst_169 {dimension_numbers = #tpu.dot_dimension_numbers<[1], [0], [0], [1], [0, 0, 1, 1], [], []>} : vector<8x32xf32>, vector<32x32xf32>, vector<8x32xf32> -> vector<8x32xf32>
    %c0_170 = arith.constant 0 : index
    %c0_171 = arith.constant 0 : index
    %269 = vector.load %arg22[%c0_170, %c0_171] : memref<1x32xf32, #tpu.memory_space<vmem>>, vector<1x32xf32>
    %270 = vector.broadcast %269 : vector<1x32xf32> to vector<8x32xf32>
    %271 = arith.addf %268, %270 : vector<8x32xf32>
    %cst_172 = arith.constant 5.000000e-01 : f32
    %272 = vector.broadcast %cst_172 : f32 to vector<8x32xf32>
    %273 = arith.mulf %272, %271 : vector<8x32xf32>
    %cst_173 = arith.constant 0.707106769 : f32
    %274 = vector.broadcast %cst_173 : f32 to vector<8x32xf32>
    %275 = arith.mulf %271, %274 : vector<8x32xf32>
    %cst_174 = arith.constant 0.000000e+00 : f32
    %276 = vector.broadcast %cst_174 : f32 to vector<8x32xf32>
    %277 = arith.cmpf oge, %275, %276 : vector<8x32xf32>
    %cst_175 = arith.constant 1.000000e+00 : f32
    %cst_176 = arith.constant -1.000000e+00 : f32
    %278 = vector.broadcast %cst_175 : f32 to vector<8x32xf32>
    %279 = vector.broadcast %cst_176 : f32 to vector<8x32xf32>
    %280 = arith.select %277, %278, %279 : vector<8x32xi1>, vector<8x32xf32>
    %281 = math.absf %275 : vector<8x32xf32>
    %cst_177 = arith.constant 0.327591091 : f32
    %282 = vector.broadcast %cst_177 : f32 to vector<8x32xf32>
    %283 = arith.mulf %282, %281 : vector<8x32xf32>
    %cst_178 = arith.constant 1.000000e+00 : f32
    %284 = vector.broadcast %cst_178 : f32 to vector<8x32xf32>
    %285 = arith.addf %284, %283 : vector<8x32xf32>
    %cst_179 = arith.constant 1.000000e+00 : f32
    %286 = vector.broadcast %cst_179 : f32 to vector<8x32xf32>
    %287 = arith.divf %286, %285 : vector<8x32xf32>
    %cst_180 = arith.constant 1.06140542 : f32
    %288 = vector.broadcast %cst_180 : f32 to vector<8x32xf32>
    %289 = arith.mulf %288, %287 : vector<8x32xf32>
    %cst_181 = arith.constant -1.45315206 : f32
    %290 = vector.broadcast %cst_181 : f32 to vector<8x32xf32>
    %291 = arith.addf %289, %290 : vector<8x32xf32>
    %292 = arith.mulf %291, %287 : vector<8x32xf32>
    %cst_182 = arith.constant 1.42141378 : f32
    %293 = vector.broadcast %cst_182 : f32 to vector<8x32xf32>
    %294 = arith.addf %292, %293 : vector<8x32xf32>
    %295 = arith.mulf %294, %287 : vector<8x32xf32>
    %cst_183 = arith.constant -0.284496725 : f32
    %296 = vector.broadcast %cst_183 : f32 to vector<8x32xf32>
    %297 = arith.addf %295, %296 : vector<8x32xf32>
    %298 = arith.mulf %297, %287 : vector<8x32xf32>
    %cst_184 = arith.constant 0.254829586 : f32
    %299 = vector.broadcast %cst_184 : f32 to vector<8x32xf32>
    %300 = arith.addf %298, %299 : vector<8x32xf32>
    %301 = arith.mulf %300, %287 : vector<8x32xf32>
    %cst_185 = arith.constant 0.000000e+00 : f32
    %302 = vector.broadcast %cst_185 : f32 to vector<8x32xf32>
    %303 = arith.subf %302, %281 : vector<8x32xf32>
    %304 = arith.mulf %303, %281 : vector<8x32xf32>
    %305 = math.exp %304 : vector<8x32xf32>
    %306 = arith.mulf %301, %305 : vector<8x32xf32>
    %cst_186 = arith.constant 1.000000e+00 : f32
    %307 = vector.broadcast %cst_186 : f32 to vector<8x32xf32>
    %308 = arith.subf %307, %306 : vector<8x32xf32>
    %309 = arith.mulf %280, %308 : vector<8x32xf32>
    %cst_187 = arith.constant 1.000000e+00 : f32
    %310 = vector.broadcast %cst_187 : f32 to vector<8x32xf32>
    %311 = arith.addf %310, %309 : vector<8x32xf32>
    %312 = arith.mulf %273, %311 : vector<8x32xf32>
    %c0_188 = arith.constant 0 : index
    %c0_189 = arith.constant 0 : index
    %313 = vector.load %arg23[%c0_188, %c0_189] : memref<32x32xf32, #tpu.memory_space<vmem>>, vector<32x32xf32>
    %cst_190 = arith.constant dense<0.000000e+00> : vector<8x32xf32>
    %314 = tpu.matmul %266, %313, %cst_190 {dimension_numbers = #tpu.dot_dimension_numbers<[1], [0], [0], [1], [0, 0, 1, 1], [], []>} : vector<8x32xf32>, vector<32x32xf32>, vector<8x32xf32> -> vector<8x32xf32>
    %c0_191 = arith.constant 0 : index
    %c0_192 = arith.constant 0 : index
    %315 = vector.load %arg24[%c0_191, %c0_192] : memref<1x32xf32, #tpu.memory_space<vmem>>, vector<1x32xf32>
    %316 = vector.broadcast %315 : vector<1x32xf32> to vector<8x32xf32>
    %317 = arith.addf %314, %316 : vector<8x32xf32>
    %cst_193 = arith.constant 5.000000e-01 : f32
    %318 = vector.broadcast %cst_193 : f32 to vector<8x32xf32>
    %319 = arith.mulf %318, %317 : vector<8x32xf32>
    %cst_194 = arith.constant 0.707106769 : f32
    %320 = vector.broadcast %cst_194 : f32 to vector<8x32xf32>
    %321 = arith.mulf %317, %320 : vector<8x32xf32>
    %cst_195 = arith.constant 0.000000e+00 : f32
    %322 = vector.broadcast %cst_195 : f32 to vector<8x32xf32>
    %323 = arith.cmpf oge, %321, %322 : vector<8x32xf32>
    %cst_196 = arith.constant 1.000000e+00 : f32
    %cst_197 = arith.constant -1.000000e+00 : f32
    %324 = vector.broadcast %cst_196 : f32 to vector<8x32xf32>
    %325 = vector.broadcast %cst_197 : f32 to vector<8x32xf32>
    %326 = arith.select %323, %324, %325 : vector<8x32xi1>, vector<8x32xf32>
    %327 = math.absf %321 : vector<8x32xf32>
    %cst_198 = arith.constant 0.327591091 : f32
    %328 = vector.broadcast %cst_198 : f32 to vector<8x32xf32>
    %329 = arith.mulf %328, %327 : vector<8x32xf32>
    %cst_199 = arith.constant 1.000000e+00 : f32
    %330 = vector.broadcast %cst_199 : f32 to vector<8x32xf32>
    %331 = arith.addf %330, %329 : vector<8x32xf32>
    %cst_200 = arith.constant 1.000000e+00 : f32
    %332 = vector.broadcast %cst_200 : f32 to vector<8x32xf32>
    %333 = arith.divf %332, %331 : vector<8x32xf32>
    %cst_201 = arith.constant 1.06140542 : f32
    %334 = vector.broadcast %cst_201 : f32 to vector<8x32xf32>
    %335 = arith.mulf %334, %333 : vector<8x32xf32>
    %cst_202 = arith.constant -1.45315206 : f32
    %336 = vector.broadcast %cst_202 : f32 to vector<8x32xf32>
    %337 = arith.addf %335, %336 : vector<8x32xf32>
    %338 = arith.mulf %337, %333 : vector<8x32xf32>
    %cst_203 = arith.constant 1.42141378 : f32
    %339 = vector.broadcast %cst_203 : f32 to vector<8x32xf32>
    %340 = arith.addf %338, %339 : vector<8x32xf32>
    %341 = arith.mulf %340, %333 : vector<8x32xf32>
    %cst_204 = arith.constant -0.284496725 : f32
    %342 = vector.broadcast %cst_204 : f32 to vector<8x32xf32>
    %343 = arith.addf %341, %342 : vector<8x32xf32>
    %344 = arith.mulf %343, %333 : vector<8x32xf32>
    %cst_205 = arith.constant 0.254829586 : f32
    %345 = vector.broadcast %cst_205 : f32 to vector<8x32xf32>
    %346 = arith.addf %344, %345 : vector<8x32xf32>
    %347 = arith.mulf %346, %333 : vector<8x32xf32>
    %cst_206 = arith.constant 0.000000e+00 : f32
    %348 = vector.broadcast %cst_206 : f32 to vector<8x32xf32>
    %349 = arith.subf %348, %327 : vector<8x32xf32>
    %350 = arith.mulf %349, %327 : vector<8x32xf32>
    %351 = math.exp %350 : vector<8x32xf32>
    %352 = arith.mulf %347, %351 : vector<8x32xf32>
    %cst_207 = arith.constant 1.000000e+00 : f32
    %353 = vector.broadcast %cst_207 : f32 to vector<8x32xf32>
    %354 = arith.subf %353, %352 : vector<8x32xf32>
    %355 = arith.mulf %326, %354 : vector<8x32xf32>
    %cst_208 = arith.constant 1.000000e+00 : f32
    %356 = vector.broadcast %cst_208 : f32 to vector<8x32xf32>
    %357 = arith.addf %356, %355 : vector<8x32xf32>
    %358 = arith.mulf %319, %357 : vector<8x32xf32>
    %c0_209 = arith.constant 0 : index
    %c0_210 = arith.constant 0 : index
    %359 = vector.load %arg25[%c0_209, %c0_210] : memref<1x32xf32, #tpu.memory_space<vmem>>, vector<1x32xf32>
    %c0_211 = arith.constant 0 : index
    %c0_212 = arith.constant 0 : index
    %360 = vector.load %arg26[%c0_211, %c0_212] : memref<1x32xf32, #tpu.memory_space<vmem>>, vector<1x32xf32>
    %cst_213 = arith.constant dense<0.000000e+00> : vector<8xf32>
    %361 = vector.multi_reduction <add>, %358, %cst_213 [1] : vector<8x32xf32> to vector<8xf32>
    %362 = vector.shape_cast %361 : vector<8xf32> to vector<8x1xf32>
    %cst_214 = arith.constant 3.200000e+01 : f32
    %363 = vector.broadcast %cst_214 : f32 to vector<8x1xf32>
    %364 = arith.divf %362, %363 : vector<8x1xf32>
    %365 = vector.broadcast %364 : vector<8x1xf32> to vector<8x32xf32>
    %366 = arith.subf %358, %365 : vector<8x32xf32>
    %367 = arith.mulf %366, %366 : vector<8x32xf32>
    %cst_215 = arith.constant dense<0.000000e+00> : vector<8xf32>
    %368 = vector.multi_reduction <add>, %367, %cst_215 [1] : vector<8x32xf32> to vector<8xf32>
    %369 = vector.shape_cast %368 : vector<8xf32> to vector<8x1xf32>
    %cst_216 = arith.constant 3.200000e+01 : f32
    %370 = vector.broadcast %cst_216 : f32 to vector<8x1xf32>
    %371 = arith.divf %369, %370 : vector<8x1xf32>
    %372 = vector.broadcast %364 : vector<8x1xf32> to vector<8x32xf32>
    %373 = arith.subf %358, %372 : vector<8x32xf32>
    %cst_217 = arith.constant 9.99999996E-13 : f32
    %374 = vector.broadcast %cst_217 : f32 to vector<8x1xf32>
    %375 = arith.addf %371, %374 : vector<8x1xf32>
    %376 = math.rsqrt %375 : vector<8x1xf32>
    %377 = vector.broadcast %376 : vector<8x1xf32> to vector<8x32xf32>
    %378 = arith.mulf %373, %377 : vector<8x32xf32>
    %379 = vector.broadcast %359 : vector<1x32xf32> to vector<8x32xf32>
    %380 = arith.mulf %378, %379 : vector<8x32xf32>
    %381 = vector.broadcast %360 : vector<1x32xf32> to vector<8x32xf32>
    %382 = arith.addf %380, %381 : vector<8x32xf32>
    %c0_218 = arith.constant 0 : index
    %c0_219 = arith.constant 0 : index
    %383 = vector.load %arg27[%c0_218, %c0_219] : memref<3x32xf32, #tpu.memory_space<vmem>>, vector<3x32xf32>
    %c0_220 = arith.constant 0 : index
    %c0_221 = arith.constant 0 : index
    %384 = vector.load %arg28[%c0_220, %c0_221] : memref<1x32xf32, #tpu.memory_space<vmem>>, vector<1x32xf32>
    %cst_222 = arith.constant 0.000000e+00 : f32
    %385 = vector.broadcast %cst_222 : f32 to vector<1x32xf32>
    %386 = tpu.concatenate %385, %382, %385 in 0 : vector<1x32xf32>, vector<8x32xf32>, vector<1x32xf32> -> vector<10x32xf32>
    %cst_223 = arith.constant 0.000000e+00 : f32
    %387 = vector.broadcast %cst_223 : f32 to vector<8x32xf32>
    %388 = vector.extract_strided_slice %386 {offsets = [0, 0], sizes = [8, 32], strides = [1, 1]} : vector<10x32xf32> to vector<8x32xf32>
    %389 = vector.extract_strided_slice %383 {offsets = [0, 0], sizes = [1, 32], strides = [1, 1]} : vector<3x32xf32> to vector<1x32xf32>
    %390 = vector.broadcast %389 : vector<1x32xf32> to vector<8x32xf32>
    %391 = arith.mulf %388, %390 : vector<8x32xf32>
    %392 = arith.addf %387, %391 : vector<8x32xf32>
    %393 = vector.extract_strided_slice %386 {offsets = [1, 0], sizes = [8, 32], strides = [1, 1]} : vector<10x32xf32> to vector<8x32xf32>
    %394 = vector.extract_strided_slice %383 {offsets = [1, 0], sizes = [1, 32], strides = [1, 1]} : vector<3x32xf32> to vector<1x32xf32>
    %395 = vector.broadcast %394 : vector<1x32xf32> to vector<8x32xf32>
    %396 = arith.mulf %393, %395 : vector<8x32xf32>
    %397 = arith.addf %392, %396 : vector<8x32xf32>
    %398 = vector.extract_strided_slice %386 {offsets = [2, 0], sizes = [8, 32], strides = [1, 1]} : vector<10x32xf32> to vector<8x32xf32>
    %399 = vector.extract_strided_slice %383 {offsets = [2, 0], sizes = [1, 32], strides = [1, 1]} : vector<3x32xf32> to vector<1x32xf32>
    %400 = vector.broadcast %399 : vector<1x32xf32> to vector<8x32xf32>
    %401 = arith.mulf %398, %400 : vector<8x32xf32>
    %402 = arith.addf %397, %401 : vector<8x32xf32>
    %403 = vector.broadcast %384 : vector<1x32xf32> to vector<8x32xf32>
    %404 = arith.addf %402, %403 : vector<8x32xf32>
    %405 = arith.mulf %312, %404 : vector<8x32xf32>
    %c0_224 = arith.constant 0 : index
    %c0_225 = arith.constant 0 : index
    %406 = vector.load %arg29[%c0_224, %c0_225] : memref<32x32xf32, #tpu.memory_space<vmem>>, vector<32x32xf32>
    %cst_226 = arith.constant dense<0.000000e+00> : vector<8x32xf32>
    %407 = tpu.matmul %405, %406, %cst_226 {dimension_numbers = #tpu.dot_dimension_numbers<[1], [0], [0], [1], [0, 0, 1, 1], [], []>} : vector<8x32xf32>, vector<32x32xf32>, vector<8x32xf32> -> vector<8x32xf32>
    %c0_227 = arith.constant 0 : index
    %c0_228 = arith.constant 0 : index
    %408 = vector.load %arg30[%c0_227, %c0_228] : memref<1x32xf32, #tpu.memory_space<vmem>>, vector<1x32xf32>
    %409 = vector.broadcast %408 : vector<1x32xf32> to vector<8x32xf32>
    %410 = arith.addf %407, %409 : vector<8x32xf32>
    %c0_229 = arith.constant 0 : index
    %c0_230 = arith.constant 0 : index
    %411 = vector.load %arg31[%c0_229, %c0_230] : memref<3x32xf32, #tpu.memory_space<vmem>>, vector<3x32xf32>
    %c0_231 = arith.constant 0 : index
    %c0_232 = arith.constant 0 : index
    %412 = vector.load %arg32[%c0_231, %c0_232] : memref<1x32xf32, #tpu.memory_space<vmem>>, vector<1x32xf32>
    %cst_233 = arith.constant 0.000000e+00 : f32
    %413 = vector.broadcast %cst_233 : f32 to vector<1x32xf32>
    %414 = tpu.concatenate %413, %260, %413 in 0 : vector<1x32xf32>, vector<8x32xf32>, vector<1x32xf32> -> vector<10x32xf32>
    %cst_234 = arith.constant 0.000000e+00 : f32
    %415 = vector.broadcast %cst_234 : f32 to vector<8x32xf32>
    %416 = vector.extract_strided_slice %414 {offsets = [0, 0], sizes = [8, 32], strides = [1, 1]} : vector<10x32xf32> to vector<8x32xf32>
    %417 = vector.extract_strided_slice %411 {offsets = [0, 0], sizes = [1, 32], strides = [1, 1]} : vector<3x32xf32> to vector<1x32xf32>
    %418 = vector.broadcast %417 : vector<1x32xf32> to vector<8x32xf32>
    %419 = arith.mulf %416, %418 : vector<8x32xf32>
    %420 = arith.addf %415, %419 : vector<8x32xf32>
    %421 = vector.extract_strided_slice %414 {offsets = [1, 0], sizes = [8, 32], strides = [1, 1]} : vector<10x32xf32> to vector<8x32xf32>
    %422 = vector.extract_strided_slice %411 {offsets = [1, 0], sizes = [1, 32], strides = [1, 1]} : vector<3x32xf32> to vector<1x32xf32>
    %423 = vector.broadcast %422 : vector<1x32xf32> to vector<8x32xf32>
    %424 = arith.mulf %421, %423 : vector<8x32xf32>
    %425 = arith.addf %420, %424 : vector<8x32xf32>
    %426 = vector.extract_strided_slice %414 {offsets = [2, 0], sizes = [8, 32], strides = [1, 1]} : vector<10x32xf32> to vector<8x32xf32>
    %427 = vector.extract_strided_slice %411 {offsets = [2, 0], sizes = [1, 32], strides = [1, 1]} : vector<3x32xf32> to vector<1x32xf32>
    %428 = vector.broadcast %427 : vector<1x32xf32> to vector<8x32xf32>
    %429 = arith.mulf %426, %428 : vector<8x32xf32>
    %430 = arith.addf %425, %429 : vector<8x32xf32>
    %431 = vector.broadcast %412 : vector<1x32xf32> to vector<8x32xf32>
    %432 = arith.addf %430, %431 : vector<8x32xf32>
    %c0_235 = arith.constant 0 : index
    %c0_236 = arith.constant 0 : index
    %433 = vector.load %arg33[%c0_235, %c0_236] : memref<3x32xf32, #tpu.memory_space<vmem>>, vector<3x32xf32>
    %c0_237 = arith.constant 0 : index
    %c0_238 = arith.constant 0 : index
    %434 = vector.load %arg34[%c0_237, %c0_238] : memref<1x32xf32, #tpu.memory_space<vmem>>, vector<1x32xf32>
    %cst_239 = arith.constant 0.000000e+00 : f32
    %435 = vector.broadcast %cst_239 : f32 to vector<1x32xf32>
    %436 = tpu.concatenate %435, %410, %435 in 0 : vector<1x32xf32>, vector<8x32xf32>, vector<1x32xf32> -> vector<10x32xf32>
    %cst_240 = arith.constant 0.000000e+00 : f32
    %437 = vector.broadcast %cst_240 : f32 to vector<8x32xf32>
    %438 = vector.extract_strided_slice %436 {offsets = [0, 0], sizes = [8, 32], strides = [1, 1]} : vector<10x32xf32> to vector<8x32xf32>
    %439 = vector.extract_strided_slice %433 {offsets = [0, 0], sizes = [1, 32], strides = [1, 1]} : vector<3x32xf32> to vector<1x32xf32>
    %440 = vector.broadcast %439 : vector<1x32xf32> to vector<8x32xf32>
    %441 = arith.mulf %438, %440 : vector<8x32xf32>
    %442 = arith.addf %437, %441 : vector<8x32xf32>
    %443 = vector.extract_strided_slice %436 {offsets = [1, 0], sizes = [8, 32], strides = [1, 1]} : vector<10x32xf32> to vector<8x32xf32>
    %444 = vector.extract_strided_slice %433 {offsets = [1, 0], sizes = [1, 32], strides = [1, 1]} : vector<3x32xf32> to vector<1x32xf32>
    %445 = vector.broadcast %444 : vector<1x32xf32> to vector<8x32xf32>
    %446 = arith.mulf %443, %445 : vector<8x32xf32>
    %447 = arith.addf %442, %446 : vector<8x32xf32>
    %448 = vector.extract_strided_slice %436 {offsets = [2, 0], sizes = [8, 32], strides = [1, 1]} : vector<10x32xf32> to vector<8x32xf32>
    %449 = vector.extract_strided_slice %433 {offsets = [2, 0], sizes = [1, 32], strides = [1, 1]} : vector<3x32xf32> to vector<1x32xf32>
    %450 = vector.broadcast %449 : vector<1x32xf32> to vector<8x32xf32>
    %451 = arith.mulf %448, %450 : vector<8x32xf32>
    %452 = arith.addf %447, %451 : vector<8x32xf32>
    %453 = vector.broadcast %434 : vector<1x32xf32> to vector<8x32xf32>
    %454 = arith.addf %452, %453 : vector<8x32xf32>
    %455 = arith.addf %260, %432 : vector<8x32xf32>
    %c0_241 = arith.constant 0 : index
    %c0_242 = arith.constant 0 : index
    %456 = vector.load %arg35[%c0_241, %c0_242] : memref<32x32xf32, #tpu.memory_space<vmem>>, vector<32x32xf32>
    %cst_243 = arith.constant dense<0.000000e+00> : vector<8x32xf32>
    %457 = tpu.matmul %455, %456, %cst_243 {dimension_numbers = #tpu.dot_dimension_numbers<[1], [0], [0], [1], [0, 0, 1, 1], [], []>} : vector<8x32xf32>, vector<32x32xf32>, vector<8x32xf32> -> vector<8x32xf32>
    %458 = arith.addf %410, %454 : vector<8x32xf32>
    %c0_244 = arith.constant 0 : index
    %c0_245 = arith.constant 0 : index
    %459 = vector.load %arg36[%c0_244, %c0_245] : memref<32x32xf32, #tpu.memory_space<vmem>>, vector<32x32xf32>
    %cst_246 = arith.constant dense<0.000000e+00> : vector<8x32xf32>
    %460 = tpu.matmul %458, %459, %cst_246 {dimension_numbers = #tpu.dot_dimension_numbers<[1], [0], [0], [1], [0, 0, 1, 1], [], []>} : vector<8x32xf32>, vector<32x32xf32>, vector<8x32xf32> -> vector<8x32xf32>
    %461 = arith.addf %457, %460 : vector<8x32xf32>
    %c0_247 = arith.constant 0 : index
    %c0_248 = arith.constant 0 : index
    %462 = vector.load %arg37[%c0_247, %c0_248] : memref<1x32xf32, #tpu.memory_space<vmem>>, vector<1x32xf32>
    %463 = vector.broadcast %462 : vector<1x32xf32> to vector<8x32xf32>
    %464 = arith.addf %461, %463 : vector<8x32xf32>
    %465 = arith.addf %44, %464 : vector<8x32xf32>
    %c0_249 = arith.constant 0 : index
    %c0_250 = arith.constant 0 : index
    %466 = vector.load %arg38[%c0_249, %c0_250] : memref<1x32xf32, #tpu.memory_space<vmem>>, vector<1x32xf32>
    %c0_251 = arith.constant 0 : index
    %c0_252 = arith.constant 0 : index
    %467 = vector.load %arg39[%c0_251, %c0_252] : memref<1x32xf32, #tpu.memory_space<vmem>>, vector<1x32xf32>
    %cst_253 = arith.constant dense<0.000000e+00> : vector<8xf32>
    %468 = vector.multi_reduction <add>, %465, %cst_253 [1] : vector<8x32xf32> to vector<8xf32>
    %469 = vector.shape_cast %468 : vector<8xf32> to vector<8x1xf32>
    %cst_254 = arith.constant 3.200000e+01 : f32
    %470 = vector.broadcast %cst_254 : f32 to vector<8x1xf32>
    %471 = arith.divf %469, %470 : vector<8x1xf32>
    %472 = vector.broadcast %471 : vector<8x1xf32> to vector<8x32xf32>
    %473 = arith.subf %465, %472 : vector<8x32xf32>
    %474 = arith.mulf %473, %473 : vector<8x32xf32>
    %cst_255 = arith.constant dense<0.000000e+00> : vector<8xf32>
    %475 = vector.multi_reduction <add>, %474, %cst_255 [1] : vector<8x32xf32> to vector<8xf32>
    %476 = vector.shape_cast %475 : vector<8xf32> to vector<8x1xf32>
    %cst_256 = arith.constant 3.200000e+01 : f32
    %477 = vector.broadcast %cst_256 : f32 to vector<8x1xf32>
    %478 = arith.divf %476, %477 : vector<8x1xf32>
    %479 = vector.broadcast %471 : vector<8x1xf32> to vector<8x32xf32>
    %480 = arith.subf %465, %479 : vector<8x32xf32>
    %cst_257 = arith.constant 9.99999996E-13 : f32
    %481 = vector.broadcast %cst_257 : f32 to vector<8x1xf32>
    %482 = arith.addf %478, %481 : vector<8x1xf32>
    %483 = math.rsqrt %482 : vector<8x1xf32>
    %484 = vector.broadcast %483 : vector<8x1xf32> to vector<8x32xf32>
    %485 = arith.mulf %480, %484 : vector<8x32xf32>
    %486 = vector.broadcast %466 : vector<1x32xf32> to vector<8x32xf32>
    %487 = arith.mulf %485, %486 : vector<8x32xf32>
    %488 = vector.broadcast %467 : vector<1x32xf32> to vector<8x32xf32>
    %489 = arith.addf %487, %488 : vector<8x32xf32>
    %c0_258 = arith.constant 0 : index
    %c0_259 = arith.constant 0 : index
    %490 = vector.load %arg40[%c0_258, %c0_259] : memref<32x64xf32, #tpu.memory_space<vmem>>, vector<32x64xf32>
    %cst_260 = arith.constant dense<0.000000e+00> : vector<8x64xf32>
    %491 = tpu.matmul %489, %490, %cst_260 {dimension_numbers = #tpu.dot_dimension_numbers<[1], [0], [0], [1], [0, 0, 1, 1], [], []>} : vector<8x32xf32>, vector<32x64xf32>, vector<8x64xf32> -> vector<8x64xf32>
    %c0_261 = arith.constant 0 : index
    %c0_262 = arith.constant 0 : index
    %492 = vector.load %arg41[%c0_261, %c0_262] : memref<1x64xf32, #tpu.memory_space<vmem>>, vector<1x64xf32>
    %493 = vector.broadcast %492 : vector<1x64xf32> to vector<8x64xf32>
    %494 = arith.addf %491, %493 : vector<8x64xf32>
    %cst_263 = arith.constant 0.000000e+00 : f32
    %495 = vector.broadcast %cst_263 : f32 to vector<8x64xf32>
    %496 = arith.maximumf %494, %495 : vector<8x64xf32>
    %c0_264 = arith.constant 0 : index
    %c0_265 = arith.constant 0 : index
    %497 = vector.load %arg42[%c0_264, %c0_265] : memref<64x32xf32, #tpu.memory_space<vmem>>, vector<64x32xf32>
    %cst_266 = arith.constant dense<0.000000e+00> : vector<8x32xf32>
    %498 = tpu.matmul %496, %497, %cst_266 {dimension_numbers = #tpu.dot_dimension_numbers<[1], [0], [0], [1], [0, 0, 1, 1], [], []>} : vector<8x64xf32>, vector<64x32xf32>, vector<8x32xf32> -> vector<8x32xf32>
    %c0_267 = arith.constant 0 : index
    %c0_268 = arith.constant 0 : index
    %499 = vector.load %arg43[%c0_267, %c0_268] : memref<1x32xf32, #tpu.memory_space<vmem>>, vector<1x32xf32>
    %500 = vector.broadcast %499 : vector<1x32xf32> to vector<8x32xf32>
    %501 = arith.addf %498, %500 : vector<8x32xf32>
    %cst_269 = arith.constant 5.000000e-01 : f32
    %502 = vector.broadcast %cst_269 : f32 to vector<8x32xf32>
    %503 = arith.mulf %502, %501 : vector<8x32xf32>
    %504 = arith.addf %465, %503 : vector<8x32xf32>
    %c0_270 = arith.constant 0 : index
    %c0_271 = arith.constant 0 : index
    %505 = vector.load %arg44[%c0_270, %c0_271] : memref<1x32xf32, #tpu.memory_space<vmem>>, vector<1x32xf32>
    %c0_272 = arith.constant 0 : index
    %c0_273 = arith.constant 0 : index
    %506 = vector.load %arg45[%c0_272, %c0_273] : memref<1x32xf32, #tpu.memory_space<vmem>>, vector<1x32xf32>
    %cst_274 = arith.constant dense<0.000000e+00> : vector<8xf32>
    %507 = vector.multi_reduction <add>, %504, %cst_274 [1] : vector<8x32xf32> to vector<8xf32>
    %508 = vector.shape_cast %507 : vector<8xf32> to vector<8x1xf32>
    %cst_275 = arith.constant 3.200000e+01 : f32
    %509 = vector.broadcast %cst_275 : f32 to vector<8x1xf32>
    %510 = arith.divf %508, %509 : vector<8x1xf32>
    %511 = vector.broadcast %510 : vector<8x1xf32> to vector<8x32xf32>
    %512 = arith.subf %504, %511 : vector<8x32xf32>
    %513 = arith.mulf %512, %512 : vector<8x32xf32>
    %cst_276 = arith.constant dense<0.000000e+00> : vector<8xf32>
    %514 = vector.multi_reduction <add>, %513, %cst_276 [1] : vector<8x32xf32> to vector<8xf32>
    %515 = vector.shape_cast %514 : vector<8xf32> to vector<8x1xf32>
    %cst_277 = arith.constant 3.200000e+01 : f32
    %516 = vector.broadcast %cst_277 : f32 to vector<8x1xf32>
    %517 = arith.divf %515, %516 : vector<8x1xf32>
    %518 = vector.broadcast %510 : vector<8x1xf32> to vector<8x32xf32>
    %519 = arith.subf %504, %518 : vector<8x32xf32>
    %cst_278 = arith.constant 9.99999996E-13 : f32
    %520 = vector.broadcast %cst_278 : f32 to vector<8x1xf32>
    %521 = arith.addf %517, %520 : vector<8x1xf32>
    %522 = math.rsqrt %521 : vector<8x1xf32>
    %523 = vector.broadcast %522 : vector<8x1xf32> to vector<8x32xf32>
    %524 = arith.mulf %519, %523 : vector<8x32xf32>
    %525 = vector.broadcast %505 : vector<1x32xf32> to vector<8x32xf32>
    %526 = arith.mulf %524, %525 : vector<8x32xf32>
    %527 = vector.broadcast %506 : vector<1x32xf32> to vector<8x32xf32>
    %528 = arith.addf %526, %527 : vector<8x32xf32>
    %c0_279 = arith.constant 0 : index
    %c0_280 = arith.constant 0 : index
    %c0_281 = arith.constant 0 : index
    %529 = vector.load %arg46[%c0_279, %c0_280, %c0_281] : memref<1x8x32xf32, #tpu.memory_space<vmem>>, vector<1x8x32xf32>
    %530 = vector.shape_cast %529 : vector<1x8x32xf32> to vector<8x32xf32>
    %531 = vector.shape_cast %528 : vector<8x32xf32> to vector<1x8x32xf32>
    tpu.vector_store %arg46[%c0_279, %c0_280, %c0_281], %531 {strides = array<i32>} : memref<1x8x32xf32, #tpu.memory_space<vmem>>, vector<1x8x32xf32>,
    return
  }
  func.func @transform_0(%arg0: i32) -> (i32, i32, i32) {
    %c0_i32 = arith.constant 0 : i32
    %c0_i32_0 = arith.constant 0 : i32
    %c0_i32_1 = arith.constant 0 : i32
    return %arg0, %c0_i32, %c0_i32_0 : i32, i32, i32
  }
  func.func @transform_1(%arg0: i32) -> (i32, i32, i32) {
    %c0_i32 = arith.constant 0 : i32
    %c0_i32_0 = arith.constant 0 : i32
    %c0_i32_1 = arith.constant 0 : i32
    return %arg0, %c0_i32, %c0_i32_0 : i32, i32, i32
  }
  func.func @transform_2(%arg0: i32) -> (i32, i32) {
    %c0_i32 = arith.constant 0 : i32
    %c0_i32_0 = arith.constant 0 : i32
    %c0_i32_1 = arith.constant 0 : i32
    return %c0_i32, %c0_i32_0 : i32, i32
  }
  func.func @transform_3(%arg0: i32) -> (i32, i32) {
    %c0_i32 = arith.constant 0 : i32
    %c0_i32_0 = arith.constant 0 : i32
    %c0_i32_1 = arith.constant 0 : i32
    return %c0_i32, %c0_i32_0 : i32, i32
  }
  func.func @transform_4(%arg0: i32) -> (i32, i32) {
    %c0_i32 = arith.constant 0 : i32
    %c0_i32_0 = arith.constant 0 : i32
    %c0_i32_1 = arith.constant 0 : i32
    return %c0_i32, %c0_i32_0 : i32, i32
  }
  func.func @transform_5(%arg0: i32) -> (i32, i32) {
    %c0_i32 = arith.constant 0 : i32
    %c0_i32_0 = arith.constant 0 : i32
    %c0_i32_1 = arith.constant 0 : i32
    return %c0_i32, %c0_i32_0 : i32, i32
  }
  func.func @transform_6(%arg0: i32) -> (i32, i32) {
    %c0_i32 = arith.constant 0 : i32
    %c0_i32_0 = arith.constant 0 : i32
    %c0_i32_1 = arith.constant 0 : i32
    return %c0_i32, %c0_i32_0 : i32, i32
  }
  func.func @transform_7(%arg0: i32) -> (i32, i32) {
    %c0_i32 = arith.constant 0 : i32
    %c0_i32_0 = arith.constant 0 : i32
    %c0_i32_1 = arith.constant 0 : i32
    return %c0_i32, %c0_i32_0 : i32, i32
  }
  func.func @transform_8(%arg0: i32) -> (i32, i32) {
    %c0_i32 = arith.constant 0 : i32
    %c0_i32_0 = arith.constant 0 : i32
    %c0_i32_1 = arith.constant 0 : i32
    return %c0_i32, %c0_i32_0 : i32, i32
  }
  func.func @transform_9(%arg0: i32) -> (i32, i32) {
    %c0_i32 = arith.constant 0 : i32
    %c0_i32_0 = arith.constant 0 : i32
    %c0_i32_1 = arith.constant 0 : i32
    return %c0_i32, %c0_i32_0 : i32, i32
  }
  func.func @transform_10(%arg0: i32) -> (i32, i32, i32) {
    %c0_i32 = arith.constant 0 : i32
    %c0_i32_0 = arith.constant 0 : i32
    %c0_i32_1 = arith.constant 0 : i32
    %c0_i32_2 = arith.constant 0 : i32
    return %c0_i32, %c0_i32_0, %c0_i32_1 : i32, i32, i32
  }
  func.func @transform_11(%arg0: i32) -> (i32, i32, i32) {
    %c0_i32 = arith.constant 0 : i32
    %c0_i32_0 = arith.constant 0 : i32
    %c0_i32_1 = arith.constant 0 : i32
    %c0_i32_2 = arith.constant 0 : i32
    return %c0_i32, %c0_i32_0, %c0_i32_1 : i32, i32, i32
  }
  func.func @transform_12(%arg0: i32) -> (i32, i32, i32) {
    %c0_i32 = arith.constant 0 : i32
    %c0_i32_0 = arith.constant 0 : i32
    %c0_i32_1 = arith.constant 0 : i32
    %c0_i32_2 = arith.constant 0 : i32
    return %c0_i32, %c0_i32_0, %c0_i32_1 : i32, i32, i32
  }
  func.func @transform_13(%arg0: i32) -> (i32, i32, i32) {
    %c0_i32 = arith.constant 0 : i32
    %c0_i32_0 = arith.constant 0 : i32
    %c0_i32_1 = arith.constant 0 : i32
    %c0_i32_2 = arith.constant 0 : i32
    return %c0_i32, %c0_i32_0, %c0_i32_1 : i32, i32, i32
  }
  func.func @transform_14(%arg0: i32) -> (i32, i32, i32) {
    %c0_i32 = arith.constant 0 : i32
    %c0_i32_0 = arith.constant 0 : i32
    %c0_i32_1 = arith.constant 0 : i32
    %c0_i32_2 = arith.constant 0 : i32
    return %c0_i32, %c0_i32_0, %c0_i32_1 : i32, i32, i32
  }
  func.func @transform_15(%arg0: i32) -> (i32, i32, i32) {
    %c0_i32 = arith.constant 0 : i32
    %c0_i32_0 = arith.constant 0 : i32
    %c0_i32_1 = arith.constant 0 : i32
    %c0_i32_2 = arith.constant 0 : i32
    return %c0_i32, %c0_i32_0, %c0_i32_1 : i32, i32, i32
  }
  func.func @transform_16(%arg0: i32) -> (i32, i32, i32) {
    %c0_i32 = arith.constant 0 : i32
    %c0_i32_0 = arith.constant 0 : i32
    %c0_i32_1 = arith.constant 0 : i32
    %c0_i32_2 = arith.constant 0 : i32
    return %c0_i32, %c0_i32_0, %c0_i32_1 : i32, i32, i32
  }
  func.func @transform_17(%arg0: i32) -> (i32, i32) {
    %c0_i32 = arith.constant 0 : i32
    %c0_i32_0 = arith.constant 0 : i32
    %c0_i32_1 = arith.constant 0 : i32
    return %c0_i32, %c0_i32_0 : i32, i32
  }
  func.func @transform_18(%arg0: i32) -> (i32, i32) {
    %c0_i32 = arith.constant 0 : i32
    %c0_i32_0 = arith.constant 0 : i32
    %c0_i32_1 = arith.constant 0 : i32
    return %c0_i32, %c0_i32_0 : i32, i32
  }
  func.func @transform_19(%arg0: i32) -> (i32, i32) {
    %c0_i32 = arith.constant 0 : i32
    %c0_i32_0 = arith.constant 0 : i32
    %c0_i32_1 = arith.constant 0 : i32
    return %c0_i32, %c0_i32_0 : i32, i32
  }
  func.func @transform_20(%arg0: i32) -> (i32, i32) {
    %c0_i32 = arith.constant 0 : i32
    %c0_i32_0 = arith.constant 0 : i32
    %c0_i32_1 = arith.constant 0 : i32
    return %c0_i32, %c0_i32_0 : i32, i32
  }
  func.func @transform_21(%arg0: i32) -> (i32, i32) {
    %c0_i32 = arith.constant 0 : i32
    %c0_i32_0 = arith.constant 0 : i32
    %c0_i32_1 = arith.constant 0 : i32
    return %c0_i32, %c0_i32_0 : i32, i32
  }
  func.func @transform_22(%arg0: i32) -> (i32, i32) {
    %c0_i32 = arith.constant 0 : i32
    %c0_i32_0 = arith.constant 0 : i32
    %c0_i32_1 = arith.constant 0 : i32
    return %c0_i32, %c0_i32_0 : i32, i32
  }
  func.func @transform_23(%arg0: i32) -> (i32, i32) {
    %c0_i32 = arith.constant 0 : i32
    %c0_i32_0 = arith.constant 0 : i32
    %c0_i32_1 = arith.constant 0 : i32
    return %c0_i32, %c0_i32_0 : i32, i32
  }
  func.func @transform_24(%arg0: i32) -> (i32, i32) {
    %c0_i32 = arith.constant 0 : i32
    %c0_i32_0 = arith.constant 0 : i32
    %c0_i32_1 = arith.constant 0 : i32
    return %c0_i32, %c0_i32_0 : i32, i32
  }
  func.func @transform_25(%arg0: i32) -> (i32, i32) {
    %c0_i32 = arith.constant 0 : i32
    %c0_i32_0 = arith.constant 0 : i32
    %c0_i32_1 = arith.constant 0 : i32
    return %c0_i32, %c0_i32_0 : i32, i32
  }
  func.func @transform_26(%arg0: i32) -> (i32, i32) {
    %c0_i32 = arith.constant 0 : i32
    %c0_i32_0 = arith.constant 0 : i32
    %c0_i32_1 = arith.constant 0 : i32
    return %c0_i32, %c0_i32_0 : i32, i32
  }
  func.func @transform_27(%arg0: i32) -> (i32, i32) {
    %c0_i32 = arith.constant 0 : i32
    %c0_i32_0 = arith.constant 0 : i32
    %c0_i32_1 = arith.constant 0 : i32
    return %c0_i32, %c0_i32_0 : i32, i32
  }
  func.func @transform_28(%arg0: i32) -> (i32, i32) {
    %c0_i32 = arith.constant 0 : i32
    %c0_i32_0 = arith.constant 0 : i32
    %c0_i32_1 = arith.constant 0 : i32
    return %c0_i32, %c0_i32_0 : i32, i32
  }
  func.func @transform_29(%arg0: i32) -> (i32, i32) {
    %c0_i32 = arith.constant 0 : i32
    %c0_i32_0 = arith.constant 0 : i32
    %c0_i32_1 = arith.constant 0 : i32
    return %c0_i32, %c0_i32_0 : i32, i32
  }
  func.func @transform_30(%arg0: i32) -> (i32, i32) {
    %c0_i32 = arith.constant 0 : i32
    %c0_i32_0 = arith.constant 0 : i32
    %c0_i32_1 = arith.constant 0 : i32
    return %c0_i32, %c0_i32_0 : i32, i32
  }
  func.func @transform_31(%arg0: i32) -> (i32, i32) {
    %c0_i32 = arith.constant 0 : i32
    %c0_i32_0 = arith.constant 0 : i32
    %c0_i32_1 = arith.constant 0 : i32
    return %c0_i32, %c0_i32_0 : i32, i32
  }
  func.func @transform_32(%arg0: i32) -> (i32, i32) {
    %c0_i32 = arith.constant 0 : i32
    %c0_i32_0 = arith.constant 0 : i32
    %c0_i32_1 = arith.constant 0 : i32
    return %c0_i32, %c0_i32_0 : i32, i32
  }
  func.func @transform_33(%arg0: i32) -> (i32, i32) {
    %c0_i32 = arith.constant 0 : i32
    %c0_i32_0 = arith.constant 0 : i32
    %c0_i32_1 = arith.constant 0 : i32
    return %c0_i32, %c0_i32_0 : i32, i32
  }
  func.func @transform_34(%arg0: i32) -> (i32, i32) {
    %c0_i32 = arith.constant 0 : i32
    %c0_i32_0 = arith.constant 0 : i32
    %c0_i32_1 = arith.constant 0 : i32
    return %c0_i32, %c0_i32_0 : i32, i32
  }
  func.func @transform_35(%arg0: i32) -> (i32, i32) {
    %c0_i32 = arith.constant 0 : i32
    %c0_i32_0 = arith.constant 0 : i32
    %c0_i32_1 = arith.constant 0 : i32
    return %c0_i32, %c0_i32_0 : i32, i32
  }
  func.func @transform_36(%arg0: i32) -> (i32, i32) {
    %c0_i32 = arith.constant 0 : i32
    %c0_i32_0 = arith.constant 0 : i32
    %c0_i32_1 = arith.constant 0 : i32
    return %c0_i32, %c0_i32_0 : i32, i32
  }
  func.func @transform_37(%arg0: i32) -> (i32, i32) {
    %c0_i32 = arith.constant 0 : i32
    %c0_i32_0 = arith.constant 0 : i32
    %c0_i32_1 = arith.constant 0 : i32
    return %c0_i32, %c0_i32_0 : i32, i32
  }
  func.func @transform_38(%arg0: i32) -> (i32, i32) {
    %c0_i32 = arith.constant 0 : i32
    %c0_i32_0 = arith.constant 0 : i32
    %c0_i32_1 = arith.constant 0 : i32
    return %c0_i32, %c0_i32_0 : i32, i32
  }
  func.func @transform_39(%arg0: i32) -> (i32, i32) {
    %c0_i32 = arith.constant 0 : i32
    %c0_i32_0 = arith.constant 0 : i32
    %c0_i32_1 = arith.constant 0 : i32
    return %c0_i32, %c0_i32_0 : i32, i32
  }
  func.func @transform_40(%arg0: i32) -> (i32, i32) {
    %c0_i32 = arith.constant 0 : i32
    %c0_i32_0 = arith.constant 0 : i32
    %c0_i32_1 = arith.constant 0 : i32
    return %c0_i32, %c0_i32_0 : i32, i32
  }
  func.func @transform_41(%arg0: i32) -> (i32, i32) {
    %c0_i32 = arith.constant 0 : i32
    %c0_i32_0 = arith.constant 0 : i32
    %c0_i32_1 = arith.constant 0 : i32
    return %c0_i32, %c0_i32_0 : i32, i32
  }
  func.func @transform_42(%arg0: i32) -> (i32, i32) {
    %c0_i32 = arith.constant 0 : i32
    %c0_i32_0 = arith.constant 0 : i32
    %c0_i32_1 = arith.constant 0 : i32
    return %c0_i32, %c0_i32_0 : i32, i32
  }
  func.func @transform_43(%arg0: i32) -> (i32, i32) {
    %c0_i32 = arith.constant 0 : i32
    %c0_i32_0 = arith.constant 0 : i32
    %c0_i32_1 = arith.constant 0 : i32
    return %c0_i32, %c0_i32_0 : i32, i32
  }
  func.func @transform_44(%arg0: i32) -> (i32, i32) {
    %c0_i32 = arith.constant 0 : i32
    %c0_i32_0 = arith.constant 0 : i32
    %c0_i32_1 = arith.constant 0 : i32
    return %c0_i32, %c0_i32_0 : i32, i32
  }
  func.func @transform_45(%arg0: i32) -> (i32, i32, i32) {
    %c0_i32 = arith.constant 0 : i32
    %c0_i32_0 = arith.constant 0 : i32
    %c0_i32_1 = arith.constant 0 : i32
    return %arg0, %c0_i32, %c0_i32_0 : i32, i32, i32
  }
}

</mosaic_0001>

<bundles_post_ra>
// kernel: tpu_custom_call.1
= control target key start
LH: loop header
LB: loop body
LE: loop exit
PB: predicated region body
PF: predicated region fallthrough
CT: control target
= control target key end

     0   :  { %s5592_s6 = smov 1   ;;  %s5593_s10 = smov 2   ;;  %s6494_s0 = inlined_call_operand.smem [shape: u32[46], index: -1, kind: input, shape index: {}] }
   0x1   :  { %s5654_s5 = sld [smem:[%s6494_s0]]   ;;  %s5594_s14 = smov 3  }
   0x2   :  { %s5659_s9 = sld [smem:[%s6494_s0 + %s5592_s6]]   ;;  %s5595_s18 = smov 4  }
   0x3   :  { %s5664_s13 = sld [smem:[%s6494_s0 + %s5593_s10]]   ;;  %s5596_s22 = smov 5  }
   0x4   :  { %s5669_s17 = sld [smem:[%s6494_s0 + %s5594_s14]]   ;;  %s5597_s26 = smov 6  }
   0x5   :  { %s5674_s21 = sld [smem:[%s6494_s0 + %s5595_s18]]   ;;  %s5598_s30 = smov 7  }
   0x6   :  { %s5679_s25 = sld [smem:[%s6494_s0 + %s5596_s22]]   ;;  %s5599_s4 = smov 8  }
   0x7   :  { %6519 = sst [smem:[#allocation15_spill]] %s5654_s5  ;;  %s5600_s10 = smov 9  }
   0x8   :  { %6520 = sst [smem:[#allocation16_spill]] %s5659_s9  ;;  %s5601_s15 = smov 10  }
   0x9   :  { %6521 = sst [smem:[#allocation17_spill]] %s5664_s13  ;;  %s5602_s20 = smov 11  }
   0xa   :  { %s5684_s29 = sld [smem:[%s6494_s0 + %s5597_s26]]   ;;  %s5603_s26 = smov 12  }
   0xb   :  { %s5689_s3 = sld [smem:[%s6494_s0 + %s5598_s30]]   ;;  %s5604_s1 = smov 13  }
   0xc   :  { %s5694_s8 = sld [smem:[%s6494_s0 + %s5599_s4]]   ;;  %s5605_s7 = smov 14  }
   0xd   :  { %s5699_s14 = sld [smem:[%s6494_s0 + %s5600_s10]]   ;;  %s5607_s22 = smov 16  }
   0xe   :  { %s5704_s19 = sld [smem:[%s6494_s0 + %s5601_s15]]   ;;  %s5606_s15 = smov 15  }
   0xf   :  { %s5709_s24 = sld [smem:[%s6494_s0 + %s5602_s20]]   ;;  %s5608_s28 = smov 17  }
  0x10   :  { %s5714_s30 = sld [smem:[%s6494_s0 + %s5603_s26]]  }
  0x11   :  { %6522 = sst [smem:[#allocation18_spill]] %s5689_s3 }
  0x12   :  { %6523 = sst [smem:[#allocation19_spill]] %s5694_s8 }
  0x13   :  { %s5719_s6 = sld [smem:[%s6494_s0 + %s5604_s1]]  }
  0x14   :  { %s5724_s12 = sld [smem:[%s6494_s0 + %s5605_s7]]   ;;  %s5609_s7 = smov 18  }
  0x15   :  { %6524 = sst [smem:[#allocation20_spill]] %s5709_s24 }
  0x16   :  { %s5729_s20 = sld [smem:[%s6494_s0 + %s5606_s15]]   ;;  %s5610_s15 = smov 19  }
  0x17   :  { %s5734_s27 = sld [smem:[%s6494_s0 + %s5607_s22]]   ;;  %s5611_s22 = smov 20  }
  0x18   :  { %s5739_s4 = sld [smem:[%s6494_s0 + %s5608_s28]]   ;;  %s5612_s28 = smov 21  }
  0x19   :  { %6525 = sst [smem:[#allocation21_spill]] %s5719_s6 }
  0x1a   :  { %6526 = sst [smem:[#allocation22_spill]] %s5724_s12 }
  0x1b   :  { %s5744_s9 = sld [smem:[%s6494_s0 + %s5609_s7]]   ;;  %s5613_s7 = smov 22  }
  0x1c   :  { %s5749_s24 = sld [smem:[%s6494_s0 + %s5610_s15]]   ;;  %s5614_s15 = smov 23  }
  0x1d   :  { %6527 = sst [smem:[#allocation23_spill]] %s5734_s27 }
  0x1e   :  { %6528 = sst [smem:[#allocation24_spill]] %s5739_s4 }
  0x1f   :  { %s5754_s27 = sld [smem:[%s6494_s0 + %s5611_s22]]   ;;  %s5615_s22 = smov 24  }
  0x20   :  { %s5759_s4 = sld [smem:[%s6494_s0 + %s5612_s28]]   ;;  %s5616_s28 = smov 25  }
  0x21   :  { %6529 = sst [smem:[#allocation25_spill]] %s5744_s9 }
  0x22   :  { %6530 = sst [smem:[#allocation26_spill]] %s5749_s24 }
  0x23   :  { %s5764_s9 = sld [smem:[%s6494_s0 + %s5613_s7]]   ;;  %s5617_s7 = smov 26  }
  0x24   :  { %s5769_s24 = sld [smem:[%s6494_s0 + %s5614_s15]]   ;;  %s5618_s15 = smov 27  }
  0x25   :  { %6531 = sst [smem:[#allocation27_spill]] %s5754_s27 }
  0x26   :  { %6532 = sst [smem:[#allocation28_spill]] %s5759_s4 }
  0x27   :  { %s5774_s27 = sld [smem:[%s6494_s0 + %s5615_s22]]   ;;  %s5619_s22 = smov 28  }
  0x28   :  { %s5779_s4 = sld [smem:[%s6494_s0 + %s5616_s28]]   ;;  %s5620_s28 = smov 29  }
  0x29   :  { %6533 = sst [smem:[#allocation29_spill]] %s5764_s9 }
  0x2a   :  { %6534 = sst [smem:[#allocation30_spill]] %s5769_s24 }
  0x2b   :  { %s5784_s9 = sld [smem:[%s6494_s0 + %s5617_s7]]   ;;  %s5621_s7 = smov 30  }
  0x2c   :  { %s5789_s24 = sld [smem:[%s6494_s0 + %s5618_s15]]   ;;  %s5622_s15 = smov 31  }
  0x2d   :  { %6535 = sst [smem:[#allocation31_spill]] %s5774_s27 }
  0x2e   :  { %6536 = sst [smem:[#allocation32_spill]] %s5779_s4 }
  0x2f   :  { %s5794_s27 = sld [smem:[%s6494_s0 + %s5619_s22]]   ;;  %s5623_s22 = smov 32  }
  0x30   :  { %s5799_s4 = sld [smem:[%s6494_s0 + %s5620_s28]]   ;;  %s5624_s28 = smov 33  }
  0x31   :  { %6537 = sst [smem:[#allocation33_spill]] %s5784_s9 }
  0x32   :  { %6538 = sst [smem:[#allocation34_spill]] %s5789_s24 }
  0x33   :  { %s5804_s9 = sld [smem:[%s6494_s0 + %s5621_s7]]   ;;  %s5625_s7 = smov 34  }
  0x34   :  { %s5809_s24 = sld [smem:[%s6494_s0 + %s5622_s15]]   ;;  %s5626_s15 = smov 35  }
  0x35   :  { %6539 = sst [smem:[#allocation35_spill]] %s5794_s27 }
  0x36   :  { %6540 = sst [smem:[#allocation36_spill]] %s5799_s4 }
  0x37   :  { %s5814_s27 = sld [smem:[%s6494_s0 + %s5623_s22]]   ;;  %s5627_s22 = smov 36  }
  0x38   :  { %s5819_s4 = sld [smem:[%s6494_s0 + %s5624_s28]]   ;;  %s5628_s28 = smov 37  }
  0x39   :  { %6541 = sst [smem:[#allocation37_spill]] %s5804_s9 }
  0x3a   :  { %6542 = sst [smem:[#allocation38_spill]] %s5809_s24 }
  0x3b   :  { %s5824_s9 = sld [smem:[%s6494_s0 + %s5625_s7]]   ;;  %s5629_s7 = smov 38  }
  0x3c   :  { %s5829_s24 = sld [smem:[%s6494_s0 + %s5626_s15]]   ;;  %s5630_s15 = smov 39  }
  0x3d   :  { %6543 = sst [smem:[#allocation39_spill]] %s5814_s27 }
  0x3e   :  { %6544 = sst [smem:[#allocation40_spill]] %s5819_s4 }
  0x3f   :  { %s5834_s27 = sld [smem:[%s6494_s0 + %s5627_s22]]   ;;  %s5631_s22 = smov 40  }
  0x40   :  { %s5839_s4 = sld [smem:[%s6494_s0 + %s5628_s28]]   ;;  %s5632_s28 = smov 41  }
  0x41   :  { %6545 = sst [smem:[#allocation41_spill]] %s5824_s9 }
  0x42   :  { %6546 = sst [smem:[#allocation42_spill]] %s5829_s24 }
  0x43   :  { %s5844_s9 = sld [smem:[%s6494_s0 + %s5629_s7]]   ;;  %s5633_s7 = smov 42  }
  0x44   :  { %s5849_s24 = sld [smem:[%s6494_s0 + %s5630_s15]]   ;;  %s5634_s15 = smov 43  }
  0x45   :  { %6547 = sst [smem:[#allocation43_spill]] %s5834_s27 }
  0x46   :  { %6548 = sst [smem:[#allocation44_spill]] %s5839_s4 }
  0x47   :  { %s5854_s27 = sld [smem:[%s6494_s0 + %s5631_s22]]   ;;  %s5635_s22 = smov 44  }
  0x48   :  { %s5859_s4 = sld [smem:[%s6494_s0 + %s5632_s28]]   ;;  %s5636_s28 = smov 45  }
  0x49   :  { %6549 = sst [smem:[#allocation45_spill]] %s5844_s9 }
  0x4a   :  { %6550 = sst [smem:[#allocation46_spill]] %s5849_s24 }
  0x4b   :  { %s5864_s9 = sld [smem:[%s6494_s0 + %s5633_s7]]  }
  0x4c   :  { %s5869_s24 = sld [smem:[%s6494_s0 + %s5634_s15]]  }
  0x4d   :  { %s5874_s6 = sld [smem:[%s6494_s0 + %s5635_s22]]  }
  0x4e   :  { %6551 = sst [smem:[#allocation47_spill]] %s5859_s4 }
  0x4f   :  { %s5879_s4 = sld [smem:[%s6494_s0 + %s5636_s28]]  }
  0x51   :  { %6552 = sst [smem:[#allocation48_spill]] %s5864_s9 }
  0x53   :  { %6553 = sst [smem:[#allocation49_spill]] %s5874_s6 }
  0x54   :  { %96 = vsyncpa [#allocation3], 0 }
  0x55   :  { %97 = vsyncpa [#allocation6], 0 }
  0x56   :  { %98 = vsyncpa [#allocation9], 0 }
  0x57   :  { %99 = vsyncpa [#allocation4], 0 }
  0x58   :  { %101 = vsyncpa [#allocation4 + $0x1], 0  ;;  %s5881_s7 = smov 0   ;;  %s5883_s10 = smov 0  }
  0x59   :  { %s5885_s11 = smov 0   ;;  %s5887_s15 = smov 0  }
  0x5a LB: > { %s6554_s12 = sld [smem:[#allocation22_spill]]  ;;  %s5902_s0 = sadd.s32 4294967295, %s5590_s15   ;;  %s5578_s7 = sphi %s5881_s7, %s6616_s7   ;;  %s5590_s15 = sphi %s5887_s15, %s6613_s15   ;;  %s5586_s11 = sphi %s5885_s11, %s6615_s11   ;;  %s5582_s10 = sphi %s5883_s10, %s6617_s10  }
  0x5b   : > { %6555 = sst [smem:[#allocation50_spill]] %s5578_s7  ;;  %s4668_s16 = sadd.s32 4294967294, %s5590_s15  }
  0x5c   : > { %6556 = sst [smem:[#allocation51_spill]] %s5586_s11  ;;  %s5906_s18 = sadd.s32 1, %s5590_s15  }
  0x5d   : > { %6557 = sst [smem:[#allocation52_spill]] %s5906_s18  ;;  %s1069_s22 = sadd.s32 1, %s5586_s11 }
  0x5e   : > { %s1066_s23 = ssub.s32 %s5590_s15, %s5906_s18  ;;  %p1079_p0 = scmp.ne.s32.totalorder %s5586_s11, %s5582_s10 }
  0x5f   : > { %p1067_p1 = scmp.eq.s32.totalorder %s1066_s23, 0  ;;  %p1080_p2 = scmp.eq.s32.totalorder %s5902_s0, 1 }
  0x60   : > { %p1085_p3 = scmp.ne.s32.totalorder %s5582_s10, %s5578_s7  ;;  %p1086_p4 = scmp.eq.s32.totalorder %s4668_s16, 1 }
  0x61   : > { %s5917_s26 = scalar_select %p1067_p1, %s5586_s11, %s1069_s22  }
  0x62   : > { %p5919_p5 = por %p1080_p2, %p1079_p0  ;;  %p5923_p6 = por %p1086_p4, %p1085_p3 }
  0x63   : > { %6558 = sst [smem:[#allocation53_spill]] %s5917_s26  ;;  %p4669_p7 = scmp.ge.s32.totalorder %s5590_s15, 1 }
  0x64   : > { %s6559_s28 = scalar_select %p5919_p5, 1, 0 }
  0x65   : > { %s6560_s1 = scalar_select %p5923_p6, 1, 0 }
  0x66   : > { %p1093_p8 = scmp.lt.s32.totalorder %s5590_s15, 3  ;;  %p6509_p9 = scmp.eq.s32.totalorder %s5902_s0, 0 }
  0x67   : > { %6561 = sst [smem:[#allocation54_spill]] %s6560_s1  ;;  %s5637_s23 = smov [#allocation5]  }
  0x68   : > { %p5930_p10 = pnand %p4669_p7, %p1093_p8  ;;  %s1234_s16 = sshll.u32 %s5637_s23, 4  ;;  %s1235_s16 = int_to_ptr.vmem [resolvable:$true] %s1234_s16 }
  0x69   : > { %s5638_s22 = smov [#allocation2]   ;;  %s5639_s18 = smov [#allocation7]  }
  0x6a   : > { %s6562_s2 = scalar_select %p5930_p10, 1, 0 }
  0x6b   : > { %p5269_p11 = pneg %p5930_p10  ;;  %s1220_s26 = sshll.u32 %s5638_s22, 4  ;;  %s1221_s26 = int_to_ptr.vmem [resolvable:$true] %s1220_s26 }
  0x6c   : > { %s1245_s1 = sshll.u32 %s5639_s18, 4  ;;  %s5425_s23 = scalar_lea.vmem %s1235_s16, 16  ;;  %s5942_s1 = int_to_ptr.vmem [resolvable:$true] %s1245_s1 }
  0x6d   : > { %p5938_p12 = pnand %p6509_p9, %p5269_p11  ;;  %p5426_p0 = scmp.ne.s32.totalorder %s1235_s16, %s5425_s23 }
  0x6e   : > { %s5432_s22 = scalar_lea.vmem %s1235_s16, 32  ;;  %p5433_p3 = scmp.lt.s32.totalorder %s1235_s16, %s1235_s16 }
  0x6f   : > { %p5416_p13 = pneg %p5938_p12  ;;  %p5434_p4 = scmp.lt.s32.totalorder %s5432_s22, %s5425_s23 }
  0x71   : > { %p5428_p1 = pnand %p5426_p0, %p5416_p13  ;;  %p5435_p7 = por %p5434_p4, %p5433_p3 }
  0x73   : > { %p5429_p2 = pneg %p5428_p1 }
  0x75   : > { %p5436_p8 = pnand %p5435_p7, %p5429_p2 }
  0x77   : > { %5439 = shalt.err (!%p5436_p8)
}
  0x78   : > { %s6564_s9 = sld [smem:[#allocation48_spill]]  ;;  %s5451_s18 = scalar_lea.vmem %s1221_s26, 16 }
  0x79   : > { %p5452_p11 = scmp.ne.s32.totalorder %s1221_s26, %s5451_s18  ;;  %s5458_s7 = scalar_lea.vmem %s1221_s26, 32 }
  0x7a   : > { %p5459_p0 = scmp.lt.s32.totalorder %s1221_s26, %s1221_s26  ;;  %p5460_p1 = scmp.lt.s32.totalorder %s5458_s7, %s5451_s18 }
  0x7b   : > { %p5454_p9 = pnand %p5452_p11, %p5416_p13 }
  0x7c   : > { %p5461_p5 = por %p5460_p1, %p5459_p0 }
  0x7d   : > { %p5455_p6 = pneg %p5454_p9 }
  0x7e   : > { %5275 = dma.hbm_to_vmem [thread:$0]  (!%p5938_p12), %s6564_s9, 16, %s1235_s16, [#allocation6]  }
  0x7f   : > { %p5462_p10 = pnand %p5461_p5, %p5455_p6 }
  0x81   : > { %5465 = shalt.err (!%p5462_p10)
}
  0x82   : > { %5272 = dma.hbm_to_vmem [thread:$0]  (!%p5938_p12), %s5854_s27, 16, %s1221_s26, [#allocation3]  }
  0x83   : > { %s5477_s16 = scalar_lea.vmem %s5942_s1, 16  ;;  %s5484_s23 = scalar_lea.vmem %s5942_s1, 32 }
  0x84   : > { %p5478_p2 = scmp.ne.s32.totalorder %s5942_s1, %s5477_s16  ;;  %p5485_p4 = scmp.lt.s32.totalorder %s5942_s1, %s5942_s1 }
  0x85   : > { %p5486_p5 = scmp.lt.s32.totalorder %s5484_s23, %s5477_s16 }
  0x86   : > { %p5480_p9 = pnand %p5478_p2, %p5416_p13 }
  0x87   : > { %p5487_p6 = por %p5486_p5, %p5485_p4 }
  0x88   : > { %p5481_p3 = pneg %p5480_p9 }
  0x8a   : > { %p5488_p10 = pnand %p5487_p6, %p5481_p3 }
  0x8c   : > { %5491 = shalt.err (!%p5488_p10)
}
  0x8d   : > { %5278 = dma.hbm_to_vmem [thread:$0]  (!%p5938_p12), %s5869_s24, 16, %s5942_s1, [#allocation6]  }
  0x8e   : > { %s5640_s7 = smov [#allocation8]  }
  0x8f   : > { %s1256_s26 = sshll.u32 %s5640_s7, 4  ;;  %s1257_s26 = int_to_ptr.vmem [resolvable:$true] %s1256_s26 }
  0x90   : > { %s5503_s22 = scalar_lea.vmem %s1257_s26, 16  ;;  %s5510_s18 = scalar_lea.vmem %s1257_s26, 32 }
  0x91   : > { %p5504_p7 = scmp.ne.s32.totalorder %s1257_s26, %s5503_s22  ;;  %p5511_p0 = scmp.lt.s32.totalorder %s1257_s26, %s1257_s26 }
  0x92   : > { %p5512_p1 = scmp.lt.s32.totalorder %s5510_s18, %s5503_s22 }
  0x93   : > { %p5506_p8 = pnand %p5504_p7, %p5416_p13 }
  0x94   : > { %p5513_p2 = por %p5512_p1, %p5511_p0 }
  0x95   : > { %p5507_p11 = pneg %p5506_p8 }
  0x97   : > { %p5514_p9 = pnand %p5513_p2, %p5507_p11 }
  0x99   : > { %5517 = shalt.err (!%p5514_p9)
}
  0x9a   : > { %s6565_s6 = sld [smem:[#allocation49_spill]]  ;;  %p6566_p3 = scmp.ne.s32.totalorder %s6562_s2, 0 }
  0x9b   : > { %p6567_p4 = scmp.eq.s32.totalorder (!%p6566_p3), %s5902_s0, 0 }
  0x9c   : > { %1282 = sbr.rel (%p6566_p3) target bundleno = 6636 (0x19ec), region = 200 }
  0xa0   : > { %5281 = dma.hbm_to_vmem [thread:$0]  (!%p5938_p12), %s6565_s6, 16, %s1257_s26, [#allocation9]  }
  0xa1   : > { %5561 = dma.done.wait (%p6567_p4), [#allocation3], 16   ;;  %p6568_p5 = pmov %p6567_p4 }
  0xa2   : > { %p6569_p13 = pmov %p6567_p4 }
  0xa3   : > { %5563 = vsyncadd (%p6568_p5), [#allocation3], 4294967280 }
  0xa4   : > { %5565 = dma.done.wait (%p6569_p13), [#allocation6], 32   ;;  %p6570_p6 = pmov %p6567_p4 }
  0xa5   : > { %p6571_p10 = pmov %p6567_p4 }
  0xa6   : > { %5567 = vsyncadd (%p6570_p6), [#allocation6], 4294967264 }
  0xa7   : > { %5569 = dma.done.wait (%p6571_p10), [#allocation9], 16   ;;  %p6572_p12 = pmov %p6567_p4 }
  0xa8   : > { %s6573_s5 = sld [smem:[#allocation15_spill]]  ;;  %p1404_p7 = scmp.lt.s32.totalorder %s5902_s0, 1  ;;  %vm1416_vm0 = vcmask 261120   ;;  %v1448_v7 = vld [vmem:[%s5674_s21 + $0x18] sm:$0xff]  ;;  %v5641_v8 = vmov 0.0   ;;  %v1447_v9 = vld [vmem:[%s5674_s21 + $0x10] sm:$0xff] }
  0xa9   : > { %5571 = vsyncadd (%p6572_p12), [#allocation9], 4294967280  ;;  %4944 = vmatprep.subr.mxu1 %v5641_v8  ;;  %vm5642_vm1 = vmmov 0   ;;  %4974 = vmatprep.subr.mxu0 %v5641_v8  ;;  %s6574_s13 = sld [smem:[#allocation17_spill]]  ;;  %v1446_v10 = vld [vmem:[%s5674_s21 + $0x8] sm:$0xff]  ;;  %v1445_v11 = vld [vmem:[%s5674_s21] sm:$0xff] }
  0xaa   : > { %s5992_s11 = scalar_select %p1404_p7, %s5902_s0, 1  ;;  %4952 = vmatprep.mubr.msk.f32.mxu1 %vm5642_vm1, %v5641_v8  ;;  %4945 = vmatpush3.msra.mxu1 %v1448_v7  ;;  %v4683_v18 = vld [vmem:[%s5669_s17] ss:$0 sm:$0xff]  ;;  %v1537_v21 = vld [vmem:[%s5684_s29 + $0x38] sm:$0xff]  ;;  %v1536_v22 = vld [vmem:[%s5684_s29 + $0x30] sm:$0xff]  ;;  %vm1545_vm2 = vcmask 523264  }
  0xab   : > { %4946 = vmatprep.subr.mxu1 %v5641_v8  ;;  %4982 = vmatprep.mubr.msk.f32.mxu0 %vm5642_vm1, %v5641_v8  ;;  %v1535_v23 = vld [vmem:[%s5684_s29 + $0x28] sm:$0xff]  ;;  %v1534_v24 = vld [vmem:[%s5684_s29 + $0x20] sm:$0xff]  ;;  %v1533_v25 = vld [vmem:[%s5684_s29 + $0x18] sm:$0xff]  ;;  %s6575_s3 = sld [smem:[#allocation18_spill]]  ;;  %vm1896_vm3 = vcmask 64512   ;;  %vm3880_vm7 = vcmask 1040384  }
  0xac   : > { %s4681_s1 = sshll.u32 %s5992_s11, 3  ;;  %4947 = vmatpush3.msra.mxu1 %v1447_v9  ;;  %v1532_v26 = vld [vmem:[%s5684_s29 + $0x10] sm:$0xff]  ;;  %v1531_v27 = vld [vmem:[%s5684_s29 + $0x8] sm:$0xff]  ;;  %v1530_v28 = vld [vmem:[%s5684_s29] sm:$0xff]  ;;  %s6576_s8 = sld [smem:[#allocation19_spill]]  ;;  %vm3897_vm9 = vcmask 1046528  }
  0xad   : > { %4948 = vmatprep.subr.mxu1 %v5641_v8  ;;  %v4684_v29 = vld [vmem:[%s5679_s25] ss:$0 sm:$0xff]  ;;  %v1653_v46 = vld [vmem:[%s5704_s19 + $0x18] sm:$0xff]  ;;  %v1652_v48 = vld [vmem:[%s5704_s19 + $0x10] sm:$0xff]  ;;  %s6577_s16 = sld [smem:[#allocation21_spill]]  ;;  %vm3911_vm10 = vcmask 1045504  }
  0xae   : > { %s1407_s2 = scalar_lea.vmem %s6573_s5, %s4681_s1  ;;  %4949 = vmatpush3.msra.mxu1 %v1446_v10  ;;  %4975 = vmatpush3.msra.mxu0 %v1653_v46  ;;  %v1818_v47 = vld [vmem:[%s6554_s12 + $0x18] sm:$0xff]  ;;  %v1817_v49 = vld [vmem:[%s6554_s12 + $0x10] sm:$0xff]  ;;  %v1651_v50 = vld [vmem:[%s5704_s19 + $0x8] sm:$0xff]  ;;  %s6578_s23 = sld [smem:[#allocation20_spill]] }
  0xaf   : > { %v5996_v0 = vld [vmem:[%s1407_s2] sm:$0xff]  ;;  %4950 = vmatprep.subr.mxu1 %v5641_v8  ;;  %4976 = vmatprep.subr.mxu0 %v5641_v8  ;;  %v1816_v51 = vld [vmem:[%s6554_s12 + $0x8] sm:$0xff]  ;;  %v1737_v63 = vld [vmem:[%s5714_s30 + $0x18] sm:$0xff]  ;;  %s6579_s7 = sld [smem:[#allocation16_spill]]  ;;  %p6609_p11 = scmp.ne.s32.totalorder %s6559_s28, 0 }
  0xb0   : > { %v1417_v1 = vsel %vm1416_vm0, %v5996_v0, 0.0  ;;  %4951 = vmatpush3.msra.mxu1 %v1445_v11  ;;  %v4682_v16 = vld [vmem:[%s6574_s13] ss:$0 sm:$0xff]  ;;  %4977 = vmatpush3.msra.mxu0 %v1652_v48  ;;  %s6582_s22 = sld [smem:[#allocation23_spill]]  ;;  %s5645_s9 = smov [#allocation10]  }
  0xb1   : > { %1418 = vadd.xlane.f32.xlu0 %v1417_v1  ;;  %4955 = vmatprep.subr.mxu1 %v5641_v8  ;;  %v4686_v34 = vld [vmem:[%s6575_s3] ss:$0 sm:$0xff]  ;;  %v1735_v1 = vld [vmem:[%s5714_s30 + $0x8] sm:$0xff]  ;;  %s6583_s18 = sld [smem:[#allocation27_spill]] }
  0xb2   : > { %4978 = vmatprep.subr.mxu0 %v5641_v8  ;;  %v1650_v52 = vld [vmem:[%s5704_s19] sm:$0xff]  ;;  %s6585_s1 = sld [smem:[#allocation26_spill]] }
  0xb3   : > { %4979 = vmatpush3.msra.mxu0 %v1651_v50  ;;  %v1815_v53 = vld [vmem:[%s6554_s12] sm:$0xff]  ;;  %v4709_v50 = vld [vmem:[%s5714_s30 + $0x38] sm:$0xff]  ;;  %s6586_s2 = sld [smem:[#allocation29_spill]] }
  0xb4   : > { %4980 = vmatprep.subr.mxu0 %v5641_v8  ;;  %v4688_v58 = vld [vmem:[%s6576_s8] ss:$0 sm:$0xff]  ;;  %s6594_s3 = sld [smem:[#allocation33_spill]] }
  0xb5   : > { %4981 = vmatpush3.msra.mxu0 %v1650_v52  ;;  %v4689_v60 = vld [vmem:[%s5699_s14] ss:$0 sm:$0xff]  ;;  %s1410_s26 = scalar_lea.vmem %s6579_s7, %s5992_s11  ;;  %v4708_v52 = vld [vmem:[%s5714_s30 + $0x30] sm:$0xff]  ;;  %s6584_s11 = sld [smem:[#allocation25_spill]] }
  0xb6   : > { %4985 = vmatprep.subr.mxu0 %v5641_v8  ;;  %v4692_v10 = vld [vmem:[%s6577_s16] ss:$0 sm:$0xff]  ;;  %s6587_s7 = sld [smem:[#allocation30_spill]] }
 0x13a   : > { %v1419_v2 = vpop.xlane.xlu0 %1418 }
 0x13b   : > { %v1421_v3 = vmul.f32 0.03125, %v1419_v2  ;;  %v1734_v2 = vld [vmem:[%s5714_s30] sm:$0xff] }
 0x13d   : > { %v1422_v4 = vsub.f32 %v5996_v0, %v1421_v3  ;;  %v4694_v3 = vld [vmem:[%s5729_s20] ss:$0 sm:$0xff] }
 0x13f   : > { %v1423_v5 = vmul.f32 %v1422_v4, %v1422_v4 }
 0x141   : > { %v1424_v6 = vsel %vm1416_vm0, %v1423_v5, 0.0 }
 0x142   : > { %1425 = vadd.xlane.f32.xlu0 %v1424_v6 }
 0x1cb   : > { %v1426_v12 = vpop.xlane.xlu0 %1425 }
 0x1cc   : > { %v1427_v13 = vmul.f32 0.03125, %v1426_v12  ;;  %v4690_v12 = vld [vmem:[%s6578_s23] ss:$0 sm:$0xff] }
 0x1ce   : > { %v1428_v14 = vadd.f32 1e-12, %v1427_v13 }
 0x1d0   : > { %5380 = vrsqrt.f32 %v1428_v14 }
 0x1dd   : > { %v5381_v15 = vpop.eup %5380 }
 0x1de   : > { %v1430_v17 = vmul.f32 %v5381_v15, %v1422_v4 }
 0x1e0   : > { %v1437_v19 = vmul.f32 %v4682_v16, %v1430_v17  ;;  %v4702_v16 = vld [vmem:[%s5704_s19 + $0x38] sm:$0xff]  ;;  %v4701_v17 = vld [vmem:[%s5704_s19 + $0x30] sm:$0xff] }
 0x1e2   : > { %v1444_v20 = vadd.f32 %v4683_v18, %v1437_v19  ;;  %v4700_v18 = vld [vmem:[%s5704_s19 + $0x28] sm:$0xff]  ;;  %v4699_v19 = vld [vmem:[%s5704_s19 + $0x20] sm:$0xff] }
 0x1e4   : > { %4953 = vmatmul.mubr.msk.f32.vlgmr.msra.gmra.mxu1 %vm1416_vm0, %v1444_v20  ;;  %v4716_v20 = vld [vmem:[%s6554_s12 + $0x38] sm:$0xff] }
 0x1e5   : > { %4956 = vmatpush3.msra.mxu1 %v1537_v21  ;;  %4971 = vmatprep.mubr.msk.f32.mxu1 %vm5642_vm1, %v5641_v8  ;;  %v4715_v21 = vld [vmem:[%s6554_s12 + $0x30] sm:$0xff] }
 0x1e6   : > { %4957 = vmatprep.subr.mxu1 %v5641_v8 }
 0x1e7   : > { %4958 = vmatpush3.msra.mxu1 %v1536_v22  ;;  %v4714_v22 = vld [vmem:[%s6554_s12 + $0x28] sm:$0xff] }
 0x1e8   : > { %4959 = vmatprep.subr.mxu1 %v5641_v8 }
 0x1e9   : > { %4960 = vmatpush3.msra.mxu1 %v1535_v23  ;;  %v4713_v23 = vld [vmem:[%s6554_s12 + $0x20] sm:$0xff] }
 0x1ea   : > { %4961 = vmatprep.subr.mxu1 %v5641_v8 }
 0x1eb   : > { %4962 = vmatpush3.msra.mxu1 %v1534_v24  ;;  %v1975_v24 = vlaneseq }
 0x1ec   : > { %4963 = vmatprep.subr.mxu1 %v5641_v8 }
 0x1ed   : > { %4964 = vmatpush3.msra.mxu1 %v1533_v25  ;;  %v1412_v25 = vld [vmem:[%s1410_s26] sm:$0x1]  ;;  %s6588_s26 = sld [smem:[#allocation35_spill]] }
 0x1ee   : > { %4965 = vmatprep.subr.mxu1 %v5641_v8  ;;  %vm1413_vm4 = vcmp.gt.f32.partialorder %v1412_v25, 0.5 }
 0x1ef   : > { %4966 = vmatpush3.msra.mxu1 %v1532_v26  ;;  %v6127_v26 = vshrl.u32 %v1975_v24, 7  ;;  %v4729_v24 = vld [vmem:[%s5704_s19 + $0x58] sm:$0xff] }
 0x1f0   : > { %4967 = vmatprep.subr.mxu1 %v5641_v8 }
 0x1f1   : > { %4968 = vmatpush3.msra.mxu1 %v1531_v27  ;;  %v6130_v27 = vsub.s32 0, %v6127_v26 }
 0x1f2   : > { %4969 = vmatprep.subr.mxu1 %v5641_v8 }
 0x1f3   : > { %4970 = vmatpush3.msra.mxu1 %v1530_v28  ;;  %v5643_v28 = vmov 0  }
 0x1f4   : > { %4996 = vmatprep.subr.mxu1 %v5641_v8 }
 0x2a4   : > { %v1525_v30 = vpop.f32.mrf.mxu1 }
 0x2a5   : > { %v1526_v31 = vadd.f32 %v4684_v29, %v1525_v30  ;;  %v1974_v29 = vsel %vm1413_vm4, 1, %v5643_v28  ;;  %v4728_v28 = vld [vmem:[%s5704_s19 + $0x50] sm:$0xff] }
 0x2a6   : > { %v4954_v32 = vpop.f32.mrf.mxu1  ;;  %v1978_v30 = vrot.slane %v1974_v29, %v6130_v27 }
 0x2a7   : > { %v1529_v33 = vmax.f32 %v1526_v31, 0.0  ;;  %v3627_v31 = vld [vmem:[%s6583_s18] sm:$0xff] }
 0x2a8   : > { %vm6133_vm5 = vcmp.eq.s32.totalorder %v1978_v30, 1  ;;  %v4727_v30 = vld [vmem:[%s5704_s19 + $0x48] sm:$0xff] }
 0x2a9   : > { %4972 = vmatmul.mubr.msk.f32.vlgmr.msra.gmra.mxu1 %vm1545_vm2, %v1529_v33 }
 0x2aa   : > { %5004 = vmatprep.mubr.msk.f32.mxu1 %vm5642_vm1, %v5641_v8  ;;  %4997 = vmatpush3.msra.mxu1 %v1818_v47 }
 0x2ab   : > { %4998 = vmatprep.subr.mxu1 %v5641_v8 }
 0x2ac   : > { %4999 = vmatpush3.msra.mxu1 %v1817_v49 }
 0x2ad   : > { %5000 = vmatprep.subr.mxu1 %v5641_v8 }
 0x2ae   : > { %5001 = vmatpush3.msra.mxu1 %v1816_v51 }
 0x2af   : > { %5002 = vmatprep.subr.mxu1 %v5641_v8 }
 0x2b0   : > { %5003 = vmatpush3.msra.mxu1 %v1815_v53  ;;  %v4707_v53 = vld [vmem:[%s5714_s30 + $0x28] sm:$0xff] }
 0x2b1   : > { %5012 = vmatprep.subr.mxu1 %v5641_v8 }
 0x369   : > { %v1615_v35 = vpop.f32.mrf.mxu1 }
 0x36a   : > { %v1616_v36 = vadd.f32 %v4686_v34, %v1615_v35 }
 0x36b   : > { %v4973_v37 = vpop.f32.mrf.mxu1 }
 0x36c   : > { %v1619_v38 = vmul.f32 0.5, %v1616_v36 }
 0x36e   : > { %v6043_v39 = vadd.f32 %v1619_v38, %v5996_v0  ;;  %v1736_v0 = vld [vmem:[%s5714_s30 + $0x10] sm:$0xff] }
 0x370   : > { %v1621_v40 = vsel %vm1416_vm0, %v6043_v39, 0.0 }
 0x371   : > { %1622 = vadd.xlane.f32.xlu1 %v1621_v40 }
 0x3fa   : > { %v1623_v41 = vpop.xlane.xlu1 %1622 }
 0x3fb   : > { %v1624_v42 = vmul.f32 0.03125, %v1623_v41 }
 0x3fd   : > { %v1625_v43 = vsub.f32 %v6043_v39, %v1624_v42 }
 0x3ff   : > { %v1626_v44 = vmul.f32 %v1625_v43, %v1625_v43 }
 0x401   : > { %v1627_v45 = vsel %vm1416_vm0, %v1626_v44, 0.0 }
 0x402   : > { %1628 = vadd.xlane.f32.xlu1 %v1627_v45 }
 0x48b   : > { %v1629_v54 = vpop.xlane.xlu1 %1628 }
 0x48c   : > { %v1630_v55 = vmul.f32 0.03125, %v1629_v54  ;;  %v4706_v54 = vld [vmem:[%s5714_s30 + $0x20] sm:$0xff] }
 0x48e   : > { %v1631_v56 = vadd.f32 1e-12, %v1630_v55 }
 0x490   : > { %5382 = vrsqrt.f32 %v1631_v56 }
 0x49d   : > { %v5383_v57 = vpop.eup %5382 }
 0x49e   : > { %v6066_v59 = vmul.f32 %v5383_v57, %v1625_v43  ;;  %v4711_v57 = vld [vmem:[%s6577_s16 + $0x1] ss:$0 sm:$0xff] }
 0x4a0   : > { %v1641_v61 = vmul.f32 %v4688_v58, %v6066_v59 }
 0x4a2   : > { %v6070_v62 = vadd.f32 %v4689_v60, %v1641_v61  ;;  %v4704_v60 = vld [vmem:[%s6578_s23 + $0x1] ss:$0 sm:$0xff] }
 0x4a4   : > { %4983 = vmatmul.mubr.msk.f32.vlgmr.msra.gmra.mxu0 %vm1416_vm0, %v6070_v62  ;;  %5005 = vmatmul.mubr.msk.f32.vlgmr.msra.gmra.mxu1 %vm1416_vm0, %v6070_v62 }
 0x4a5   : > { %4986 = vmatpush3.msra.mxu0 %v1737_v63  ;;  %4993 = vmatprep.mubr.msk.f32.mxu0 %vm5642_vm1, %v5641_v8  ;;  %v4718_v63 = vld [vmem:[%s5729_s20 + $0x1] ss:$0 sm:$0xff] }
 0x4a6   : > { %4987 = vmatprep.subr.mxu0 %v5641_v8  ;;  %5014 = vmatprep.mubr.msk.f32.mxu1 %vm5642_vm1, %v5641_v8 }
 0x4a7   : > { %4988 = vmatpush3.msra.mxu0 %v1736_v0 }
 0x4a8   : > { %4989 = vmatprep.subr.mxu0 %v5641_v8 }
 0x4a9   : > { %4990 = vmatpush3.msra.mxu0 %v1735_v1 }
 0x4aa   : > { %4991 = vmatprep.subr.mxu0 %v5641_v8 }
 0x4ab   : > { %4992 = vmatpush3.msra.mxu0 %v1734_v2 }
 0x4ac   : > { %4994 = vmatmul.mubr.msk.f32.vlgmr.msra.gmra.mxu0 %vm1416_vm0, %v6070_v62  ;;  %5007 = vmatprep.subr.mxu0 %v5641_v8 }
 0x4ad   : > { %5009 = vmatprep.mubr.msk.f32.mxu0 %vm5642_vm1, %v5641_v8 }
 0x564   : > { %v1730_v4 = vpop.f32.mrf.mxu0  ;;  %v1892_v5 = vpop.f32.mrf.mxu1 }
 0x565   : > { %v1893_v6 = vadd.f32 %v4694_v3, %v1892_v5  ;;  %v1731_v15 = vadd.f32 %v4690_v12, %v1730_v4 }
 0x566   : > { %v4984_v7 = vpop.f32.mrf.mxu0  ;;  %v5006_v9 = vpop.f32.mrf.mxu1 }
 0x567   : > { %5013 = vmatpush3.msra.mxu1 %v1893_v6 }
 0x568   : > { %5028 = vmatprep.subr.mxu1 %v5641_v8 }
 0x56c   : > { %v1811_v11 = vpop.f32.mrf.mxu0 }
 0x56d   : > { %v1812_v13 = vadd.f32 %v4692_v10, %v1811_v11 }
 0x56e   : > { %v4995_v14 = vpop.f32.mrf.mxu0 }
 0x56f   : > { %5008 = vmatpush3.xpose.msk.msra.mxu0 %vm1896_vm3, %v1812_v13  ;;  %v4723_v14 = vld [vmem:[%s6582_s22 + $0x8] sm:$0xff] }
 0x570   : > { %5017 = vmatprep.subr.mxu0 %v5641_v8 }
 0x572   : > { %5010 = vmatmul.mubr.msk.f32.vlgmr.msra.gmra.mxu0 %vm1896_vm3, %v1731_v15 }
 0x573   : > { %5018 = vmatpush3.msra.mxu0 %v4702_v16  ;;  %5025 = vmatprep.mubr.msk.f32.mxu0 %vm5642_vm1, %v5641_v8 }
 0x574   : > { %5019 = vmatprep.subr.mxu0 %v5641_v8 }
 0x575   : > { %5020 = vmatpush3.msra.mxu0 %v4701_v17 }
 0x576   : > { %5021 = vmatprep.subr.mxu0 %v5641_v8 }
 0x577   : > { %5022 = vmatpush3.msra.mxu0 %v4700_v18  ;;  %v2066_v18 = vld [vmem:[%s6582_s22] sm:$0xff] }
 0x578   : > { %5023 = vmatprep.subr.mxu0 %v5641_v8 }
 0x579   : > { %5024 = vmatpush3.msra.mxu0 %v4699_v19 }
 0x57a   : > { %5026 = vmatmul.mubr.msk.f32.vlgmr.msra.gmra.mxu0 %vm1416_vm0, %v6070_v62  ;;  %5039 = vmatprep.subr.mxu0 %v5641_v8 }
 0x57b   : > { %5040 = vmatpush3.msra.mxu0 %v4716_v20  ;;  %5047 = vmatprep.mubr.msk.f32.mxu0 %vm5642_vm1, %v5641_v8  ;;  %v4736_v20 = vld [vmem:[%s5714_s30 + $0x58] sm:$0xff] }
 0x57c   : > { %5041 = vmatprep.subr.mxu0 %v5641_v8 }
 0x57d   : > { %5042 = vmatpush3.msra.mxu0 %v4715_v21  ;;  %v4735_v21 = vld [vmem:[%s5714_s30 + $0x50] sm:$0xff] }
 0x57e   : > { %5043 = vmatprep.subr.mxu0 %v5641_v8 }
 0x57f   : > { %5044 = vmatpush3.msra.mxu0 %v4714_v22  ;;  %v4734_v22 = vld [vmem:[%s5714_s30 + $0x48] sm:$0xff] }
 0x580   : > { %5045 = vmatprep.subr.mxu0 %v5641_v8 }
 0x581   : > { %5046 = vmatpush3.msra.mxu0 %v4713_v23  ;;  %v4733_v23 = vld [vmem:[%s5714_s30 + $0x40] sm:$0xff] }
 0x582   : > { %5048 = vmatmul.mubr.msk.f32.vlgmr.msra.gmra.mxu0 %vm1416_vm0, %v6070_v62  ;;  %5060 = vmatprep.subr.mxu0 %v5641_v8 }
 0x583   : > { %5062 = vmatprep.mubr.msk.f32.mxu0 %vm5642_vm1, %v5641_v8  ;;  %5061 = vmatpush3.msra.mxu0 %v4723_v14  ;;  %v4767_v14 = vld [vmem:[%s6554_s12 + $0x68] sm:$0xff] }
 0x584   : > { %5070 = vmatprep.subr.mxu0 %v5641_v8 }
 0x632   : > { %v1969_v32 = vpop.f32.mrf.mxu0 }
 0x633   : > { %v1973_v33 = vmul.f32 0.35355338, %v1969_v32 }
 0x634   : > { %v5011_v34 = vpop.f32.mrf.mxu0 }
 0x635   : > { %v1980_v35 = vsel %vm6133_vm5, %v1973_v33, -3.4028235e+38  ;;  %v4726_v33 = vld [vmem:[%s5704_s19 + $0x40] sm:$0xff] }
 0x636   : > { %v1981_v36 = vsel %vm1896_vm3, %v1980_v35, -inf }
 0x637   : > { %1982 = vmax.xlane.f32.xlu0 %v1981_v36  ;;  %v4742_v36 = vld [vmem:[%s6554_s12 + $0x50] sm:$0xff] }
 0x63a   : > { %v2146_v37 = vpop.f32.mrf.mxu0 }
 0x63b   : > { %v2147_v1 = vadd.f32 %v4704_v60, %v2146_v37  ;;  %v4738_v37 = vld [vmem:[%s6577_s16 + $0x2] ss:$0 sm:$0xff] }
 0x63c   : > { %v5027_v38 = vpop.f32.mrf.mxu0 }
 0x63d   : > { %v4741_v38 = vld [vmem:[%s6554_s12 + $0x48] sm:$0xff] }
 0x642   : > { %v2312_v40 = vpop.f32.mrf.mxu0 }
 0x643   : > { %v2313_v2 = vadd.f32 %v4718_v63, %v2312_v40 }
 0x644   : > { %v5049_v41 = vpop.f32.mrf.mxu0 }
 0x6c0   : > { %v1983_v42 = vpop.xlane.xlu0 %1982 }
 0x6c1   : > { %v1984_v43 = vsub.f32 %v1980_v35, %v1983_v42  ;;  %v4743_v35 = vld [vmem:[%s6554_s12 + $0x58] sm:$0xff]  ;;  %v4740_v42 = vld [vmem:[%s6554_s12 + $0x40] sm:$0xff] }
 0x6c3   : > { %v1985_v44 = vmul.f32 1.442695, %v1984_v43 }
 0x6c5   : > { %5384 = vpow2.f32 %v1985_v44 }
 0x6d2   : > { %v5385_v45 = vpop.eup %5384 }
 0x6d3   : > { %v1987_v46 = vsel %vm1896_vm3, %v5385_v45, 0.0 }
 0x6d4   : > { %1988 = vadd.xlane.f32.xlu1 %v1987_v46  ;;  %v4731_v46 = vld [vmem:[%s6578_s23 + $0x2] ss:$0 sm:$0xff] }
 0x75d   : > { %v1989_v47 = vpop.xlane.xlu1 %1988 }
 0x75e   : > { %5386 = vrcp.f32 %v1989_v47 }
 0x76b   : > { %v5387_v48 = vpop.eup %5386 }
 0x76c   : > { %v1991_v49 = vmul.f32 %v5387_v48, %v5385_v45 }
 0x76e   : > { %v1992_v51 = vsel %vm6133_vm5, %v1991_v49, 0.0 }
 0x76f   : > { %5015 = vmatmul.mubr.msk.f32.vlgmr.msra.gmra.mxu1 %vm1896_vm3, %v1992_v51 }
 0x770   : > { %5029 = vmatpush3.msra.mxu1 %v4709_v50  ;;  %5036 = vmatprep.mubr.msk.f32.mxu1 %vm5642_vm1, %v5641_v8  ;;  %v4745_v50 = vld [vmem:[%s5729_s20 + $0x2] ss:$0 sm:$0xff] }
 0x771   : > { %5030 = vmatprep.subr.mxu1 %v5641_v8 }
 0x772   : > { %5031 = vmatpush3.msra.mxu1 %v4708_v52 }
 0x773   : > { %5032 = vmatprep.subr.mxu1 %v5641_v8 }
 0x774   : > { %5033 = vmatpush3.msra.mxu1 %v4707_v53 }
 0x775   : > { %5034 = vmatprep.subr.mxu1 %v5641_v8 }
 0x776   : > { %5035 = vmatpush3.msra.mxu1 %v4706_v54 }
 0x777   : > { %5037 = vmatmul.mubr.msk.f32.vlgmr.msra.gmra.mxu1 %vm1416_vm0, %v6070_v62  ;;  %5050 = vmatprep.subr.mxu1 %v5641_v8 }
 0x778   : > { %5052 = vmatprep.mubr.msk.f32.mxu1 %vm5642_vm1, %v5641_v8 }
 0x82f   : > { %v2062_v55 = vpop.f32.mrf.mxu1 }
 0x831   : > { %v5016_v56 = vpop.f32.mrf.mxu1 }
 0x837   : > { %v2229_v58 = vpop.f32.mrf.mxu1 }
 0x838   : > { %v2230_v61 = vadd.f32 %v4711_v57, %v2229_v58 }
 0x839   : > { %v5038_v0 = vpop.f32.mrf.mxu1 }
 0x83a   : > { %5051 = vmatpush3.xpose.msk.msra.mxu1 %vm1896_vm3, %v2230_v61 }
 0x83b   : > { %5055 = vmatprep.subr.mxu1 %v5641_v8 }
 0x83d   : > { %5053 = vmatmul.mubr.msk.f32.vlgmr.msra.gmra.mxu1 %vm1896_vm3, %v2147_v1 }
 0x83e   : > { %5056 = vmatpush3.msra.mxu1 %v2313_v2  ;;  %5057 = vmatprep.mubr.msk.f32.mxu1 %vm5642_vm1, %v5641_v8  ;;  %v4750_v2 = vld [vmem:[%s6582_s22 + $0x10] sm:$0xff] }
 0x83f   : > { %5065 = vmatprep.subr.mxu1 %v5641_v8 }
 0x8fd   : > { %v2388_v3 = vpop.f32.mrf.mxu1 }
 0x8fe   : > { %v2392_v4 = vmul.f32 0.35355338, %v2388_v3 }
 0x8ff   : > { %v5054_v5 = vpop.f32.mrf.mxu1 }
 0x900   : > { %v2393_v6 = vsel %vm6133_vm5, %v2392_v4, -3.4028235e+38 }
 0x901   : > { %v2394_v7 = vsel %vm1896_vm3, %v2393_v6, -inf }
 0x902   : > { %2395 = vmax.xlane.f32.xlu0 %v2394_v7 }
 0x98b   : > { %v2396_v9 = vpop.xlane.xlu0 %2395 }
 0x98c   : > { %v2397_v10 = vsub.f32 %v2393_v6, %v2396_v9  ;;  %v4755_v6 = vld [vmem:[%s5704_s19 + $0x78] sm:$0xff]  ;;  %v4754_v9 = vld [vmem:[%s5704_s19 + $0x70] sm:$0xff] }
 0x98e   : > { %v2398_v11 = vmul.f32 1.442695, %v2397_v10  ;;  %v4753_v10 = vld [vmem:[%s5704_s19 + $0x68] sm:$0xff] }
 0x990   : > { %5388 = vpow2.f32 %v2398_v11  ;;  %v4752_v11 = vld [vmem:[%s5704_s19 + $0x60] sm:$0xff] }
 0x99d   : > { %v5389_v12 = vpop.eup %5388 }
 0x99e   : > { %v2400_v13 = vsel %vm1896_vm3, %v5389_v12, 0.0 }
 0x99f   : > { %2401 = vadd.xlane.f32.xlu1 %v2400_v13  ;;  %v4768_v13 = vld [vmem:[%s6554_s12 + $0x70] sm:$0xff] }
 0xa28   : > { %v2402_v15 = vpop.xlane.xlu1 %2401 }
 0xa29   : > { %5390 = vrcp.f32 %v2402_v15  ;;  %v4766_v15 = vld [vmem:[%s6554_s12 + $0x60] sm:$0xff] }
 0xa36   : > { %v5391_v16 = vpop.eup %5390 }
 0xa37   : > { %v2404_v17 = vmul.f32 %v5391_v16, %v5389_v12  ;;  %v4769_v12 = vld [vmem:[%s6554_s12 + $0x78] sm:$0xff]  ;;  %s5522_s12 = sshll.u32 %s5645_s9, 4  ;;  %s5523_s12 = int_to_ptr.vmem [resolvable:$false] %s5522_s12 }
 0xa38   : > { %v4762_v16 = vld [vmem:[%s5714_s30 + $0x78] sm:$0xff]  ;;  %s5524_s13 = scalar_lea.vmem %s5523_s12, 256 }
 0xa39   : > { %v2405_v19 = vsel %vm6133_vm5, %v2404_v17, 0.0 }
 0xa3a   : > { %5058 = vmatmul.mubr.msk.f32.vlgmr.msra.gmra.mxu1 %vm1896_vm3, %v2405_v19 }
 0xa3b   : > { %5066 = vmatpush3.msra.mxu1 %v2066_v18  ;;  %5067 = vmatprep.mubr.msk.f32.mxu1 %vm5642_vm1, %v5641_v8  ;;  %v4761_v18 = vld [vmem:[%s5714_s30 + $0x70] sm:$0xff] }
 0xa3c   : > { %5081 = vmatprep.subr.mxu1 %v5641_v8 }
 0xa3e   : > { %5068 = vmatmul.mubr.msk.f32.vlgmr.msra.gmra.mxu1 %vm1896_vm3, %v2062_v55 }
 0xa3f   : > { %5082 = vmatpush3.msra.mxu1 %v4736_v20  ;;  %5089 = vmatprep.mubr.msk.f32.mxu1 %vm5642_vm1, %v5641_v8  ;;  %v4760_v20 = vld [vmem:[%s5714_s30 + $0x68] sm:$0xff] }
 0xa40   : > { %5083 = vmatprep.subr.mxu1 %v5641_v8 }
 0xa41   : > { %5084 = vmatpush3.msra.mxu1 %v4735_v21  ;;  %v4759_v21 = vld [vmem:[%s5714_s30 + $0x60] sm:$0xff] }
 0xa42   : > { %5085 = vmatprep.subr.mxu1 %v5641_v8 }
 0xa43   : > { %5086 = vmatpush3.msra.mxu1 %v4734_v22 }
 0xa44   : > { %5087 = vmatprep.subr.mxu1 %v5641_v8 }
 0xa45   : > { %5088 = vmatpush3.msra.mxu1 %v4733_v23 }
 0xa46   : > { %5090 = vmatmul.mubr.msk.f32.vlgmr.msra.gmra.mxu1 %vm1416_vm0, %v6070_v62  ;;  %5103 = vmatprep.subr.mxu1 %v5641_v8 }
 0xa47   : > { %5105 = vmatprep.mubr.msk.f32.mxu1 %vm5642_vm1, %v5641_v8 }
 0xafa   : > { %v2475_v25 = vpop.f32.mrf.mxu1 }
 0xafb   : > { %5063 = vmatmul.mubr.msk.f32.vlgmr.msra.gmra.mxu0 %vm1896_vm3, %v2475_v25 }
 0xafc   : > { %5071 = vmatpush3.msra.mxu0 %v4729_v24  ;;  %v5059_v29 = vpop.f32.mrf.mxu1  ;;  %5078 = vmatprep.mubr.msk.f32.mxu0 %vm5642_vm1, %v5641_v8 }
 0xafd   : > { %5072 = vmatprep.subr.mxu0 %v5641_v8 }
 0xafe   : > { %5073 = vmatpush3.msra.mxu0 %v4728_v28  ;;  %v6202_v32 = vpop.f32.mrf.mxu1 }
 0xaff   : > { %5074 = vmatprep.subr.mxu0 %v5641_v8 }
 0xb00   : > { %5075 = vmatpush3.msra.mxu0 %v4727_v30  ;;  %v5069_v34 = vpop.f32.mrf.mxu1 }
 0xb01   : > { %5076 = vmatprep.subr.mxu0 %v5641_v8  ;;  %v4764_v34 = vld [vmem:[%s6577_s16 + $0x3] ss:$0 sm:$0xff] }
 0xb02   : > { %5077 = vmatpush3.msra.mxu0 %v4726_v33 }
 0xb03   : > { %5079 = vmatmul.mubr.msk.f32.vlgmr.msra.gmra.mxu0 %vm1416_vm0, %v6070_v62  ;;  %5092 = vmatprep.subr.mxu0 %v5641_v8 }
 0xb04   : > { %5093 = vmatpush3.msra.mxu0 %v4743_v35  ;;  %5100 = vmatprep.mubr.msk.f32.mxu0 %vm5642_vm1, %v5641_v8 }
 0xb05   : > { %5094 = vmatprep.subr.mxu0 %v5641_v8 }
 0xb06   : > { %v2789_v40 = vpop.f32.mrf.mxu1  ;;  %5095 = vmatpush3.msra.mxu0 %v4742_v36  ;;  %v4757_v36 = vld [vmem:[%s6578_s23 + $0x3] ss:$0 sm:$0xff] }
 0xb07   : > { %v2790_v41 = vadd.f32 %v4738_v37, %v2789_v40  ;;  %5096 = vmatprep.subr.mxu0 %v5641_v8 }
 0xb08   : > { %v5091_v43 = vpop.f32.mrf.mxu1  ;;  %5097 = vmatpush3.msra.mxu0 %v4741_v38 }
 0xb09   : > { %5098 = vmatprep.subr.mxu0 %v5641_v8  ;;  %5104 = vmatpush3.xpose.msk.msra.mxu1 %vm1896_vm3, %v2790_v41 }
 0xb0a   : > { %5099 = vmatpush3.msra.mxu0 %v4740_v42  ;;  %5108 = vmatprep.subr.mxu1 %v5641_v8 }
 0xb0b   : > { %5101 = vmatmul.mubr.msk.f32.vlgmr.msra.gmra.mxu0 %vm1416_vm0, %v6070_v62  ;;  %5113 = vmatprep.subr.mxu0 %v5641_v8 }
 0xb0c   : > { %5115 = vmatprep.mubr.msk.f32.mxu0 %vm5642_vm1, %v5641_v8  ;;  %5114 = vmatpush3.msra.mxu0 %v4750_v2  ;;  %v3740_v2 = vld [vmem:[%s6586_s2 + $0x10] sm:$0xff] }
 0xb0d   : > { %5129 = vmatprep.subr.mxu0 %v5641_v8 }
 0xbbb   : > { %v6227_v44 = vpop.f32.mrf.mxu0 }
 0xbbc   : > { %v2624_v28 = vadd.f32 %v6202_v32, %v6227_v44 }
 0xbbd   : > { %v5064_v45 = vpop.f32.mrf.mxu0 }
 0xbc3   : > { %v2706_v47 = vpop.f32.mrf.mxu0 }
 0xbc4   : > { %v2707_v48 = vadd.f32 %v4731_v46, %v2706_v47 }
 0xbc5   : > { %v5080_v49 = vpop.f32.mrf.mxu0 }
 0xbc6   : > { %5106 = vmatmul.mubr.msk.f32.vlgmr.msra.gmra.mxu1 %vm1896_vm3, %v2707_v48 }
 0xbc7   : > { %5110 = vmatprep.mubr.msk.f32.mxu1 %vm5642_vm1, %v5641_v8 }
 0xbcb   : > { %v2872_v51 = vpop.f32.mrf.mxu0 }
 0xbcc   : > { %v2873_v52 = vadd.f32 %v4745_v50, %v2872_v51  ;;  %v4776_v51 = vld [vmem:[%s6582_s22 + $0x18] sm:$0xff] }
 0xbcd   : > { %v5102_v53 = vpop.f32.mrf.mxu0 }
 0xbce   : > { %5109 = vmatpush3.msra.mxu1 %v2873_v52 }
 0xbcf   : > { %5118 = vmatprep.subr.mxu1 %v5641_v8 }
 0xc86   : > { %v2948_v54 = vpop.f32.mrf.mxu1 }
 0xc87   : > { %v2952_v55 = vmul.f32 0.35355338, %v2948_v54 }
 0xc88   : > { %v5107_v56 = vpop.f32.mrf.mxu1 }
 0xc89   : > { %v2953_v57 = vsel %vm6133_vm5, %v2952_v55, -3.4028235e+38  ;;  %v3630_v55 = vld [vmem:[%s6583_s18 + $0x18] sm:$0xff] }
 0xc8a   : > { %v2954_v58 = vsel %vm1896_vm3, %v2953_v57, -inf }
 0xc8b   : > { %2955 = vmax.xlane.f32.xlu0 %v2954_v58  ;;  %v3629_v58 = vld [vmem:[%s6583_s18 + $0x10] sm:$0xff] }
 0xd14   : > { %v2956_v60 = vpop.xlane.xlu0 %2955 }
 0xd15   : > { %v2957_v61 = vsub.f32 %v2953_v57, %v2956_v60  ;;  %v4779_v57 = vld [vmem:[%s6584_s11] ss:$0 sm:$0xff]  ;;  %v3628_v60 = vld [vmem:[%s6583_s18 + $0x8] sm:$0xff]  ;;  %s6589_s11 = sld [smem:[#allocation28_spill]] }
 0xd17   : > { %v2958_v63 = vmul.f32 1.442695, %v2957_v61  ;;  %v3618_v61 = vmul.f32 %v4779_v57, %v6066_v59  ;;  %v3741_v59 = vld [vmem:[%s6586_s2 + $0x18] sm:$0xff] }
 0xd19   : > { %5392 = vpow2.f32 %v2958_v63  ;;  %v4780_v63 = vld [vmem:[%s6585_s1] ss:$0 sm:$0xff]  ;;  %s6590_s1 = sld [smem:[#allocation24_spill]] }
 0xd26   : > { %v5393_v0 = vpop.eup %5392 }
 0xd27   : > { %v2960_v1 = vsel %vm1896_vm3, %v5393_v0, 0.0 }
 0xd28   : > { %2961 = vadd.xlane.f32.xlu1 %v2960_v1 }
 0xdb1   : > { %v2962_v3 = vpop.xlane.xlu1 %2961 }
 0xdb2   : > { %5394 = vrcp.f32 %v2962_v3 }
 0xdbf   : > { %v5395_v4 = vpop.eup %5394 }
 0xdc0   : > { %v2964_v5 = vmul.f32 %v5395_v4, %v5393_v0  ;;  %v3626_v0 = vadd.f32 %v4780_v63, %v3618_v61  ;;  %v3739_v4 = vld [vmem:[%s6586_s2 + $0x8] sm:$0xff] }
 0xdc2   : > { %v2965_v7 = vsel %vm6133_vm5, %v2964_v5, 0.0  ;;  %v3738_v5 = vld [vmem:[%s6586_s2] sm:$0xff]  ;;  %s6593_s2 = sld [smem:[#allocation32_spill]] }
 0xdc3   : > { %5111 = vmatmul.mubr.msk.f32.vlgmr.msra.gmra.mxu1 %vm1896_vm3, %v2965_v7 }
 0xdc4   : > { %5119 = vmatpush3.msra.mxu1 %v4755_v6  ;;  %5126 = vmatprep.mubr.msk.f32.mxu1 %vm5642_vm1, %v5641_v8 }
 0xdc5   : > { %5120 = vmatprep.subr.mxu1 %v5641_v8 }
 0xdc6   : > { %5121 = vmatpush3.msra.mxu1 %v4754_v9 }
 0xdc7   : > { %5122 = vmatprep.subr.mxu1 %v5641_v8 }
 0xdc8   : > { %5123 = vmatpush3.msra.mxu1 %v4753_v10 }
 0xdc9   : > { %5124 = vmatprep.subr.mxu1 %v5641_v8 }
 0xdca   : > { %5125 = vmatpush3.msra.mxu1 %v4752_v11 }
 0xdcb   : > { %5127 = vmatmul.mubr.msk.f32.vlgmr.msra.gmra.mxu1 %vm1416_vm0, %v6070_v62  ;;  %5140 = vmatprep.subr.mxu1 %v5641_v8 }
 0xdcc   : > { %5141 = vmatpush3.msra.mxu1 %v4769_v12  ;;  %5148 = vmatprep.mubr.msk.f32.mxu1 %vm5642_vm1, %v5641_v8  ;;  %v4783_v12 = vld [vmem:[%s6587_s7] ss:$0 sm:$0xff]  ;;  %s6591_s7 = sld [smem:[#allocation37_spill]] }
 0xdcd   : > { %5142 = vmatprep.subr.mxu1 %v5641_v8 }
 0xdce   : > { %5143 = vmatpush3.msra.mxu1 %v4768_v13 }
 0xdcf   : > { %5144 = vmatprep.subr.mxu1 %v5641_v8 }
 0xdd0   : > { %5145 = vmatpush3.msra.mxu1 %v4767_v14 }
 0xdd1   : > { %5146 = vmatprep.subr.mxu1 %v5641_v8 }
 0xdd2   : > { %5147 = vmatpush3.msra.mxu1 %v4766_v15 }
 0xdd3   : > { %5149 = vmatmul.mubr.msk.f32.vlgmr.msra.gmra.mxu1 %vm1416_vm0, %v6070_v62  ;;  %5161 = vmatprep.subr.mxu1 %v5641_v8 }
 0xdd4   : > { %5163 = vmatprep.mubr.msk.f32.mxu1 %vm5642_vm1, %v5641_v8  ;;  %5162 = vmatpush3.msra.mxu1 %v4776_v51  ;;  %v3928_v51 = vld [vmem:[%s6588_s26 + $0x18] sm:$0xff] }
 0xdd5   : > { %5177 = vmatprep.subr.mxu1 %v5641_v8 }
 0xe83   : > { %v3035_v17 = vpop.f32.mrf.mxu1 }
 0xe84   : > { %5116 = vmatmul.mubr.msk.f32.vlgmr.msra.gmra.mxu0 %vm1896_vm3, %v3035_v17 }
 0xe85   : > { %5130 = vmatpush3.msra.mxu0 %v4762_v16  ;;  %v5112_v19 = vpop.f32.mrf.mxu1  ;;  %5137 = vmatprep.mubr.msk.f32.mxu0 %vm5642_vm1, %v5641_v8 }
 0xe86   : > { %5131 = vmatprep.subr.mxu0 %v5641_v8 }
 0xe87   : > { %5132 = vmatpush3.msra.mxu0 %v4761_v18 }
 0xe88   : > { %5133 = vmatprep.subr.mxu0 %v5641_v8 }
 0xe89   : > { %5134 = vmatpush3.msra.mxu0 %v4760_v20 }
 0xe8a   : > { %5135 = vmatprep.subr.mxu0 %v5641_v8 }
 0xe8b   : > { %v3194_v22 = vpop.f32.mrf.mxu1  ;;  %5136 = vmatpush3.msra.mxu0 %v4759_v21 }
 0xe8c   : > { %5138 = vmatmul.mubr.msk.f32.vlgmr.msra.gmra.mxu0 %vm1416_vm0, %v6070_v62  ;;  %5151 = vmatprep.subr.mxu0 %v5641_v8  ;;  %v4771_v62 = vld [vmem:[%s5729_s20 + $0x3] ss:$0 sm:$0xff]  ;;  %v3195_v40 = vadd.f32 %v4757_v36, %v3194_v22 }
 0xe8d   : > { %v5128_v23 = vpop.f32.mrf.mxu1  ;;  %5153 = vmatprep.mubr.msk.f32.mxu0 %vm5642_vm1, %v5641_v8 }
 0xe93   : > { %v3360_v24 = vpop.f32.mrf.mxu1 }
 0xe94   : > { %v3361_v41 = vadd.f32 %v4771_v62, %v3360_v24 }
 0xe95   : > { %v5150_v25 = vpop.f32.mrf.mxu1 }
 0xf44   : > { %v3110_v29 = vpop.f32.mrf.mxu0 }
 0xf45   : > { %v6287_v30 = vadd.f32 %v3110_v29, %v2624_v28 }
 0xf46   : > { %v5117_v33 = vpop.f32.mrf.mxu0 }
 0xf4c   : > { %v3277_v35 = vpop.f32.mrf.mxu0 }
 0xf4d   : > { %v3278_v37 = vadd.f32 %v4764_v34, %v3277_v35 }
 0xf4e   : > { %v5139_v38 = vpop.f32.mrf.mxu0 }
 0xf4f   : > { %5152 = vmatpush3.xpose.msk.msra.mxu0 %vm1896_vm3, %v3278_v37 }
 0xf50   : > { %5156 = vmatprep.subr.mxu0 %v5641_v8 }
 0xf52   : > { %5154 = vmatmul.mubr.msk.f32.vlgmr.msra.gmra.mxu0 %vm1896_vm3, %v3195_v40  ;;  %v5644_v40 = vmov -1.0  }
 0xf53   : > { %5157 = vmatpush3.msra.mxu0 %v3361_v41  ;;  %5158 = vmatprep.mubr.msk.f32.mxu0 %vm5642_vm1, %v5641_v8 }
 0xf54   : > { %5166 = vmatprep.subr.mxu0 %v5641_v8 }
0x1012   : > { %v3436_v32 = vpop.f32.mrf.mxu0 }
0x1013   : > { %v3440_v42 = vmul.f32 0.35355338, %v3436_v32 }
0x1014   : > { %v5155_v43 = vpop.f32.mrf.mxu0 }
0x1015   : > { %v3441_v44 = vsel %vm6133_vm5, %v3440_v42, -3.4028235e+38 }
0x1016   : > { %v3442_v45 = vsel %vm1896_vm3, %v3441_v44, -inf }
0x1017   : > { %3443 = vmax.xlane.f32.xlu0 %v3442_v45 }
0x10a0   : > { %v3444_v46 = vpop.xlane.xlu0 %3443 }
0x10a1   : > { %v3445_v47 = vsub.f32 %v3441_v44, %v3444_v46 }
0x10a3   : > { %v3446_v48 = vmul.f32 1.442695, %v3445_v47 }
0x10a5   : > { %5396 = vpow2.f32 %v3446_v48 }
0x10b2   : > { %v5397_v49 = vpop.eup %5396 }
0x10b3   : > { %v3448_v50 = vsel %vm1896_vm3, %v5397_v49, 0.0 }
0x10b4   : > { %3449 = vadd.xlane.f32.xlu1 %v3448_v50 }
0x113d   : > { %v3450_v52 = vpop.xlane.xlu1 %3449 }
0x113e   : > { %5398 = vrcp.f32 %v3450_v52  ;;  %v3927_v52 = vld [vmem:[%s6588_s26 + $0x10] sm:$0xff] }
0x114b   : > { %v5399_v53 = vpop.eup %5398 }
0x114c   : > { %v3452_v54 = vmul.f32 %v5399_v53, %v5397_v49  ;;  %v3926_v53 = vld [vmem:[%s6588_s26 + $0x8] sm:$0xff] }
0x114e   : > { %v3453_v56 = vsel %vm6133_vm5, %v3452_v54, 0.0  ;;  %v3925_v54 = vld [vmem:[%s6588_s26] sm:$0xff] }
0x114f   : > { %5159 = vmatmul.mubr.msk.f32.vlgmr.msra.gmra.mxu0 %vm1896_vm3, %v3453_v56 }
0x1150   : > { %5167 = vmatpush3.msra.mxu0 %v3630_v55  ;;  %5174 = vmatprep.mubr.msk.f32.mxu0 %vm5642_vm1, %v5641_v8  ;;  %v4781_v55 = vld [vmem:[%s6589_s11] ss:$0 sm:$0xff]  ;;  %s6592_s11 = sld [smem:[#allocation31_spill]] }
0x1151   : > { %5168 = vmatprep.subr.mxu0 %v5641_v8 }
0x1152   : > { %5169 = vmatpush3.msra.mxu0 %v3629_v58 }
0x1153   : > { %5170 = vmatprep.subr.mxu0 %v5641_v8 }
0x1154   : > { %5171 = vmatpush3.msra.mxu0 %v3628_v60 }
0x1155   : > { %5172 = vmatprep.subr.mxu0 %v5641_v8 }
0x1156   : > { %5173 = vmatpush3.msra.mxu0 %v3627_v31 }
0x1157   : > { %5175 = vmatmul.mubr.msk.f32.vlgmr.msra.gmra.mxu0 %vm1416_vm0, %v3626_v0  ;;  %5188 = vmatprep.subr.mxu0 %v5641_v8 }
0x1158   : > { %5196 = vmatprep.mubr.msk.f32.mxu0 %vm5642_vm1, %v5641_v8  ;;  %5189 = vmatpush3.msra.mxu0 %v3928_v51 }
0x1159   : > { %5190 = vmatprep.subr.mxu0 %v5641_v8 }
0x115a   : > { %5191 = vmatpush3.msra.mxu0 %v3927_v52 }
0x115b   : > { %5192 = vmatprep.subr.mxu0 %v5641_v8 }
0x115c   : > { %5193 = vmatpush3.msra.mxu0 %v3926_v53 }
0x115d   : > { %5194 = vmatprep.subr.mxu0 %v5641_v8 }
0x115e   : > { %5195 = vmatpush3.msra.mxu0 %v3925_v54 }
0x115f   : > { %5210 = vmatprep.subr.mxu0 %v5641_v8 }
0x120f   : > { %v3523_v1 = vpop.f32.mrf.mxu0 }
0x1210   : > { %5164 = vmatmul.mubr.msk.f32.vlgmr.msra.gmra.mxu1 %vm1896_vm3, %v3523_v1 }
0x1211   : > { %5178 = vmatpush3.msra.mxu1 %v3741_v59  ;;  %v5160_v3 = vpop.f32.mrf.mxu0  ;;  %5185 = vmatprep.mubr.msk.f32.mxu1 %vm5642_vm1, %v5641_v8 }
0x1212   : > { %5179 = vmatprep.subr.mxu1 %v5641_v8 }
0x1213   : > { %5180 = vmatpush3.msra.mxu1 %v3740_v2 }
0x1214   : > { %5181 = vmatprep.subr.mxu1 %v5641_v8 }
0x1215   : > { %5182 = vmatpush3.msra.mxu1 %v3739_v4 }
0x1216   : > { %5183 = vmatprep.subr.mxu1 %v5641_v8 }
0x1217   : > { %v6333_v6 = vpop.f32.mrf.mxu0  ;;  %5184 = vmatpush3.msra.mxu1 %v3738_v5 }
0x1218   : > { %5186 = vmatmul.mubr.msk.f32.vlgmr.msra.gmra.mxu1 %vm1416_vm0, %v3626_v0  ;;  %5199 = vmatprep.subr.mxu1 %v5641_v8  ;;  %v6356_v56 = vadd.f32 %v4781_v55, %v6333_v6 }
0x1219   : > { %v5176_v7 = vpop.f32.mrf.mxu0  ;;  %5207 = vmatprep.mubr.msk.f32.mxu1 %vm5642_vm1, %v5641_v8 }
0x121a   : > { %v3712_v57 = vmul.f32 0.70710677, %v6356_v56 }
0x121c   : > { %v3715_v58 = vand.u32 2147483647, %v3712_v57  ;;  %vm3713_vm8 = vcmp.ge.f32.partialorder %v3712_v57, 0.0 }
0x121e   : > { %v3716_v60 = vmul.f32 0.3275911, %v3715_v58  ;;  %v3729_v1 = vsub.f32 0.0, %v3715_v58 }
0x1220   : > { %v3717_v61 = vadd.f32 1.0, %v3716_v60  ;;  %v3730_v3 = vmul.f32 %v3729_v1, %v3715_v58 }
0x1222   : > { %v3731_v5 = vmul.f32 1.442695, %v3730_v3 }
0x12d0   : > { %v3598_v9 = vpop.f32.mrf.mxu1 }
0x12d1   : > { %v6340_v10 = vadd.f32 %v3598_v9, %v6287_v30 }
0x12d2   : > { %v5165_v11 = vpop.f32.mrf.mxu1 }
0x12d8   : > { %v3815_v13 = vpop.f32.mrf.mxu1 }
0x12d9   : > { %v3816_v14 = vadd.f32 %v4783_v12, %v3815_v13  ;;  %v4778_v13 = vld [vmem:[%s6590_s1] ss:$0 sm:$0xff]  ;;  %s6597_s1 = sld [smem:[#allocation38_spill]] }
0x12da   : > { %v5187_v15 = vpop.f32.mrf.mxu1 }
0x12db   : > { %v3820_v16 = vmul.f32 0.70710677, %v3816_v14  ;;  %v3819_v42 = vmul.f32 0.5, %v3816_v14  ;;  %v6361_v15 = vadd.f32 %v4778_v13, %v6340_v10  ;;  %v3875_v10 = vld [vmem:[%s6594_s3] sm:$0x7]  ;;  %s6595_s3 = sld [smem:[#allocation34_spill]] }
0x12dd   : > { %v3823_v17 = vand.u32 2147483647, %v3820_v16  ;;  %vm3821_vm6 = vcmp.ge.f32.partialorder %v3820_v16, 0.0 }
0x12de   : > { %v3822_v41 = vsel %vm3821_vm6, 1.0, %v5644_v40 }
0x12df   : > { %v3824_v18 = vmul.f32 0.3275911, %v3823_v17  ;;  %v3837_v20 = vsub.f32 0.0, %v3823_v17 }
0x12e1   : > { %v3825_v19 = vadd.f32 1.0, %v3824_v18  ;;  %v3838_v21 = vmul.f32 %v3837_v20, %v3823_v17  ;;  %v6364_v17 = vsub.s32 1, %v6127_v26  ;;  %v4009_v18 = vld [vmem:[%s6591_s7] sm:$0x7]  ;;  %s6598_s7 = sld [smem:[#allocation42_spill]] }
0x12e2   : > { %v4019_v52 = vrot.slane %v4009_v18, %v6130_v27 }
0x12e3   : > { %5400 = vrcp.f32 %v3825_v19  ;;  %v3839_v23 = vmul.f32 1.442695, %v3838_v21  ;;  %v4012_v19 = vrot.slane %v6361_v15, 7 }
0x12e5   : > { %5402 = vpow2.f32 %v3839_v23  ;;  %v4785_v23 = vld [vmem:[%s6592_s11] ss:$0 sm:$0xff]  ;;  %s6600_s11 = sld [smem:[#allocation36_spill]] }
0x12e6   : > { %5404 = vrcp.f32 %v3717_v61 }
0x12e7   : > { %5406 = vpow2.f32 %v3731_v5 }
0x12f0   : > { %v5401_v22 = vpop.eup %5400 }
0x12f1   : > { %v3828_v24 = vmul.f32 1.0614054, %v5401_v22 }
0x12f2   : > { %v5403_v37 = vpop.eup %5402 }
0x12f3   : > { %v3829_v25 = vadd.f32 -1.4531521, %v3828_v24  ;;  %v5405_v63 = vpop.eup %5404  ;;  %v4025_v24 = vrot.slane %v4009_v18, %v6364_v17 }
0x12f4   : > { %v3720_v31 = vmul.f32 1.0614054, %v5405_v63  ;;  %v5407_v20 = vpop.eup %5406 }
0x12f5   : > { %v3830_v28 = vmul.f32 %v5401_v22, %v3829_v25 }
0x12f6   : > { %v3721_v0 = vadd.f32 -1.4531521, %v3720_v31 }
0x12f7   : > { %v3831_v29 = vadd.f32 1.4214138, %v3830_v28  ;;  %v4014_v28 = vsel %vm3880_vm7, 0.0, %v4012_v19 }
0x12f8   : > { %v3722_v59 = vmul.f32 %v5405_v63, %v3721_v0 }
0x12f9   : > { %v3832_v30 = vmul.f32 %v5401_v22, %v3831_v29  ;;  %v4786_v29 = vld [vmem:[%s6593_s2] ss:$0 sm:$0xff]  ;;  %s6596_s2 = sld [smem:[#allocation41_spill]] }
0x12fa   : > { %v3723_v2 = vadd.f32 1.4214138, %v3722_v59  ;;  %v4020_v59 = vmul.f32 %v4019_v52, %v4014_v28 }
0x12fb   : > { %v3833_v33 = vadd.f32 -0.28449672, %v3832_v30  ;;  %v6374_v30 = vsub.s32 2, %v6127_v26 }
0x12fc   : > { %v3724_v4 = vmul.f32 %v5405_v63, %v3723_v2 }
0x12fd   : > { %v3834_v34 = vmul.f32 %v5401_v22, %v3833_v33  ;;  %v4015_v33 = vsel %vm3880_vm7, %v4012_v19, 0.0  ;;  %v4790_v19 = vld [vmem:[%s6597_s1] ss:$0 sm:$0xff]  ;;  %s6601_s1 = sld [smem:[#allocation39_spill]] }
0x12fe   : > { %v3725_v9 = vadd.f32 -0.28449672, %v3724_v4  ;;  %v4787_v4 = vld [vmem:[%s6595_s3] ss:$0 sm:$0xff]  ;;  %s6599_s3 = smov %s6598_s7 }
0x12ff   : > { %v3835_v35 = vadd.f32 0.2548296, %v3834_v34 }
0x1300   : > { %v3726_v12 = vmul.f32 %v5405_v63, %v3725_v9 }
0x1301   : > { %v3836_v36 = vmul.f32 %v5401_v22, %v3835_v35 }
0x1302   : > { %v3727_v14 = vadd.f32 0.2548296, %v3726_v12 }
0x1303   : > { %v3841_v62 = vmul.f32 %v5403_v37, %v3836_v36  ;;  %v4026_v36 = vmul.f32 %v4025_v24, %v4014_v28 }
0x1304   : > { %v3728_v16 = vmul.f32 %v5405_v63, %v3727_v14 }
0x1305   : > { %v3842_v38 = vsub.f32 1.0, %v3841_v62  ;;  %v3892_v62 = vrot.slane %v3875_v10, %v6364_v17  ;;  %v4030_v26 = vrot.slane %v4026_v36, 1 }
0x1306   : > { %v3733_v22 = vmul.f32 %v5407_v20, %v3728_v16  ;;  %v4104_v20 = vld [vmem:[%s6596_s2 + $0x10] sm:$0xff] }
0x1307   : > { %v3843_v32 = vmul.f32 %v3842_v38, %v3822_v41  ;;  %v3906_v38 = vrot.slane %v3875_v10, %v6374_v30  ;;  %v4027_v41 = vmul.f32 %v4025_v24, %v4015_v33  ;;  %v4110_v24 = vld [vmem:[%s6598_s7 + $0x18] sm:$0xff]  ;;  %s6602_s7 = sld [smem:[#allocation40_spill]] }
0x1308   : > { %v3734_v35 = vsub.f32 1.0, %v3733_v22  ;;  %v4102_v22 = vld [vmem:[%s6596_s2] sm:$0xff]  ;;  %5200 = vmatpush3.msra.mxu1 %v4110_v24 }
0x1309   : > { %v3844_v43 = vadd.f32 1.0, %v3843_v32  ;;  %v3714_v32 = vsel %vm3713_vm8, 1.0, %v5644_v40  ;;  %5201 = vmatprep.subr.mxu1 %v5641_v8 }
0x130b   : > { %v3845_v44 = vmul.f32 %v3844_v43, %v3819_v42  ;;  %v4038_v42 = vrot.slane %v4009_v18, %v6374_v30  ;;  %v4105_v18 = vld [vmem:[%s6596_s2 + $0x18] sm:$0xff] }
0x130d   : > { %v3848_v45 = vsel %vm1416_vm0, %v3845_v44, 0.0  ;;  %v4039_v53 = vmul.f32 %v4038_v42, %v4014_v28  ;;  %v4040_v54 = vmul.f32 %v4038_v42, %v4015_v33  ;;  %v4107_v28 = vld [vmem:[%s6599_s3] sm:$0xff] }
0x130e   : > { %3849 = vadd.xlane.f32.xlu0 %v3848_v45  ;;  %v4791_v52 = vld [vmem:[%s6602_s7] ss:$0 sm:$0xff]  ;;  %s6605_s7 = sld [smem:[#allocation47_spill]] }
0x130f   : > { %v4043_v2 = vrot.slane %v4039_v53, 2  ;;  %v4044_v3 = vrot.slane %v4040_v54, 2 }
0x1311   : > { %v4045_v13 = vsel %vm3911_vm10, %v4043_v2, %v4044_v3 }
0x1397   : > { %v3850_v46 = vpop.xlane.xlu0 %3849 }
0x1398   : > { %v3851_v47 = vmul.f32 0.03125, %v3850_v46 }
0x139a   : > { %v3852_v48 = vsub.f32 %v3845_v44, %v3851_v47  ;;  %v3735_v44 = vmul.f32 %v3734_v35, %v3714_v32  ;;  %v3886_v47 = vrot.slane %v3875_v10, %v6130_v27  ;;  %v4055_v10 = vld [vmem:[%s6601_s1] sm:$0x7]  ;;  %s6604_s1 = sld [smem:[#allocation46_spill]] }
0x139b   : > { %v4071_v35 = vrot.slane %v4055_v10, %v6364_v17  ;;  %v4084_v36 = vrot.slane %v4055_v10, %v6374_v30  ;;  %v4065_v32 = vrot.slane %v4055_v10, %v6130_v27 }
0x139c   : > { %v3853_v49 = vmul.f32 %v3852_v48, %v3852_v48  ;;  %v3736_v0 = vadd.f32 1.0, %v3735_v44 }
0x139e   : > { %v3854_v50 = vsel %vm1416_vm0, %v3853_v49, 0.0 }
0x139f   : > { %3855 = vadd.xlane.f32.xlu1 %v3854_v50 }
0x1428   : > { %v3856_v7 = vpop.xlane.xlu1 %3855 }
0x1429   : > { %v3857_v6 = vmul.f32 0.03125, %v3856_v7  ;;  %v3711_v7 = vmul.f32 0.5, %v6356_v56 }
0x142b   : > { %v3858_v11 = vadd.f32 1e-12, %v3857_v6 }
0x142d   : > { %5408 = vrsqrt.f32 %v3858_v11  ;;  %v3737_v11 = vmul.f32 %v3736_v0, %v3711_v7  ;;  %v4295_v7 = vld [vmem:[%s6604_s1] sm:$0xff] }
0x143a   : > { %v5409_v21 = vpop.eup %5408 }
0x143b   : > { %v3860_v25 = vmul.f32 %v5409_v21, %v3852_v48  ;;  %v4031_v48 = vrot.slane %v4027_v41, 1  ;;  %v4103_v21 = vld [vmem:[%s6596_s2 + $0x8] sm:$0xff]  ;;  %s6606_s2 = smov %s6605_s7 }
0x143c   : > { %v4382_v24 = vld [vmem:[%s6606_s2 + $0x10] sm:$0xff] }
0x143d   : > { %v3867_v34 = vmul.f32 %v4785_v23, %v3860_v25  ;;  %v4032_v63 = vsel %vm3897_vm9, %v4030_v26, %v4031_v48  ;;  %v4109_v25 = vld [vmem:[%s6599_s3 + $0x10] sm:$0xff] }
0x143e   : > { %v4034_v6 = vadd.f32 %v4032_v63, %v4020_v59  ;;  %5202 = vmatpush3.msra.mxu1 %v4109_v25  ;;  %v4381_v25 = vld [vmem:[%s6606_s2 + $0x8] sm:$0xff] }
0x143f   : > { %v3874_v37 = vadd.f32 %v4786_v29, %v3867_v34  ;;  %5203 = vmatprep.subr.mxu1 %v5641_v8  ;;  %v4788_v29 = vld [vmem:[%s6600_s11] ss:$0 sm:$0xff]  ;;  %s6603_s11 = sld [smem:[#allocation43_spill]] }
0x1440   : > { %v4047_v14 = vadd.f32 %v4045_v13, %v4034_v6  ;;  %v4387_v6 = vld [vmem:[%s6605_s7 + $0x38] sm:$0xff] }
0x1441   : > { %v3878_v43 = vrot.slane %v3874_v37, 7  ;;  %v4383_v13 = vld [vmem:[%s6606_s2 + $0x18] sm:$0xff] }
0x1442   : > { %v4054_v56 = vadd.f32 %v4790_v19, %v4047_v14 }
0x1443   : > { %v3881_v45 = vsel %vm3880_vm7, 0.0, %v3878_v43  ;;  %v3882_v46 = vsel %vm3880_vm7, %v3878_v43, 0.0 }
0x1444   : > { %v3894_v49 = vmul.f32 %v3892_v62, %v3882_v46  ;;  %v3893_v50 = vmul.f32 %v3892_v62, %v3881_v45  ;;  %v3907_v51 = vmul.f32 %v3906_v38, %v3881_v45  ;;  %v3908_v40 = vmul.f32 %v3906_v38, %v3882_v46 }
0x1445   : > { %v3887_v60 = vmul.f32 %v3886_v47, %v3881_v45  ;;  %v4101_v23 = vadd.f32 %v4054_v56, %v6361_v15  ;;  %v4108_v15 = vld [vmem:[%s6599_s3 + $0x8] sm:$0xff]  ;;  %s6608_s3 = sld [smem:[#allocation45_spill]] }
0x1446   : > { %v3898_v55 = vrot.slane %v3893_v50, 1  ;;  %v3899_v57 = vrot.slane %v3894_v49, 1  ;;  %v3912_v58 = vrot.slane %v3907_v51, 2  ;;  %v3913_v61 = vrot.slane %v3908_v40, 2  ;;  %5204 = vmatpush3.msra.mxu1 %v4108_v15  ;;  %v4380_v15 = vld [vmem:[%s6606_s2] sm:$0xff] }
0x1447   : > { %5205 = vmatprep.subr.mxu1 %v5641_v8 }
0x1448   : > { %v3900_v31 = vsel %vm3897_vm9, %v3898_v55, %v3899_v57  ;;  %v3914_v5 = vsel %vm3911_vm10, %v3912_v58, %v3913_v61  ;;  %5206 = vmatpush3.msra.mxu1 %v4107_v28  ;;  %v4794_v57 = vld [vmem:[%s6603_s11] ss:$0 sm:$0xff]  ;;  %s6607_s11 = sld [smem:[#allocation44_spill]] }
0x1449   : > { %v3902_v1 = vadd.f32 %v3900_v31, %v3887_v60  ;;  %5221 = vmatprep.subr.mxu1 %v5641_v8  ;;  %v4797_v28 = vld [vmem:[#allocation2] ss:$0 sm:$0xff] }
0x144b   : > { %v3916_v9 = vadd.f32 %v3914_v5, %v3902_v1  ;;  %v4296_v5 = vld [vmem:[%s6604_s1 + $0x8] sm:$0xff] }
0x144d   : > { %v3923_v12 = vadd.f32 %v4787_v4, %v3916_v9  ;;  %v4298_v4 = vld [vmem:[%s6604_s1 + $0x18] sm:$0xff]  ;;  %v4386_v9 = vld [vmem:[%s6606_s2 + $0x30] sm:$0xff] }
0x144f   : > { %v3924_v16 = vmul.f32 %v3923_v12, %v3737_v11  ;;  %v4385_v11 = vld [vmem:[%s6606_s2 + $0x28] sm:$0xff]  ;;  %v4384_v12 = vld [vmem:[%s6606_s2 + $0x20] sm:$0xff] }
0x1451   : > { %5197 = vmatmul.mubr.msk.f32.vlgmr.msra.gmra.mxu0 %vm1416_vm0, %v3924_v16 }
0x1452   : > { %5211 = vmatpush3.msra.mxu0 %v4105_v18  ;;  %5218 = vmatprep.mubr.msk.f32.mxu0 %vm5642_vm1, %v5641_v8 }
0x1453   : > { %5212 = vmatprep.subr.mxu0 %v5641_v8 }
0x1454   : > { %5213 = vmatpush3.msra.mxu0 %v4104_v20  ;;  %v4795_v20 = vld [vmem:[%s6607_s11] ss:$0 sm:$0xff]  ;;  %s4804_s11 = sshll.u32 %s5902_s0, 7 }
0x1455   : > { %5214 = vmatprep.subr.mxu0 %v5641_v8  ;;  %s4512_s5 = scalar_lea.hbm %s5879_s4, %s4804_s11 }
0x1456   : > { %5215 = vmatpush3.msra.mxu0 %v4103_v21  ;;  %v4796_v21 = vld [vmem:[%s6608_s3] ss:$0 sm:$0xff]  ;;  %s1401_s3 = sand.u32 1, %s5582_s10  }
0x1457   : > { %5216 = vmatprep.subr.mxu0 %v5641_v8  ;;  %s4680_s7 = sshll.u32 %s1401_s3, 3  ;;  %s4501_s6 = scalar_lea.sflag [#allocation4], %s1401_s3 }
0x1458   : > { %5217 = vmatpush3.msra.mxu0 %v4102_v22 }
0x1459   : > { %5219 = vmatmul.mubr.msk.f32.vlgmr.msra.gmra.mxu0 %vm1416_vm0, %v4101_v23  ;;  %5232 = vmatprep.subr.mxu0 %v5641_v8 }
0x145a   : > { %5248 = vmatprep.mubr.msk.f32.mxu0 %vm5642_vm1, %v5641_v8  ;;  %5233 = vmatpush3.msra.mxu0 %v4387_v6 }
0x145b   : > { %5234 = vmatprep.subr.mxu0 %v5641_v8 }
0x145c   : > { %5235 = vmatpush3.msra.mxu0 %v4386_v9 }
0x145d   : > { %5236 = vmatprep.subr.mxu0 %v5641_v8 }
0x145e   : > { %5237 = vmatpush3.msra.mxu0 %v4385_v11 }
0x145f   : > { %5238 = vmatprep.subr.mxu0 %v5641_v8 }
0x1460   : > { %5239 = vmatpush3.msra.mxu0 %v4384_v12 }
0x1461   : > { %5240 = vmatprep.subr.mxu0 %v5641_v8 }
0x1462   : > { %5241 = vmatpush3.msra.mxu0 %v4383_v13 }
0x1463   : > { %5242 = vmatprep.subr.mxu0 %v5641_v8 }
0x1464   : > { %5243 = vmatpush3.msra.mxu0 %v4382_v24 }
0x1465   : > { %5244 = vmatprep.subr.mxu0 %v5641_v8 }
0x1466   : > { %5245 = vmatpush3.msra.mxu0 %v4381_v25 }
0x1467   : > { %5246 = vmatprep.subr.mxu0 %v5641_v8 }
0x1468   : > { %5247 = vmatpush3.msra.mxu0 %v4380_v15 }
0x1511   : > { %v4005_v33 = vpop.f32.mrf.mxu0 }
0x1512   : > { %v4006_v34 = vadd.f32 %v4788_v29, %v4005_v33 }
0x1513   : > { %v5198_v37 = vpop.f32.mrf.mxu0 }
0x1514   : > { %v4058_v62 = vrot.slane %v4006_v34, 7 }
0x1516   : > { %v4060_v38 = vsel %vm3880_vm7, 0.0, %v4058_v62  ;;  %v4061_v41 = vsel %vm3880_vm7, %v4058_v62, 0.0 }
0x1517   : > { %v4072_v42 = vmul.f32 %v4071_v35, %v4060_v38  ;;  %v4073_v43 = vmul.f32 %v4071_v35, %v4061_v41  ;;  %v4085_v44 = vmul.f32 %v4084_v36, %v4060_v38  ;;  %v4086_v26 = vmul.f32 %v4084_v36, %v4061_v41  ;;  %v4799_v35 = vld [vmem:[#allocation5] ss:$0 sm:$0xff] }
0x1518   : > { %v4066_v48 = vmul.f32 %v4065_v32, %v4060_v38 }
0x1519   : > { %v4076_v45 = vrot.slane %v4072_v42, 1  ;;  %v4077_v46 = vrot.slane %v4073_v43, 1  ;;  %v4089_v47 = vrot.slane %v4085_v44, 2  ;;  %v4253_v17 = vpop.f32.mrf.mxu0  ;;  %v4090_v30 = vrot.slane %v4086_v26, 2 }
0x151b   : > { %v4078_v49 = vsel %vm3897_vm9, %v4076_v45, %v4077_v46  ;;  %v5220_v50 = vpop.f32.mrf.mxu0  ;;  %v4091_v53 = vsel %vm3911_vm10, %v4089_v47, %v4090_v30 }
0x151c   : > { %v4080_v51 = vadd.f32 %v4078_v49, %v4066_v48  ;;  %v4801_v48 = vld [vmem:[#allocation7] ss:$0 sm:$0xff]  ;;  %v4802_v49 = vld [vmem:[#allocation8] ss:$0 sm:$0xff] }
0x151e   : > { %v4093_v40 = vadd.f32 %v4091_v53, %v4080_v51 }
0x1520   : > { %v4100_v27 = vadd.f32 %v4791_v52, %v4093_v40 }
0x1522   : > { %v4106_v54 = vadd.f32 %v4100_v27, %v4006_v34 }
0x1524   : > { %5208 = vmatmul.mubr.msk.f32.vlgmr.msra.gmra.mxu1 %vm1416_vm0, %v4106_v54 }
0x1525   : > { %5229 = vmatprep.mubr.msk.f32.mxu1 %vm5642_vm1, %v5641_v8  ;;  %5222 = vmatpush3.msra.mxu1 %v4298_v4 }
0x1526   : > { %5223 = vmatprep.subr.mxu1 %v5641_v8 }
0x15e4   : > { %v4180_v55 = vpop.f32.mrf.mxu1 }
0x15e5   : > { %v4254_v58 = vadd.f32 %v4253_v17, %v4180_v55 }
0x15e6   : > { %v5209_v60 = vpop.f32.mrf.mxu1 }
0x15e7   : > { %v4264_v61 = vadd.f32 %v4794_v57, %v4254_v58 }
0x15e9   : > { %v6430_v63 = vadd.f32 %v4264_v61, %v6043_v39  ;;  %v4297_v39 = vld [vmem:[%s6604_s1 + $0x10] sm:$0xff]  ;;  %s1403_s1 = scalar_lea.vmem [#allocation10], %s4680_s7 }
0x15ea   : > { %5224 = vmatpush3.msra.mxu1 %v4297_v39  ;;  %s4514_s2 = sshll.u32 %s1403_s1, 4  ;;  %s4515_s2 = int_to_ptr.vmem [resolvable:$true] %s4514_s2 }
0x15eb   : > { %v4268_v31 = vsel %vm1416_vm0, %v6430_v63, 0.0  ;;  %5225 = vmatprep.subr.mxu1 %v5641_v8  ;;  %s5518_s8 = scalar_lea.vmem %s4515_s2, 128  ;;  %p5525_p2 = scmp.lt.s32.totalorder %s4515_s2, %s5523_s12 }
0x15ec   : > { %4269 = vadd.xlane.f32.xlu0 %v4268_v31  ;;  %5226 = vmatpush3.msra.mxu1 %v4296_v5  ;;  %p5519_p8 = scmp.ne.s32.totalorder %s4515_s2, %s5518_s8  ;;  %p5526_p9 = scmp.lt.s32.totalorder %s5524_s13, %s5518_s8 }
0x15ed   : > { %5227 = vmatprep.subr.mxu1 %v5641_v8 }
0x15ee   : > { %5228 = vmatpush3.msra.mxu1 %v4295_v7  ;;  %p5520_p0 = pnand %p5519_p8, %p6609_p11  ;;  %p5527_p3 = por %p5526_p9, %p5525_p2 }
0x15f0   : > { %p5521_p1 = pneg %p5520_p0 }
0x15f2   : > { %p5528_p4 = pnand %p5527_p3, %p5521_p1 }
0x1675   : > { %v4270_v0 = vpop.xlane.xlu0 %4269 }
0x1676   : > { %v4271_v59 = vmul.f32 0.03125, %v4270_v0 }
0x1678   : > { %v4272_v1 = vsub.f32 %v6430_v63, %v4271_v59 }
0x167a   : > { %v4273_v2 = vmul.f32 %v4272_v1, %v4272_v1 }
0x167c   : > { %v4274_v3 = vsel %vm1416_vm0, %v4273_v2, 0.0 }
0x167d   : > { %4275 = vadd.xlane.f32.xlu1 %v4274_v3 }
0x1706   : > { %v4276_v14 = vpop.xlane.xlu1 %4275 }
0x1707   : > { %v4277_v16 = vmul.f32 0.03125, %v4276_v14 }
0x1709   : > { %v4278_v18 = vadd.f32 1e-12, %v4277_v16 }
0x170b   : > { %5410 = vrsqrt.f32 %v4278_v18 }
0x1718   : > { %v5411_v19 = vpop.eup %5410 }
0x1719   : > { %v4280_v56 = vmul.f32 %v5411_v19, %v4272_v1 }
0x171b   : > { %v4287_v22 = vmul.f32 %v4795_v20, %v4280_v56 }
0x171d   : > { %v4294_v23 = vadd.f32 %v4796_v21, %v4287_v22 }
0x171f   : > { %5230 = vmatmul.mubr.msk.f32.vlgmr.msra.gmra.mxu1 %vm1416_vm0, %v4294_v23 }
0x17df   : > { %v4375_v29 = vpop.f32.mrf.mxu1 }
0x17e0   : > { %v4376_v10 = vadd.f32 %v4797_v28, %v4375_v29 }
0x17e1   : > { %v5231_v33 = vpop.f32.mrf.mxu1 }
0x17e2   : > { %v4379_v34 = vmax.f32 %v4376_v10, 0.0 }
0x17e4   : > { %5249 = vmatmul.mubr.msk.f32.vlgmr.msra.gmra.mxu0 %vm1545_vm2, %v4379_v34 }
0x18a4   : > { %v4464_v36 = vpop.f32.mrf.mxu0 }
0x18a5   : > { %v4465_v37 = vadd.f32 %v4799_v35, %v4464_v36 }
0x18a6   : > { %v5250_v62 = vpop.f32.mrf.mxu0 }
0x18a7   : > { %v4468_v38 = vmul.f32 0.5, %v4465_v37 }
0x18a9   : > { %v4469_v41 = vadd.f32 %v4468_v38, %v6430_v63 }
0x18ab   : > { %v4472_v32 = vsel %vm1416_vm0, %v4469_v41, 0.0 }
0x18ac   : > { %4473 = vadd.xlane.f32.xlu0 %v4472_v32 }
0x1935   : > { %v4474_v8 = vpop.xlane.xlu0 %4473 }
0x1936   : > { %v4475_v42 = vmul.f32 0.03125, %v4474_v8 }
0x1938   : > { %v4476_v43 = vsub.f32 %v4469_v41, %v4475_v42 }
0x193a   : > { %v4477_v44 = vmul.f32 %v4476_v43, %v4476_v43 }
0x193c   : > { %v4478_v26 = vsel %vm1416_vm0, %v4477_v44, 0.0 }
0x193d   : > { %4479 = vadd.xlane.f32.xlu1 %v4478_v26 }
0x19c6   : > { %v4480_v45 = vpop.xlane.xlu1 %4479 }
0x19c7   : > { %v4481_v46 = vmul.f32 0.03125, %v4480_v45 }
0x19c9   : > { %v4482_v47 = vadd.f32 1e-12, %v4481_v46 }
0x19cb   : > { %5412 = vrsqrt.f32 %v4482_v47 }
0x19d8   : > { %v5413_v17 = vpop.eup %5412 }
0x19d9   : > { %v4484_v30 = vmul.f32 %v5413_v17, %v4476_v43 }
0x19db   : > { %v4491_v50 = vmul.f32 %v4801_v48, %v4484_v30 }
0x19dd   : > { %v4498_v51 = vadd.f32 %v4802_v49, %v4491_v50 }
0x19df   : > { %4499 = vst.msk [vmem:[%s1403_s1] sm:$0xff] %vm1416_vm0, %v4498_v51 }
0x19e0   : > { %5531 = shalt.err (!%p5528_p4)
}
0x19e1   : > { %s5532_s0 = scalar_lea.hbm %s4512_s5, 128  ;;  %s5536_s1 = scalar_lea.hbm %s5879_s4, 256 }
0x19e2   : > { %p5533_p5 = scmp.ne.s32.totalorder %s4512_s5, %s5532_s0  ;;  %p5537_p10 = scmp.lt.s32.totalorder %s4512_s5, %s5879_s4 }
0x19e3   : > { %p5538_p12 = scmp.lt.s32.totalorder %s5536_s1, %s5532_s0 }
0x19e4   : > { %p5534_p13 = pnand %p5533_p5, %p6609_p11 }
0x19e5   : > { %p5539_p7 = por %p5538_p12, %p5537_p10 }
0x19e6   : > { %p5535_p6 = pneg %p5534_p13 }
0x19e8   : > { %p5540_p8 = pnand %p5539_p7, %p5535_p6 }
0x19ea   : > { %5543 = shalt.err (!%p5540_p8)
}
0x19eb   : > { %5267 = dma.vmem_to_hbm [thread:$0]  (%p6609_p11), %s4515_s2, 128, %s4512_s5, %s4501_s6  }
0x19ec PF: > { %s6610_s9 = sld [smem:[#allocation50_spill]]  ;;  %p5294_p0 = scmp.ge.s32.totalorder %s5590_s15, 2 }
0x19ed   : > { %s6611_s13 = sld [smem:[#allocation54_spill]] }
0x19f2   : > { %s4526_s8 = sand.u32 1, %s6610_s9  }
0x19f3   : > { %p6612_p1 = scmp.ne.s32.totalorder %s6611_s13, 0  ;;  %s4527_s12 = scalar_lea.sflag [#allocation4], %s4526_s8 }
0x19f5   : > { %p5283_p2 = pnand %p5294_p0, %p6612_p1 }
0x19f7   : > { %p5284_p9 = pneg %p5283_p2 }
0x19f9   : > { %5573 = dma.done.wait (%p5284_p9), %s4527_s12, 128  }
0x19fa   : > { %5575 = vsyncadd (%p5284_p9), %s4527_s12, 4294967168  ;;  %s6613_s15 = sld [smem:[#allocation52_spill]]  ;;  %s6616_s7 = smov %s5582_s10 }
0x19fb   : > { %s6614_s3 = sld [smem:[#allocation51_spill]] }
0x19fc   : > { %s6615_s11 = sld [smem:[#allocation53_spill]] }
0x1a00   : > { %p104_p3 = scmp.ge.s32.totalorder %s6613_s15, 4  }
0x1a01   : > { %s6617_s10 = smov %s6614_s3 }
0x1a02   :  { %106 = sbr.rel (!%p104_p3) target bundleno = 90 (0x5a), region = 321 }
0x1a07   :  { %4532 = vsyncpa [#allocation3], 1 }
0x1a08   :  { %4534 = vsyncpa [#allocation3 + $0x1], 1 }
0x1a09   :  { %4535 = vsyncpa [#allocation6], 1 }
0x1a0a   :  { %4536 = vsyncpa [#allocation9], 1 }
0x1a0b   :  { %4537 = vsyncpa [#allocation4], 1 }
0x1a0c   :  { %4539 = vsyncpa [#allocation4 + $0x1], 1 }

</bundles_post_ra>
